<compile_context>
chip_gen: v6e
topology: v6e:2x2x1
jax: 0.10.0
libtpu: 0.0.40
codegen_flags: <defaults>
</compile_context>

<pallas_src>
import numpy as np
import jax
import jax.numpy as jnp
from jax.experimental import pallas as pl
from jax.experimental.pallas import tpu as pltpu


# ----------------------------------------------------------------------------
# One-time parameter preprocessing (plain numpy on concrete weights):
# build dense operators acting on flattened NHWC activations.
# ----------------------------------------------------------------------------
def _conv_dense(w, H, W, pad):
    """Dense T s.t. flatten_nhwc(conv2d(x, w, pad)) == flatten_nhwc(x) @ T."""
    w = np.asarray(w, np.float32)                    # (KH, KW, Cin, Cout) HWIO
    KH, KW, Cin, Cout = w.shape
    Ho, Wo = H + 2 * pad - KH + 1, W + 2 * pad - KW + 1
    T = np.zeros((H * W * Cin, Ho * Wo * Cout), np.float32)
    for ho in range(Ho):
        for wo in range(Wo):
            col = (ho * Wo + wo) * Cout
            for kh in range(KH):
                h = ho + kh - pad
                if not 0 <= h < H:
                    continue
                for kw in range(KW):
                    ww = wo + kw - pad
                    if not 0 <= ww < W:
                        continue
                    row = (h * W + ww) * Cin
                    T[row:row + Cin, col:col + Cout] = w[kh, kw]
    return T, Ho, Wo


def _conv_relu_pool_ops(w, b, H, W):
    """maxpool2(relu(conv_valid(x,w)+b)) == max_j relu(x_flat @ Ts[j] + bias)."""
    T, Ho, Wo = _conv_dense(w, H, W, pad=0)
    Cout = int(np.asarray(w).shape[3])
    Po, Qo = Ho // 2, Wo // 2
    cands = []
    for dh in range(2):
        for dw in range(2):
            idx = []
            for po in range(Po):
                for qo in range(Qo):
                    base = ((2 * po + dh) * Wo + (2 * qo + dw)) * Cout
                    idx.extend(range(base, base + Cout))
            cands.append(T[:, np.asarray(idx)])
    Ts = np.stack(cands, axis=0)                                 # (4, HWCin, PoQoCout)
    bias = np.tile(np.asarray(b, np.float32), Po * Qo)[None, :]  # (1, PoQoCout)
    return jnp.asarray(Ts), jnp.asarray(bias), Po, Qo


def _conv_same_ops(w, b, H, W):
    """conv_same(x, w) + b == x_flat @ T + bias  (3x3, padding=1)."""
    KH = int(np.asarray(w).shape[0])
    T, Ho, Wo = _conv_dense(w, H, W, pad=(KH - 1) // 2)
    bias = np.tile(np.asarray(b, np.float32), Ho * Wo)[None, :]
    return jnp.asarray(T), jnp.asarray(bias)


def build_operators(params, H, W):
    """Build all dense operators for a given input spatial size (concrete params)."""
    t1, b1, H1, W1 = _conv_relu_pool_ops(params["conv1_w"], params["conv1_b"], H, W)
    ta, ba = _conv_same_ops(params["rb1"]["w1"], params["rb1"]["b1"], H1, W1)
    tb, bb = _conv_same_ops(params["rb1"]["w2"], params["rb1"]["b2"], H1, W1)
    t2, b2, H2, W2 = _conv_relu_pool_ops(params["conv2_w"], params["conv2_b"], H1, W1)
    tc, bc = _conv_same_ops(params["rb2"]["w1"], params["rb2"]["b1"], H2, W2)
    td, bd = _conv_same_ops(params["rb2"]["w2"], params["rb2"]["b2"], H2, W2)
    C2 = int(np.asarray(params["rb2"]["w2"]).shape[3])
    # AdaptiveAvgPool2d(1) folded into the fc weights: gap @ fc_w.
    gap = np.kron(np.ones((H2 * W2, 1), np.float32) / float(H2 * W2),
                  np.eye(C2, dtype=np.float32))                   # (H2*W2*C2, C2)
    fcw = jnp.asarray(gap @ np.asarray(params["fc_w"], np.float32))
    fcb = jnp.asarray(np.asarray(params["fc_b"], np.float32)[None, :])
    return [t1, b1, ta, ba, tb, bb, t2, b2, tc, bc, td, bd, fcw, fcb]


# ----------------------------------------------------------------------------
# The fused Pallas kernel: a short chain of MXU matmuls with fused bias /
# ReLU / residual-add / pooling-max, all on lane-dense 2-D VMEM values.
# ----------------------------------------------------------------------------
def _net_kernel(x_ref, t1_ref, b1_ref, ta_ref, ba_ref, tb_ref, bb_ref,
                t2_ref, b2_ref, tc_ref, bc_ref, td_ref, bd_ref,
                fcw_ref, fcb_ref, out_ref):
    def mm(a, b):
        return jnp.dot(a, b, preferred_element_type=jnp.float32)

    x = x_ref[...]                                   # (N, H*W*Cin)

    # conv1 (5x5 valid, 1->16) + bias + ReLU + MaxPool2d(2)   -> (N, 6*6*16)
    p1 = jnp.maximum(mm(x, t1_ref[0]) + b1_ref[...], 0.0)
    for j in range(1, 4):
        p1 = jnp.maximum(p1, jnp.maximum(mm(x, t1_ref[j]) + b1_ref[...], 0.0))

    # residual block 1: relu(conv2(relu(conv1(p1))) + p1)
    y1 = jnp.maximum(mm(p1, ta_ref[...]) + ba_ref[...], 0.0)
    r1 = jnp.maximum(mm(y1, tb_ref[...]) + bb_ref[...] + p1, 0.0)

    # conv2 (5x5 valid, 16->32) + bias + ReLU + MaxPool2d(2)  -> (N, 1*1*32)
    p2 = jnp.maximum(mm(r1, t2_ref[0]) + b2_ref[...], 0.0)
    for j in range(1, 4):
        p2 = jnp.maximum(p2, jnp.maximum(mm(r1, t2_ref[j]) + b2_ref[...], 0.0))

    # residual block 2
    y2 = jnp.maximum(mm(p2, tc_ref[...]) + bc_ref[...], 0.0)
    r2 = jnp.maximum(mm(y2, td_ref[...]) + bd_ref[...] + p2, 0.0)

    # GAP (already folded into fcw) + Linear(32, 10)
    out_ref[...] = (mm(r2, fcw_ref[...]) + fcb_ref[...]).astype(out_ref.dtype)


def _matmul_flops(n, ops):
    f = 0
    for o in ops:
        if o.ndim == 3:                              # stacked pooling candidates
            f += 2 * n * o.shape[0] * o.shape[1] * o.shape[2]
        elif o.ndim == 2 and o.shape[0] > 1:         # dense conv / fc operators
            f += 2 * n * o.shape[0] * o.shape[1]
    return int(f)


def net_forward(x_nchw, params, ops=None):
    """Full Net forward.  `ops` (from build_operators) can be pre-built and reused."""
    N, Cin, H, W = x_nchw.shape
    if ops is None:
        ops = build_operators(params, H, W)          # one-time weight preprocessing
    # single boundary layout change: NCHW -> flattened NHWC rows
    x_flat = jnp.transpose(x_nchw, (0, 2, 3, 1)).reshape(N, H * W * Cin)
    x_flat = x_flat.astype(jnp.float32)
    n_out = ops[-1].shape[-1]
    bytes_accessed = int(x_flat.size * 4 + sum(int(o.size) * 4 for o in ops)
                         + N * n_out * 4)
    return pl.pallas_call(
        _net_kernel,
        out_shape=jax.ShapeDtypeStruct((N, n_out), jnp.float32),
        compiler_params=pltpu.CompilerParams(vmem_limit_bytes=32 * 1024 * 1024),
        cost_estimate=pl.CostEstimate(flops=_matmul_flops(N, ops),
                                      transcendentals=0,
                                      bytes_accessed=bytes_accessed),
    )(x_flat, *ops)


# ----------------------------------------------------------------------------
# Deterministic synthetic parameters (shapes from Net.__init__)
# ----------------------------------------------------------------------------
def init_params(key):
    ks = jax.random.split(key, 8)

    def w(k, shape, fan_in):
        return jax.random.normal(k, shape, jnp.float32) / jnp.sqrt(fan_in)

    return {
        "conv1_w": w(ks[0], (5, 5, 1, 16), 25.0),
        "conv1_b": jnp.full((16,), 0.01, jnp.float32),
        "rb1": {"w1": w(ks[1], (3, 3, 16, 16), 144.0),
                "b1": jnp.full((16,), 0.02, jnp.float32),
                "w2": w(ks[2], (3, 3, 16, 16), 144.0),
                "b2": jnp.full((16,), -0.01, jnp.float32)},
        "conv2_w": w(ks[3], (5, 5, 16, 32), 400.0),
        "conv2_b": jnp.full((32,), 0.01, jnp.float32),
        "rb2": {"w1": w(ks[4], (3, 3, 32, 32), 288.0),
                "b1": jnp.full((32,), 0.02, jnp.float32),
                "w2": w(ks[5], (3, 3, 32, 32), 288.0),
                "b2": jnp.full((32,), -0.01, jnp.float32)},
        "fc_w": w(ks[6], (32, 10), 32.0),
        "fc_b": jnp.full((10,), 0.05, jnp.float32),
    }


# ----------------------------------------------------------------------------
# Pure-JAX reference (correctness check only)
# ----------------------------------------------------------------------------
def _ref_conv(x, w, b, padding):
    return jax.lax.conv_general_dilated(
        x, w, (1, 1), padding,
        dimension_numbers=("NHWC", "HWIO", "NHWC"),
        precision=jax.lax.Precision.HIGHEST) + b


def _ref_maxpool(x):
    return jax.lax.reduce_window(x, -jnp.inf, jax.lax.max,
                                 (1, 2, 2, 1), (1, 2, 2, 1), "VALID")


def ref_forward(x_nchw, p):
    x = jnp.transpose(x_nchw, (0, 2, 3, 1)).astype(jnp.float32)
    x = jnp.maximum(_ref_conv(x, p["conv1_w"], p["conv1_b"], "VALID"), 0.0)
    x = _ref_maxpool(x)
    y = jnp.maximum(_ref_conv(x, p["rb1"]["w1"], p["rb1"]["b1"], "SAME"), 0.0)
    x = jnp.maximum(_ref_conv(y, p["rb1"]["w2"], p["rb1"]["b2"], "SAME") + x, 0.0)
    x = jnp.maximum(_ref_conv(x, p["conv2_w"], p["conv2_b"], "VALID"), 0.0)
    x = _ref_maxpool(x)
    y = jnp.maximum(_ref_conv(x, p["rb2"]["w1"], p["rb2"]["b1"], "SAME"), 0.0)
    x = jnp.maximum(_ref_conv(y, p["rb2"]["w2"], p["rb2"]["b2"], "SAME") + x, 0.0)
    x = jnp.mean(x, axis=(1, 2))
    return jnp.dot(x, p["fc_w"], precision=jax.lax.Precision.HIGHEST) + p["fc_b"]


if __name__ == "__main__":
    key = jax.random.PRNGKey(0)
    pkey, xkey = jax.random.split(key)
    params = init_params(pkey)

    # PyTorch-style NCHW input: batch=2, 1 channel, 16x16 spatial
    x = jax.random.normal(xkey, (2, 1, 16, 16), jnp.float32)

    ops = build_operators(params, 16, 16)      # one-time weight preprocessing
    out = net_forward(x, params, ops)
    out = jax.block_until_ready(out)
    assert out.shape == (2, 10), out.shape

    ref = ref_forward(x, params)
    if not bool(jnp.allclose(out, ref, atol=1e-3, rtol=1e-3)):
        raise AssertionError(f"Pallas output mismatch vs reference:\n{out}\n{ref}")

    print("KERNEL_OK")
</pallas_src>

<mosaic_0001>
module attributes {stable_mosaic.version = 11 : i64} {
  func.func @_net_kernel(%arg0: memref<2x256xf32, #tpu.memory_space<vmem>>, %arg1: memref<4x256x576xf32, #tpu.memory_space<vmem>>, %arg2: memref<1x576xf32, #tpu.memory_space<vmem>>, %arg3: memref<576x576xf32, #tpu.memory_space<vmem>>, %arg4: memref<1x576xf32, #tpu.memory_space<vmem>>, %arg5: memref<576x576xf32, #tpu.memory_space<vmem>>, %arg6: memref<1x576xf32, #tpu.memory_space<vmem>>, %arg7: memref<4x576x32xf32, #tpu.memory_space<vmem>>, %arg8: memref<1x32xf32, #tpu.memory_space<vmem>>, %arg9: memref<32x32xf32, #tpu.memory_space<vmem>>, %arg10: memref<1x32xf32, #tpu.memory_space<vmem>>, %arg11: memref<32x32xf32, #tpu.memory_space<vmem>>, %arg12: memref<1x32xf32, #tpu.memory_space<vmem>>, %arg13: memref<32x10xf32, #tpu.memory_space<vmem>>, %arg14: memref<1x10xf32, #tpu.memory_space<vmem>>, %arg15: memref<2x10xf32, #tpu.memory_space<vmem>>) attributes {dimension_semantics = [], scalar_prefetch = 0 : i64, scratch_operands = 0 : i64, tpu.core_type = #tpu.core_type<tc>} {
    %c0 = arith.constant 0 : index
    %c0_0 = arith.constant 0 : index
    %0 = vector.load %arg0[%c0, %c0_0] : memref<2x256xf32, #tpu.memory_space<vmem>>, vector<2x256xf32>
    %c0_1 = arith.constant 0 : index
    %c0_2 = arith.constant 0 : index
    %c0_3 = arith.constant 0 : index
    %1 = vector.load %arg1[%c0_1, %c0_2, %c0_3] : memref<4x256x576xf32, #tpu.memory_space<vmem>>, vector<1x256x576xf32>
    %2 = vector.shape_cast %1 : vector<1x256x576xf32> to vector<256x576xf32>
    %cst = arith.constant dense<0.000000e+00> : vector<2x576xf32>
    %3 = tpu.matmul %0, %2, %cst {dimension_numbers = #tpu.dot_dimension_numbers<[1], [0], [0], [1], [0, 0, 1, 1], [], []>} : vector<2x256xf32>, vector<256x576xf32>, vector<2x576xf32> -> vector<2x576xf32>
    %c0_4 = arith.constant 0 : index
    %c0_5 = arith.constant 0 : index
    %4 = vector.load %arg2[%c0_4, %c0_5] : memref<1x576xf32, #tpu.memory_space<vmem>>, vector<1x576xf32>
    %5 = vector.broadcast %4 : vector<1x576xf32> to vector<2x576xf32>
    %6 = arith.addf %3, %5 : vector<2x576xf32>
    %cst_6 = arith.constant 0.000000e+00 : f32
    %7 = vector.broadcast %cst_6 : f32 to vector<2x576xf32>
    %8 = arith.maximumf %6, %7 : vector<2x576xf32>
    %c1 = arith.constant 1 : index
    %c0_7 = arith.constant 0 : index
    %c0_8 = arith.constant 0 : index
    %9 = vector.load %arg1[%c1, %c0_7, %c0_8] : memref<4x256x576xf32, #tpu.memory_space<vmem>>, vector<1x256x576xf32>
    %10 = vector.shape_cast %9 : vector<1x256x576xf32> to vector<256x576xf32>
    %cst_9 = arith.constant dense<0.000000e+00> : vector<2x576xf32>
    %11 = tpu.matmul %0, %10, %cst_9 {dimension_numbers = #tpu.dot_dimension_numbers<[1], [0], [0], [1], [0, 0, 1, 1], [], []>} : vector<2x256xf32>, vector<256x576xf32>, vector<2x576xf32> -> vector<2x576xf32>
    %c0_10 = arith.constant 0 : index
    %c0_11 = arith.constant 0 : index
    %12 = vector.load %arg2[%c0_10, %c0_11] : memref<1x576xf32, #tpu.memory_space<vmem>>, vector<1x576xf32>
    %13 = vector.broadcast %12 : vector<1x576xf32> to vector<2x576xf32>
    %14 = arith.addf %11, %13 : vector<2x576xf32>
    %cst_12 = arith.constant 0.000000e+00 : f32
    %15 = vector.broadcast %cst_12 : f32 to vector<2x576xf32>
    %16 = arith.maximumf %14, %15 : vector<2x576xf32>
    %17 = arith.maximumf %8, %16 : vector<2x576xf32>
    %c2 = arith.constant 2 : index
    %c0_13 = arith.constant 0 : index
    %c0_14 = arith.constant 0 : index
    %18 = vector.load %arg1[%c2, %c0_13, %c0_14] : memref<4x256x576xf32, #tpu.memory_space<vmem>>, vector<1x256x576xf32>
    %19 = vector.shape_cast %18 : vector<1x256x576xf32> to vector<256x576xf32>
    %cst_15 = arith.constant dense<0.000000e+00> : vector<2x576xf32>
    %20 = tpu.matmul %0, %19, %cst_15 {dimension_numbers = #tpu.dot_dimension_numbers<[1], [0], [0], [1], [0, 0, 1, 1], [], []>} : vector<2x256xf32>, vector<256x576xf32>, vector<2x576xf32> -> vector<2x576xf32>
    %c0_16 = arith.constant 0 : index
    %c0_17 = arith.constant 0 : index
    %21 = vector.load %arg2[%c0_16, %c0_17] : memref<1x576xf32, #tpu.memory_space<vmem>>, vector<1x576xf32>
    %22 = vector.broadcast %21 : vector<1x576xf32> to vector<2x576xf32>
    %23 = arith.addf %20, %22 : vector<2x576xf32>
    %cst_18 = arith.constant 0.000000e+00 : f32
    %24 = vector.broadcast %cst_18 : f32 to vector<2x576xf32>
    %25 = arith.maximumf %23, %24 : vector<2x576xf32>
    %26 = arith.maximumf %17, %25 : vector<2x576xf32>
    %c3 = arith.constant 3 : index
    %c0_19 = arith.constant 0 : index
    %c0_20 = arith.constant 0 : index
    %27 = vector.load %arg1[%c3, %c0_19, %c0_20] : memref<4x256x576xf32, #tpu.memory_space<vmem>>, vector<1x256x576xf32>
    %28 = vector.shape_cast %27 : vector<1x256x576xf32> to vector<256x576xf32>
    %cst_21 = arith.constant dense<0.000000e+00> : vector<2x576xf32>
    %29 = tpu.matmul %0, %28, %cst_21 {dimension_numbers = #tpu.dot_dimension_numbers<[1], [0], [0], [1], [0, 0, 1, 1], [], []>} : vector<2x256xf32>, vector<256x576xf32>, vector<2x576xf32> -> vector<2x576xf32>
    %c0_22 = arith.constant 0 : index
    %c0_23 = arith.constant 0 : index
    %30 = vector.load %arg2[%c0_22, %c0_23] : memref<1x576xf32, #tpu.memory_space<vmem>>, vector<1x576xf32>
    %31 = vector.broadcast %30 : vector<1x576xf32> to vector<2x576xf32>
    %32 = arith.addf %29, %31 : vector<2x576xf32>
    %cst_24 = arith.constant 0.000000e+00 : f32
    %33 = vector.broadcast %cst_24 : f32 to vector<2x576xf32>
    %34 = arith.maximumf %32, %33 : vector<2x576xf32>
    %35 = arith.maximumf %26, %34 : vector<2x576xf32>
    %c0_25 = arith.constant 0 : index
    %c0_26 = arith.constant 0 : index
    %36 = vector.load %arg3[%c0_25, %c0_26] : memref<576x576xf32, #tpu.memory_space<vmem>>, vector<576x576xf32>
    %cst_27 = arith.constant dense<0.000000e+00> : vector<2x576xf32>
    %37 = tpu.matmul %35, %36, %cst_27 {dimension_numbers = #tpu.dot_dimension_numbers<[1], [0], [0], [1], [0, 0, 1, 1], [], []>} : vector<2x576xf32>, vector<576x576xf32>, vector<2x576xf32> -> vector<2x576xf32>
    %c0_28 = arith.constant 0 : index
    %c0_29 = arith.constant 0 : index
    %38 = vector.load %arg4[%c0_28, %c0_29] : memref<1x576xf32, #tpu.memory_space<vmem>>, vector<1x576xf32>
    %39 = vector.broadcast %38 : vector<1x576xf32> to vector<2x576xf32>
    %40 = arith.addf %37, %39 : vector<2x576xf32>
    %cst_30 = arith.constant 0.000000e+00 : f32
    %41 = vector.broadcast %cst_30 : f32 to vector<2x576xf32>
    %42 = arith.maximumf %40, %41 : vector<2x576xf32>
    %c0_31 = arith.constant 0 : index
    %c0_32 = arith.constant 0 : index
    %43 = vector.load %arg5[%c0_31, %c0_32] : memref<576x576xf32, #tpu.memory_space<vmem>>, vector<576x576xf32>
    %cst_33 = arith.constant dense<0.000000e+00> : vector<2x576xf32>
    %44 = tpu.matmul %42, %43, %cst_33 {dimension_numbers = #tpu.dot_dimension_numbers<[1], [0], [0], [1], [0, 0, 1, 1], [], []>} : vector<2x576xf32>, vector<576x576xf32>, vector<2x576xf32> -> vector<2x576xf32>
    %c0_34 = arith.constant 0 : index
    %c0_35 = arith.constant 0 : index
    %45 = vector.load %arg6[%c0_34, %c0_35] : memref<1x576xf32, #tpu.memory_space<vmem>>, vector<1x576xf32>
    %46 = vector.broadcast %45 : vector<1x576xf32> to vector<2x576xf32>
    %47 = arith.addf %44, %46 : vector<2x576xf32>
    %48 = arith.addf %47, %35 : vector<2x576xf32>
    %cst_36 = arith.constant 0.000000e+00 : f32
    %49 = vector.broadcast %cst_36 : f32 to vector<2x576xf32>
    %50 = arith.maximumf %48, %49 : vector<2x576xf32>
    %c0_37 = arith.constant 0 : index
    %c0_38 = arith.constant 0 : index
    %c0_39 = arith.constant 0 : index
    %51 = vector.load %arg7[%c0_37, %c0_38, %c0_39] : memref<4x576x32xf32, #tpu.memory_space<vmem>>, vector<1x576x32xf32>
    %52 = vector.shape_cast %51 : vector<1x576x32xf32> to vector<576x32xf32>
    %cst_40 = arith.constant dense<0.000000e+00> : vector<2x32xf32>
    %53 = tpu.matmul %50, %52, %cst_40 {dimension_numbers = #tpu.dot_dimension_numbers<[1], [0], [0], [1], [0, 0, 1, 1], [], []>} : vector<2x576xf32>, vector<576x32xf32>, vector<2x32xf32> -> vector<2x32xf32>
    %c0_41 = arith.constant 0 : index
    %c0_42 = arith.constant 0 : index
    %54 = vector.load %arg8[%c0_41, %c0_42] : memref<1x32xf32, #tpu.memory_space<vmem>>, vector<1x32xf32>
    %55 = vector.broadcast %54 : vector<1x32xf32> to vector<2x32xf32>
    %56 = arith.addf %53, %55 : vector<2x32xf32>
    %cst_43 = arith.constant 0.000000e+00 : f32
    %57 = vector.broadcast %cst_43 : f32 to vector<2x32xf32>
    %58 = arith.maximumf %56, %57 : vector<2x32xf32>
    %c1_44 = arith.constant 1 : index
    %c0_45 = arith.constant 0 : index
    %c0_46 = arith.constant 0 : index
    %59 = vector.load %arg7[%c1_44, %c0_45, %c0_46] : memref<4x576x32xf32, #tpu.memory_space<vmem>>, vector<1x576x32xf32>
    %60 = vector.shape_cast %59 : vector<1x576x32xf32> to vector<576x32xf32>
    %cst_47 = arith.constant dense<0.000000e+00> : vector<2x32xf32>
    %61 = tpu.matmul %50, %60, %cst_47 {dimension_numbers = #tpu.dot_dimension_numbers<[1], [0], [0], [1], [0, 0, 1, 1], [], []>} : vector<2x576xf32>, vector<576x32xf32>, vector<2x32xf32> -> vector<2x32xf32>
    %c0_48 = arith.constant 0 : index
    %c0_49 = arith.constant 0 : index
    %62 = vector.load %arg8[%c0_48, %c0_49] : memref<1x32xf32, #tpu.memory_space<vmem>>, vector<1x32xf32>
    %63 = vector.broadcast %62 : vector<1x32xf32> to vector<2x32xf32>
    %64 = arith.addf %61, %63 : vector<2x32xf32>
    %cst_50 = arith.constant 0.000000e+00 : f32
    %65 = vector.broadcast %cst_50 : f32 to vector<2x32xf32>
    %66 = arith.maximumf %64, %65 : vector<2x32xf32>
    %67 = arith.maximumf %58, %66 : vector<2x32xf32>
    %c2_51 = arith.constant 2 : index
    %c0_52 = arith.constant 0 : index
    %c0_53 = arith.constant 0 : index
    %68 = vector.load %arg7[%c2_51, %c0_52, %c0_53] : memref<4x576x32xf32, #tpu.memory_space<vmem>>, vector<1x576x32xf32>
    %69 = vector.shape_cast %68 : vector<1x576x32xf32> to vector<576x32xf32>
    %cst_54 = arith.constant dense<0.000000e+00> : vector<2x32xf32>
    %70 = tpu.matmul %50, %69, %cst_54 {dimension_numbers = #tpu.dot_dimension_numbers<[1], [0], [0], [1], [0, 0, 1, 1], [], []>} : vector<2x576xf32>, vector<576x32xf32>, vector<2x32xf32> -> vector<2x32xf32>
    %c0_55 = arith.constant 0 : index
    %c0_56 = arith.constant 0 : index
    %71 = vector.load %arg8[%c0_55, %c0_56] : memref<1x32xf32, #tpu.memory_space<vmem>>, vector<1x32xf32>
    %72 = vector.broadcast %71 : vector<1x32xf32> to vector<2x32xf32>
    %73 = arith.addf %70, %72 : vector<2x32xf32>
    %cst_57 = arith.constant 0.000000e+00 : f32
    %74 = vector.broadcast %cst_57 : f32 to vector<2x32xf32>
    %75 = arith.maximumf %73, %74 : vector<2x32xf32>
    %76 = arith.maximumf %67, %75 : vector<2x32xf32>
    %c3_58 = arith.constant 3 : index
    %c0_59 = arith.constant 0 : index
    %c0_60 = arith.constant 0 : index
    %77 = vector.load %arg7[%c3_58, %c0_59, %c0_60] : memref<4x576x32xf32, #tpu.memory_space<vmem>>, vector<1x576x32xf32>
    %78 = vector.shape_cast %77 : vector<1x576x32xf32> to vector<576x32xf32>
    %cst_61 = arith.constant dense<0.000000e+00> : vector<2x32xf32>
    %79 = tpu.matmul %50, %78, %cst_61 {dimension_numbers = #tpu.dot_dimension_numbers<[1], [0], [0], [1], [0, 0, 1, 1], [], []>} : vector<2x576xf32>, vector<576x32xf32>, vector<2x32xf32> -> vector<2x32xf32>
    %c0_62 = arith.constant 0 : index
    %c0_63 = arith.constant 0 : index
    %80 = vector.load %arg8[%c0_62, %c0_63] : memref<1x32xf32, #tpu.memory_space<vmem>>, vector<1x32xf32>
    %81 = vector.broadcast %80 : vector<1x32xf32> to vector<2x32xf32>
    %82 = arith.addf %79, %81 : vector<2x32xf32>
    %cst_64 = arith.constant 0.000000e+00 : f32
    %83 = vector.broadcast %cst_64 : f32 to vector<2x32xf32>
    %84 = arith.maximumf %82, %83 : vector<2x32xf32>
    %85 = arith.maximumf %76, %84 : vector<2x32xf32>
    %c0_65 = arith.constant 0 : index
    %c0_66 = arith.constant 0 : index
    %86 = vector.load %arg9[%c0_65, %c0_66] : memref<32x32xf32, #tpu.memory_space<vmem>>, vector<32x32xf32>
    %cst_67 = arith.constant dense<0.000000e+00> : vector<2x32xf32>
    %87 = tpu.matmul %85, %86, %cst_67 {dimension_numbers = #tpu.dot_dimension_numbers<[1], [0], [0], [1], [0, 0, 1, 1], [], []>} : vector<2x32xf32>, vector<32x32xf32>, vector<2x32xf32> -> vector<2x32xf32>
    %c0_68 = arith.constant 0 : index
    %c0_69 = arith.constant 0 : index
    %88 = vector.load %arg10[%c0_68, %c0_69] : memref<1x32xf32, #tpu.memory_space<vmem>>, vector<1x32xf32>
    %89 = vector.broadcast %88 : vector<1x32xf32> to vector<2x32xf32>
    %90 = arith.addf %87, %89 : vector<2x32xf32>
    %cst_70 = arith.constant 0.000000e+00 : f32
    %91 = vector.broadcast %cst_70 : f32 to vector<2x32xf32>
    %92 = arith.maximumf %90, %91 : vector<2x32xf32>
    %c0_71 = arith.constant 0 : index
    %c0_72 = arith.constant 0 : index
    %93 = vector.load %arg11[%c0_71, %c0_72] : memref<32x32xf32, #tpu.memory_space<vmem>>, vector<32x32xf32>
    %cst_73 = arith.constant dense<0.000000e+00> : vector<2x32xf32>
    %94 = tpu.matmul %92, %93, %cst_73 {dimension_numbers = #tpu.dot_dimension_numbers<[1], [0], [0], [1], [0, 0, 1, 1], [], []>} : vector<2x32xf32>, vector<32x32xf32>, vector<2x32xf32> -> vector<2x32xf32>
    %c0_74 = arith.constant 0 : index
    %c0_75 = arith.constant 0 : index
    %95 = vector.load %arg12[%c0_74, %c0_75] : memref<1x32xf32, #tpu.memory_space<vmem>>, vector<1x32xf32>
    %96 = vector.broadcast %95 : vector<1x32xf32> to vector<2x32xf32>
    %97 = arith.addf %94, %96 : vector<2x32xf32>
    %98 = arith.addf %97, %85 : vector<2x32xf32>
    %cst_76 = arith.constant 0.000000e+00 : f32
    %99 = vector.broadcast %cst_76 : f32 to vector<2x32xf32>
    %100 = arith.maximumf %98, %99 : vector<2x32xf32>
    %c0_77 = arith.constant 0 : index
    %c0_78 = arith.constant 0 : index
    %101 = vector.load %arg13[%c0_77, %c0_78] : memref<32x10xf32, #tpu.memory_space<vmem>>, vector<32x10xf32>
    %cst_79 = arith.constant dense<0.000000e+00> : vector<2x10xf32>
    %102 = tpu.matmul %100, %101, %cst_79 {dimension_numbers = #tpu.dot_dimension_numbers<[1], [0], [0], [1], [0, 0, 1, 1], [], []>} : vector<2x32xf32>, vector<32x10xf32>, vector<2x10xf32> -> vector<2x10xf32>
    %c0_80 = arith.constant 0 : index
    %c0_81 = arith.constant 0 : index
    %103 = vector.load %arg14[%c0_80, %c0_81] : memref<1x10xf32, #tpu.memory_space<vmem>>, vector<1x10xf32>
    %104 = vector.broadcast %103 : vector<1x10xf32> to vector<2x10xf32>
    %105 = arith.addf %102, %104 : vector<2x10xf32>
    %c0_82 = arith.constant 0 : index
    %c0_83 = arith.constant 0 : index
    %106 = vector.load %arg15[%c0_82, %c0_83] : memref<2x10xf32, #tpu.memory_space<vmem>>, vector<2x10xf32>
    tpu.vector_store %arg15[%c0_82, %c0_83], %105 {strides = array<i32>} : memref<2x10xf32, #tpu.memory_space<vmem>>, vector<2x10xf32>,
    return
  }
}

</mosaic_0001>

<bundles_post_ra>
// kernel: tpu_custom_call.1
= control target key start
LH: loop header
LB: loop body
LE: loop exit
PB: predicated region body
PF: predicated region fallthrough
CT: control target
= control target key end

     0   :  { %s12008_s0 = inlined_call_operand.vmem [shape: f32[2,256], index: 0, kind: input, shape index: {}]   ;;  %s12009_s1 = inlined_call_operand.vmem [shape: f32[4,256,576], index: 1, kind: input, shape index: {}]   ;;  %s12010_s2 = inlined_call_operand.vmem [shape: f32[1,576], index: 2, kind: input, shape index: {}]   ;;  %s12011_s3 = inlined_call_operand.vmem [shape: f32[576,576], index: 3, kind: input, shape index: {}]   ;;  %s12012_s4 = inlined_call_operand.vmem [shape: f32[1,576], index: 4, kind: input, shape index: {}]   ;;  %s12013_s5 = inlined_call_operand.vmem [shape: f32[576,576], index: 5, kind: input, shape index: {}]   ;;  %s12014_s6 = inlined_call_operand.vmem [shape: f32[1,576], index: 6, kind: input, shape index: {}]   ;;  %s12015_s7 = inlined_call_operand.vmem [shape: f32[4,576,32], index: 7, kind: input, shape index: {}]   ;;  %s12016_s8 = inlined_call_operand.vmem [shape: f32[1,32], index: 8, kind: input, shape index: {}]   ;;  %s12017_s9 = inlined_call_operand.vmem [shape: f32[32,32], index: 9, kind: input, shape index: {}]   ;;  %s12018_s10 = inlined_call_operand.vmem [shape: f32[1,32], index: 10, kind: input, shape index: {}]   ;;  %s12019_s11 = inlined_call_operand.vmem [shape: f32[32,32], index: 11, kind: input, shape index: {}]   ;;  %s12020_s12 = inlined_call_operand.vmem [shape: f32[1,32], index: 12, kind: input, shape index: {}]   ;;  %s12021_s13 = inlined_call_operand.vmem [shape: f32[32,10], index: 13, kind: input, shape index: {}]   ;;  %s12022_s14 = inlined_call_operand.vmem [shape: f32[1,10], index: 14, kind: input, shape index: {}]   ;;  %s12023_s15 = inlined_call_operand.hbm [shape: f32[2,10], index: 15, kind: output, shape index: {}]  }
   0x1   :  { %v128_v0 = vld [vmem:[%s12009_s1 + $0x260] sm:$0xff]  ;;  %v130_v1 = vld [vmem:[%s12009_s1 + $0x270] sm:$0xff]  ;;  %v127_v2 = vld [vmem:[%s12009_s1 + $0x258] sm:$0xff] }
   0x2   :  { %250 = vmatprep.subr.mxu0 %v128_v0  ;;  %321 = vmatprep.subr.mxu1 %v130_v1  ;;  %v129_v3 = vld [vmem:[%s12009_s1 + $0x268] sm:$0xff]  ;;  %v123_v4 = vld [vmem:[%s12009_s1 + $0x238] sm:$0xff]  ;;  %v122_v6 = vld [vmem:[%s12009_s1 + $0x230] sm:$0xff] }
   0x3   :  { %v125_v5 = vld [vmem:[%s12009_s1 + $0x248] sm:$0xff]  ;;  %251 = vmatpush1.msra.mxu0 %v127_v2  ;;  %322 = vmatpush1.msra.mxu1 %v129_v3  ;;  %v124_v7 = vld [vmem:[%s12009_s1 + $0x240] sm:$0xff]  ;;  %v118_v8 = vld [vmem:[%s12009_s1 + $0x210] sm:$0xff] }
   0x4   :  { %252 = vmatprep.subr.mxu0 %v123_v4  ;;  %323 = vmatprep.subr.mxu1 %v125_v5  ;;  %v120_v9 = vld [vmem:[%s12009_s1 + $0x220] sm:$0xff]  ;;  %v117_v10 = vld [vmem:[%s12009_s1 + $0x208] sm:$0xff]  ;;  %v119_v11 = vld [vmem:[%s12009_s1 + $0x218] sm:$0xff] }
   0x5   :  { %253 = vmatpush1.msra.mxu0 %v122_v6  ;;  %324 = vmatpush1.msra.mxu1 %v124_v7  ;;  %v113_v12 = vld [vmem:[%s12009_s1 + $0x1e8] sm:$0xff]  ;;  %v115_v13 = vld [vmem:[%s12009_s1 + $0x1f8] sm:$0xff]  ;;  %v112_v14 = vld [vmem:[%s12009_s1 + $0x1e0] sm:$0xff] }
   0x6   :  { %254 = vmatprep.subr.mxu0 %v118_v8  ;;  %325 = vmatprep.subr.mxu1 %v120_v9  ;;  %v114_v15 = vld [vmem:[%s12009_s1 + $0x1f0] sm:$0xff]  ;;  %v108_v16 = vld [vmem:[%s12009_s1 + $0x1c0] sm:$0xff]  ;;  %v107_v18 = vld [vmem:[%s12009_s1 + $0x1b8] sm:$0xff] }
   0x7   :  { %255 = vmatpush1.msra.mxu0 %v117_v10  ;;  %326 = vmatpush1.msra.mxu1 %v119_v11  ;;  %v110_v17 = vld [vmem:[%s12009_s1 + $0x1d0] sm:$0xff]  ;;  %v109_v19 = vld [vmem:[%s12009_s1 + $0x1c8] sm:$0xff]  ;;  %v103_v20 = vld [vmem:[%s12009_s1 + $0x198] sm:$0xff] }
   0x8   :  { %256 = vmatprep.subr.mxu0 %v113_v12  ;;  %327 = vmatprep.subr.mxu1 %v115_v13  ;;  %v105_v21 = vld [vmem:[%s12009_s1 + $0x1a8] sm:$0xff]  ;;  %v102_v22 = vld [vmem:[%s12009_s1 + $0x190] sm:$0xff]  ;;  %v104_v23 = vld [vmem:[%s12009_s1 + $0x1a0] sm:$0xff] }
   0x9   :  { %257 = vmatpush1.msra.mxu0 %v112_v14  ;;  %328 = vmatpush1.msra.mxu1 %v114_v15  ;;  %v98_v24 = vld [vmem:[%s12009_s1 + $0x170] sm:$0xff]  ;;  %v100_v25 = vld [vmem:[%s12009_s1 + $0x180] sm:$0xff]  ;;  %v97_v26 = vld [vmem:[%s12009_s1 + $0x168] sm:$0xff] }
   0xa   :  { %258 = vmatprep.subr.mxu0 %v108_v16  ;;  %329 = vmatprep.subr.mxu1 %v110_v17  ;;  %v99_v27 = vld [vmem:[%s12009_s1 + $0x178] sm:$0xff]  ;;  %v93_v28 = vld [vmem:[%s12009_s1 + $0x148] sm:$0xff]  ;;  %v92_v30 = vld [vmem:[%s12009_s1 + $0x140] sm:$0xff] }
   0xb   :  { %259 = vmatpush1.msra.mxu0 %v107_v18  ;;  %330 = vmatpush1.msra.mxu1 %v109_v19  ;;  %v95_v29 = vld [vmem:[%s12009_s1 + $0x158] sm:$0xff]  ;;  %v94_v31 = vld [vmem:[%s12009_s1 + $0x150] sm:$0xff]  ;;  %v88_v32 = vld [vmem:[%s12009_s1 + $0x120] sm:$0xff] }
   0xc   :  { %260 = vmatprep.subr.mxu0 %v103_v20  ;;  %331 = vmatprep.subr.mxu1 %v105_v21  ;;  %v90_v33 = vld [vmem:[%s12009_s1 + $0x130] sm:$0xff]  ;;  %v87_v34 = vld [vmem:[%s12009_s1 + $0x118] sm:$0xff]  ;;  %v89_v35 = vld [vmem:[%s12009_s1 + $0x128] sm:$0xff] }
   0xd   :  { %261 = vmatpush1.msra.mxu0 %v102_v22  ;;  %332 = vmatpush1.msra.mxu1 %v104_v23  ;;  %v83_v36 = vld [vmem:[%s12009_s1 + $0xf8] sm:$0xff]  ;;  %v85_v37 = vld [vmem:[%s12009_s1 + $0x108] sm:$0xff]  ;;  %v82_v38 = vld [vmem:[%s12009_s1 + $0xf0] sm:$0xff] }
   0xe   :  { %262 = vmatprep.subr.mxu0 %v98_v24  ;;  %333 = vmatprep.subr.mxu1 %v100_v25  ;;  %v84_v39 = vld [vmem:[%s12009_s1 + $0x100] sm:$0xff]  ;;  %v78_v40 = vld [vmem:[%s12009_s1 + $0xd0] sm:$0xff]  ;;  %v77_v42 = vld [vmem:[%s12009_s1 + $0xc8] sm:$0xff] }
   0xf   :  { %263 = vmatpush1.msra.mxu0 %v97_v26  ;;  %334 = vmatpush1.msra.mxu1 %v99_v27  ;;  %v80_v41 = vld [vmem:[%s12009_s1 + $0xe0] sm:$0xff]  ;;  %v79_v43 = vld [vmem:[%s12009_s1 + $0xd8] sm:$0xff]  ;;  %v73_v44 = vld [vmem:[%s12009_s1 + $0xa8] sm:$0xff] }
  0x10   :  { %264 = vmatprep.subr.mxu0 %v93_v28  ;;  %335 = vmatprep.subr.mxu1 %v95_v29  ;;  %v75_v45 = vld [vmem:[%s12009_s1 + $0xb8] sm:$0xff]  ;;  %v72_v46 = vld [vmem:[%s12009_s1 + $0xa0] sm:$0xff]  ;;  %v74_v47 = vld [vmem:[%s12009_s1 + $0xb0] sm:$0xff] }
  0x11   :  { %265 = vmatpush1.msra.mxu0 %v92_v30  ;;  %336 = vmatpush1.msra.mxu1 %v94_v31  ;;  %v68_v48 = vld [vmem:[%s12009_s1 + $0x80] sm:$0xff]  ;;  %v70_v49 = vld [vmem:[%s12009_s1 + $0x90] sm:$0xff]  ;;  %v67_v50 = vld [vmem:[%s12009_s1 + $0x78] sm:$0xff] }
  0x12   :  { %266 = vmatprep.subr.mxu0 %v88_v32  ;;  %337 = vmatprep.subr.mxu1 %v90_v33  ;;  %v69_v51 = vld [vmem:[%s12009_s1 + $0x88] sm:$0xff]  ;;  %v63_v52 = vld [vmem:[%s12009_s1 + $0x58] sm:$0xff]  ;;  %v62_v54 = vld [vmem:[%s12009_s1 + $0x50] sm:$0xff] }
  0x13   :  { %267 = vmatpush1.msra.mxu0 %v87_v34  ;;  %338 = vmatpush1.msra.mxu1 %v89_v35  ;;  %v65_v53 = vld [vmem:[%s12009_s1 + $0x68] sm:$0xff]  ;;  %v64_v55 = vld [vmem:[%s12009_s1 + $0x60] sm:$0xff]  ;;  %v58_v56 = vld [vmem:[%s12009_s1 + $0x30] sm:$0xff] }
  0x14   :  { %268 = vmatprep.subr.mxu0 %v83_v36  ;;  %339 = vmatprep.subr.mxu1 %v85_v37  ;;  %v60_v57 = vld [vmem:[%s12009_s1 + $0x40] sm:$0xff]  ;;  %v57_v58 = vld [vmem:[%s12009_s1 + $0x28] sm:$0xff]  ;;  %v59_v59 = vld [vmem:[%s12009_s1 + $0x38] sm:$0xff] }
  0x15   :  { %269 = vmatpush1.msra.mxu0 %v82_v38  ;;  %340 = vmatpush1.msra.mxu1 %v84_v39  ;;  %v53_v60 = vld [vmem:[%s12009_s1 + $0x8] sm:$0xff]  ;;  %v55_v61 = vld [vmem:[%s12009_s1 + $0x18] sm:$0xff]  ;;  %v52_v62 = vld [vmem:[%s12009_s1] sm:$0xff] }
  0x16   :  { %270 = vmatprep.subr.mxu0 %v78_v40  ;;  %341 = vmatprep.subr.mxu1 %v80_v41  ;;  %v54_v63 = vld [vmem:[%s12009_s1 + $0x10] sm:$0xff]  ;;  %v208_v0 = vld [vmem:[%s12009_s1 + $0x4e0] sm:$0xff]  ;;  %v207_v2 = vld [vmem:[%s12009_s1 + $0x4d8] sm:$0xff] }
  0x17   :  { %271 = vmatpush1.msra.mxu0 %v77_v42  ;;  %342 = vmatpush1.msra.mxu1 %v79_v43  ;;  %v210_v1 = vld [vmem:[%s12009_s1 + $0x4f0] sm:$0xff]  ;;  %v209_v3 = vld [vmem:[%s12009_s1 + $0x4e8] sm:$0xff]  ;;  %v203_v4 = vld [vmem:[%s12009_s1 + $0x4b8] sm:$0xff] }
  0x18   :  { %272 = vmatprep.subr.mxu0 %v73_v44  ;;  %343 = vmatprep.subr.mxu1 %v75_v45  ;;  %v205_v5 = vld [vmem:[%s12009_s1 + $0x4c8] sm:$0xff]  ;;  %v202_v6 = vld [vmem:[%s12009_s1 + $0x4b0] sm:$0xff]  ;;  %v204_v7 = vld [vmem:[%s12009_s1 + $0x4c0] sm:$0xff] }
  0x19   :  { %273 = vmatpush1.msra.mxu0 %v72_v46  ;;  %344 = vmatpush1.msra.mxu1 %v74_v47  ;;  %v198_v8 = vld [vmem:[%s12009_s1 + $0x490] sm:$0xff]  ;;  %v200_v9 = vld [vmem:[%s12009_s1 + $0x4a0] sm:$0xff]  ;;  %v197_v10 = vld [vmem:[%s12009_s1 + $0x488] sm:$0xff] }
  0x1a   :  { %274 = vmatprep.subr.mxu0 %v68_v48  ;;  %345 = vmatprep.subr.mxu1 %v70_v49  ;;  %v199_v11 = vld [vmem:[%s12009_s1 + $0x498] sm:$0xff]  ;;  %v193_v12 = vld [vmem:[%s12009_s1 + $0x468] sm:$0xff]  ;;  %v192_v14 = vld [vmem:[%s12009_s1 + $0x460] sm:$0xff] }
  0x1b   :  { %275 = vmatpush1.msra.mxu0 %v67_v50  ;;  %346 = vmatpush1.msra.mxu1 %v69_v51  ;;  %v195_v13 = vld [vmem:[%s12009_s1 + $0x478] sm:$0xff]  ;;  %v194_v15 = vld [vmem:[%s12009_s1 + $0x470] sm:$0xff]  ;;  %v188_v16 = vld [vmem:[%s12009_s1 + $0x440] sm:$0xff] }
  0x1c   :  { %276 = vmatprep.subr.mxu0 %v63_v52  ;;  %347 = vmatprep.subr.mxu1 %v65_v53  ;;  %v190_v17 = vld [vmem:[%s12009_s1 + $0x450] sm:$0xff]  ;;  %v187_v18 = vld [vmem:[%s12009_s1 + $0x438] sm:$0xff]  ;;  %v189_v19 = vld [vmem:[%s12009_s1 + $0x448] sm:$0xff] }
  0x1d   :  { %277 = vmatpush1.msra.mxu0 %v62_v54  ;;  %348 = vmatpush1.msra.mxu1 %v64_v55  ;;  %v183_v20 = vld [vmem:[%s12009_s1 + $0x418] sm:$0xff]  ;;  %v185_v21 = vld [vmem:[%s12009_s1 + $0x428] sm:$0xff]  ;;  %v182_v22 = vld [vmem:[%s12009_s1 + $0x410] sm:$0xff] }
  0x1e   :  { %278 = vmatprep.subr.mxu0 %v58_v56  ;;  %349 = vmatprep.subr.mxu1 %v60_v57  ;;  %v184_v23 = vld [vmem:[%s12009_s1 + $0x420] sm:$0xff]  ;;  %v178_v24 = vld [vmem:[%s12009_s1 + $0x3f0] sm:$0xff]  ;;  %v177_v26 = vld [vmem:[%s12009_s1 + $0x3e8] sm:$0xff] }
  0x1f   :  { %279 = vmatpush1.msra.mxu0 %v57_v58  ;;  %350 = vmatpush1.msra.mxu1 %v59_v59  ;;  %v180_v25 = vld [vmem:[%s12009_s1 + $0x400] sm:$0xff]  ;;  %v179_v27 = vld [vmem:[%s12009_s1 + $0x3f8] sm:$0xff]  ;;  %v173_v28 = vld [vmem:[%s12009_s1 + $0x3c8] sm:$0xff] }
  0x20   :  { %280 = vmatprep.subr.mxu0 %v53_v60  ;;  %351 = vmatprep.subr.mxu1 %v55_v61  ;;  %v175_v29 = vld [vmem:[%s12009_s1 + $0x3d8] sm:$0xff]  ;;  %v172_v30 = vld [vmem:[%s12009_s1 + $0x3c0] sm:$0xff]  ;;  %v174_v31 = vld [vmem:[%s12009_s1 + $0x3d0] sm:$0xff] }
  0x21   :  { %281 = vmatpush1.msra.mxu0 %v52_v62  ;;  %352 = vmatpush1.msra.mxu1 %v54_v63  ;;  %v168_v32 = vld [vmem:[%s12009_s1 + $0x3a0] sm:$0xff]  ;;  %v170_v33 = vld [vmem:[%s12009_s1 + $0x3b0] sm:$0xff]  ;;  %v167_v34 = vld [vmem:[%s12009_s1 + $0x398] sm:$0xff] }
  0x22   :  { %282 = vmatprep.subr.mxu0 %v208_v0  ;;  %353 = vmatprep.subr.mxu1 %v210_v1  ;;  %v169_v35 = vld [vmem:[%s12009_s1 + $0x3a8] sm:$0xff]  ;;  %v163_v36 = vld [vmem:[%s12009_s1 + $0x378] sm:$0xff]  ;;  %v162_v38 = vld [vmem:[%s12009_s1 + $0x370] sm:$0xff] }
  0x23   :  { %283 = vmatpush2.msra.mxu0 %v207_v2  ;;  %354 = vmatpush2.msra.mxu1 %v209_v3  ;;  %v165_v37 = vld [vmem:[%s12009_s1 + $0x388] sm:$0xff]  ;;  %v164_v39 = vld [vmem:[%s12009_s1 + $0x380] sm:$0xff]  ;;  %v158_v40 = vld [vmem:[%s12009_s1 + $0x350] sm:$0xff] }
  0x24   :  { %284 = vmatprep.subr.mxu0 %v203_v4  ;;  %355 = vmatprep.subr.mxu1 %v205_v5  ;;  %v160_v41 = vld [vmem:[%s12009_s1 + $0x360] sm:$0xff]  ;;  %v157_v42 = vld [vmem:[%s12009_s1 + $0x348] sm:$0xff]  ;;  %v159_v43 = vld [vmem:[%s12009_s1 + $0x358] sm:$0xff] }
  0x25   :  { %285 = vmatpush2.msra.mxu0 %v202_v6  ;;  %356 = vmatpush2.msra.mxu1 %v204_v7  ;;  %v153_v44 = vld [vmem:[%s12009_s1 + $0x328] sm:$0xff]  ;;  %v155_v45 = vld [vmem:[%s12009_s1 + $0x338] sm:$0xff]  ;;  %v152_v46 = vld [vmem:[%s12009_s1 + $0x320] sm:$0xff] }
  0x26   :  { %286 = vmatprep.subr.mxu0 %v198_v8  ;;  %357 = vmatprep.subr.mxu1 %v200_v9  ;;  %v154_v47 = vld [vmem:[%s12009_s1 + $0x330] sm:$0xff]  ;;  %v148_v48 = vld [vmem:[%s12009_s1 + $0x300] sm:$0xff]  ;;  %v147_v50 = vld [vmem:[%s12009_s1 + $0x2f8] sm:$0xff] }
  0x27   :  { %287 = vmatpush2.msra.mxu0 %v197_v10  ;;  %358 = vmatpush2.msra.mxu1 %v199_v11  ;;  %v150_v49 = vld [vmem:[%s12009_s1 + $0x310] sm:$0xff]  ;;  %v149_v51 = vld [vmem:[%s12009_s1 + $0x308] sm:$0xff]  ;;  %v143_v52 = vld [vmem:[%s12009_s1 + $0x2d8] sm:$0xff] }
  0x28   :  { %288 = vmatprep.subr.mxu0 %v193_v12  ;;  %359 = vmatprep.subr.mxu1 %v195_v13  ;;  %v145_v53 = vld [vmem:[%s12009_s1 + $0x2e8] sm:$0xff]  ;;  %v142_v54 = vld [vmem:[%s12009_s1 + $0x2d0] sm:$0xff]  ;;  %v144_v55 = vld [vmem:[%s12009_s1 + $0x2e0] sm:$0xff] }
  0x29   :  { %289 = vmatpush2.msra.mxu0 %v192_v14  ;;  %360 = vmatpush2.msra.mxu1 %v194_v15  ;;  %v7066_v56 = vld.sshfl [vmem:[%s12008_s0] sm:$0x33 pattern:$0x76325410]  ;;  %v138_v57 = vld [vmem:[%s12009_s1 + $0x2b0] sm:$0xff]  ;;  %v137_v59 = vld [vmem:[%s12009_s1 + $0x2a8] sm:$0xff] }
  0x2a   :  { %290 = vmatprep.subr.mxu0 %v188_v16  ;;  %361 = vmatprep.subr.mxu1 %v190_v17  ;;  %v140_v58 = vld [vmem:[%s12009_s1 + $0x2c0] sm:$0xff]  ;;  %v139_v60 = vld [vmem:[%s12009_s1 + $0x2b8] sm:$0xff]  ;;  %v133_v61 = vld [vmem:[%s12009_s1 + $0x288] sm:$0xff]  ;;  %v7088_v63 = vcombine.high %v7066_v56, %v7066_v56 }
  0x2b   :  { %291 = vmatpush2.msra.mxu0 %v187_v18  ;;  %362 = vmatpush2.msra.mxu1 %v189_v19  ;;  %v135_v62 = vld [vmem:[%s12009_s1 + $0x298] sm:$0xff]  ;;  %v132_v0 = vld [vmem:[%s12009_s1 + $0x280] sm:$0xff]  ;;  %v134_v1 = vld [vmem:[%s12009_s1 + $0x290] sm:$0xff] }
  0x2c   :  { %292 = vmatprep.subr.mxu0 %v183_v20  ;;  %363 = vmatprep.subr.mxu1 %v185_v21  ;;  %v211_v2 = vld [vmem:[%s12009_s1 + $0x4f8] sm:$0xff]  ;;  %v5181_v3 = vld [vmem:[%s12009_s1 + $0x760] sm:$0xff]  ;;  %v206_v6 = vld [vmem:[%s12009_s1 + $0x4d0] sm:$0xff] }
  0x2d   :  { %293 = vmatpush2.msra.mxu0 %v182_v22  ;;  %364 = vmatpush2.msra.mxu1 %v184_v23  ;;  %v131_v4 = vld [vmem:[%s12009_s1 + $0x278] sm:$0xff]  ;;  %v126_v8 = vld [vmem:[%s12009_s1 + $0x250] sm:$0xff]  ;;  %v201_v10 = vld [vmem:[%s12009_s1 + $0x4a8] sm:$0xff] }
  0x2e   :  { %294 = vmatprep.subr.mxu0 %v178_v24  ;;  %365 = vmatprep.subr.mxu1 %v180_v25  ;;  %v5180_v5 = vld [vmem:[%s12009_s1 + $0x758] sm:$0xff]  ;;  %v5175_v9 = vld [vmem:[%s12009_s1 + $0x730] sm:$0xff]  ;;  %v121_v12 = vld [vmem:[%s12009_s1 + $0x228] sm:$0xff] }
  0x2f   :  { %295 = vmatpush2.msra.mxu0 %v177_v26  ;;  %366 = vmatpush2.msra.mxu1 %v179_v27  ;;  %v5176_v7 = vld [vmem:[%s12009_s1 + $0x738] sm:$0xff]  ;;  %v5171_v11 = vld [vmem:[%s12009_s1 + $0x710] sm:$0xff]  ;;  %v5170_v13 = vld [vmem:[%s12009_s1 + $0x708] sm:$0xff] }
  0x30   :  { %296 = vmatprep.subr.mxu0 %v173_v28  ;;  %367 = vmatprep.subr.mxu1 %v175_v29  ;;  %v196_v14 = vld [vmem:[%s12009_s1 + $0x480] sm:$0xff]  ;;  %v5166_v15 = vld [vmem:[%s12009_s1 + $0x6e8] sm:$0xff]  ;;  %v191_v18 = vld [vmem:[%s12009_s1 + $0x458] sm:$0xff] }
  0x31   :  { %297 = vmatpush2.msra.mxu0 %v172_v30  ;;  %368 = vmatpush2.msra.mxu1 %v174_v31  ;;  %v116_v16 = vld [vmem:[%s12009_s1 + $0x200] sm:$0xff]  ;;  %v111_v20 = vld [vmem:[%s12009_s1 + $0x1d8] sm:$0xff]  ;;  %v186_v22 = vld [vmem:[%s12009_s1 + $0x430] sm:$0xff] }
  0x32   :  { %298 = vmatprep.subr.mxu0 %v168_v32  ;;  %369 = vmatprep.subr.mxu1 %v170_v33  ;;  %v5165_v17 = vld [vmem:[%s12009_s1 + $0x6e0] sm:$0xff]  ;;  %v5160_v21 = vld [vmem:[%s12009_s1 + $0x6b8] sm:$0xff]  ;;  %v106_v24 = vld [vmem:[%s12009_s1 + $0x1b0] sm:$0xff] }
  0x33   :  { %299 = vmatpush2.msra.mxu0 %v167_v34  ;;  %370 = vmatpush2.msra.mxu1 %v169_v35  ;;  %v5161_v19 = vld [vmem:[%s12009_s1 + $0x6c0] sm:$0xff]  ;;  %v5156_v23 = vld [vmem:[%s12009_s1 + $0x698] sm:$0xff]  ;;  %v5155_v25 = vld [vmem:[%s12009_s1 + $0x690] sm:$0xff] }
  0x34   :  { %300 = vmatprep.subr.mxu0 %v163_v36  ;;  %371 = vmatprep.subr.mxu1 %v165_v37  ;;  %v181_v26 = vld [vmem:[%s12009_s1 + $0x408] sm:$0xff]  ;;  %v5151_v27 = vld [vmem:[%s12009_s1 + $0x670] sm:$0xff]  ;;  %v176_v30 = vld [vmem:[%s12009_s1 + $0x3e0] sm:$0xff] }
  0x35   :  { %301 = vmatpush2.msra.mxu0 %v162_v38  ;;  %372 = vmatpush2.msra.mxu1 %v164_v39  ;;  %v101_v28 = vld [vmem:[%s12009_s1 + $0x188] sm:$0xff]  ;;  %v96_v32 = vld [vmem:[%s12009_s1 + $0x160] sm:$0xff]  ;;  %v171_v34 = vld [vmem:[%s12009_s1 + $0x3b8] sm:$0xff] }
  0x36   :  { %302 = vmatprep.subr.mxu0 %v158_v40  ;;  %373 = vmatprep.subr.mxu1 %v160_v41  ;;  %v5150_v29 = vld [vmem:[%s12009_s1 + $0x668] sm:$0xff]  ;;  %v5145_v33 = vld [vmem:[%s12009_s1 + $0x640] sm:$0xff]  ;;  %v91_v36 = vld [vmem:[%s12009_s1 + $0x138] sm:$0xff] }
  0x37   :  { %303 = vmatpush2.msra.mxu0 %v157_v42  ;;  %374 = vmatpush2.msra.mxu1 %v159_v43  ;;  %v5146_v31 = vld [vmem:[%s12009_s1 + $0x648] sm:$0xff]  ;;  %v5141_v35 = vld [vmem:[%s12009_s1 + $0x620] sm:$0xff]  ;;  %v5140_v37 = vld [vmem:[%s12009_s1 + $0x618] sm:$0xff] }
  0x38   :  { %304 = vmatprep.subr.mxu0 %v153_v44  ;;  %375 = vmatprep.subr.mxu1 %v155_v45  ;;  %v166_v38 = vld [vmem:[%s12009_s1 + $0x390] sm:$0xff]  ;;  %v5136_v39 = vld [vmem:[%s12009_s1 + $0x5f8] sm:$0xff]  ;;  %v161_v42 = vld [vmem:[%s12009_s1 + $0x368] sm:$0xff] }
  0x39   :  { %305 = vmatpush2.msra.mxu0 %v152_v46  ;;  %376 = vmatpush2.msra.mxu1 %v154_v47  ;;  %v86_v40 = vld [vmem:[%s12009_s1 + $0x110] sm:$0xff]  ;;  %v81_v44 = vld [vmem:[%s12009_s1 + $0xe8] sm:$0xff]  ;;  %v156_v46 = vld [vmem:[%s12009_s1 + $0x340] sm:$0xff] }
  0x3a   :  { %306 = vmatprep.subr.mxu0 %v148_v48  ;;  %377 = vmatprep.subr.mxu1 %v150_v49  ;;  %v5135_v41 = vld [vmem:[%s12009_s1 + $0x5f0] sm:$0xff]  ;;  %v5130_v45 = vld [vmem:[%s12009_s1 + $0x5c8] sm:$0xff]  ;;  %v76_v48 = vld [vmem:[%s12009_s1 + $0xc0] sm:$0xff] }
  0x3b   :  { %307 = vmatpush2.msra.mxu0 %v147_v50  ;;  %378 = vmatpush2.msra.mxu1 %v149_v51  ;;  %v5131_v43 = vld [vmem:[%s12009_s1 + $0x5d0] sm:$0xff]  ;;  %v5126_v47 = vld [vmem:[%s12009_s1 + $0x5a8] sm:$0xff]  ;;  %v5125_v49 = vld [vmem:[%s12009_s1 + $0x5a0] sm:$0xff] }
  0x3c   :  { %308 = vmatprep.subr.mxu0 %v143_v52  ;;  %379 = vmatprep.subr.mxu1 %v145_v53  ;;  %v151_v50 = vld [vmem:[%s12009_s1 + $0x318] sm:$0xff]  ;;  %v5121_v51 = vld [vmem:[%s12009_s1 + $0x580] sm:$0xff] }
  0x3d   :  { %309 = vmatpush2.msra.mxu0 %v142_v54  ;;  %380 = vmatpush2.msra.mxu1 %v144_v55  ;;  %v71_v52 = vld [vmem:[%s12009_s1 + $0x98] sm:$0xff]  ;;  %v146_v54 = vld [vmem:[%s12009_s1 + $0x2f0] sm:$0xff] }
  0x3e   :  { %310 = vmatprep.subr.mxu0 %v138_v57  ;;  %381 = vmatprep.subr.mxu1 %v140_v58  ;;  %v5120_v53 = vld [vmem:[%s12009_s1 + $0x578] sm:$0xff]  ;;  %v66_v57 = vld [vmem:[%s12009_s1 + $0x70] sm:$0xff] }
  0x3f   :  { %311 = vmatpush2.msra.mxu0 %v137_v59  ;;  %382 = vmatpush2.msra.mxu1 %v139_v60  ;;  %v5116_v55 = vld [vmem:[%s12009_s1 + $0x558] sm:$0xff]  ;;  %v5115_v58 = vld [vmem:[%s12009_s1 + $0x550] sm:$0xff]  ;;  %v141_v59 = vld [vmem:[%s12009_s1 + $0x2c8] sm:$0xff] }
  0x40   :  { %312 = vmatprep.subr.mxu0 %v133_v61  ;;  %383 = vmatprep.subr.mxu1 %v135_v62  ;;  %v5111_v60 = vld [vmem:[%s12009_s1 + $0x530] sm:$0xff]  ;;  %v61_v61 = vld [vmem:[%s12009_s1 + $0x48] sm:$0xff] }
  0x41   :  { %313 = vmatpush2.msra.mxu0 %v132_v0  ;;  %314 = vmatprep.mubr.f32.mxu0 %v7088_v63  ;;  %v5110_v62 = vld [vmem:[%s12009_s1 + $0x528] sm:$0xff]  ;;  %v136_v0 = vld [vmem:[%s12009_s1 + $0x2a0] sm:$0xff] }
  0x42   :  { %384 = vmatpush2.msra.mxu1 %v134_v1  ;;  %315 = vmatmul.mubr.f32.vlgmr.msra.gmra.mxu0 %v7066_v56  ;;  %v5106_v1 = vld [vmem:[%s12009_s1 + $0x508] sm:$0xff] }
  0x43   :  { %385 = vmatprep.mubr.f32.mxu1 %v7088_v63  ;;  %5818 = vmatprep.subr.mxu0 %v211_v2  ;;  %v56_v2 = vld [vmem:[%s12009_s1 + $0x20] sm:$0xff] }
  0x44   :  { %628 = vmatprep.subr.mxu1 %v5181_v3  ;;  %386 = vmatmul.mubr.f32.vlgmr.msra.gmra.mxu1 %v7066_v56  ;;  %v5105_v3 = vld [vmem:[%s12009_s1 + $0x500] sm:$0xff] }
  0x45   :  { %5819 = vmatpush3.msra.mxu0 %v131_v4  ;;  %629 = vmatpush1.msra.mxu1 %v5180_v5  ;;  %v5261_v4 = vld [vmem:[%s12009_s1 + $0x9e0] sm:$0xff]  ;;  %v5183_v5 = vld [vmem:[%s12009_s1 + $0x770] sm:$0xff] }
  0x46   :  { %5820 = vmatprep.subr.mxu0 %v206_v6  ;;  %630 = vmatprep.subr.mxu1 %v5176_v7  ;;  %v5260_v6 = vld [vmem:[%s12009_s1 + $0x9d8] sm:$0xff]  ;;  %v5182_v7 = vld [vmem:[%s12009_s1 + $0x768] sm:$0xff] }
  0x47   :  { %5821 = vmatpush3.msra.mxu0 %v126_v8  ;;  %631 = vmatpush1.msra.mxu1 %v5175_v9  ;;  %v5256_v8 = vld [vmem:[%s12009_s1 + $0x9b8] sm:$0xff]  ;;  %v5178_v9 = vld [vmem:[%s12009_s1 + $0x748] sm:$0xff] }
  0x48   :  { %5822 = vmatprep.subr.mxu0 %v201_v10  ;;  %632 = vmatprep.subr.mxu1 %v5171_v11  ;;  %v5255_v10 = vld [vmem:[%s12009_s1 + $0x9b0] sm:$0xff]  ;;  %v5177_v11 = vld [vmem:[%s12009_s1 + $0x740] sm:$0xff] }
  0x49   :  { %5823 = vmatpush3.msra.mxu0 %v121_v12  ;;  %633 = vmatpush1.msra.mxu1 %v5170_v13  ;;  %v5251_v12 = vld [vmem:[%s12009_s1 + $0x990] sm:$0xff]  ;;  %v5173_v13 = vld [vmem:[%s12009_s1 + $0x720] sm:$0xff] }
  0x4a   :  { %5824 = vmatprep.subr.mxu0 %v196_v14  ;;  %634 = vmatprep.subr.mxu1 %v5166_v15  ;;  %v5250_v14 = vld [vmem:[%s12009_s1 + $0x988] sm:$0xff]  ;;  %v5172_v15 = vld [vmem:[%s12009_s1 + $0x718] sm:$0xff] }
  0x4b   :  { %5825 = vmatpush3.msra.mxu0 %v116_v16  ;;  %635 = vmatpush1.msra.mxu1 %v5165_v17  ;;  %v5246_v16 = vld [vmem:[%s12009_s1 + $0x968] sm:$0xff]  ;;  %v5168_v17 = vld [vmem:[%s12009_s1 + $0x6f8] sm:$0xff] }
  0x4c   :  { %5826 = vmatprep.subr.mxu0 %v191_v18  ;;  %636 = vmatprep.subr.mxu1 %v5161_v19  ;;  %v5245_v18 = vld [vmem:[%s12009_s1 + $0x960] sm:$0xff]  ;;  %v5167_v19 = vld [vmem:[%s12009_s1 + $0x6f0] sm:$0xff] }
  0x4d   :  { %5827 = vmatpush3.msra.mxu0 %v111_v20  ;;  %637 = vmatpush1.msra.mxu1 %v5160_v21  ;;  %v5241_v20 = vld [vmem:[%s12009_s1 + $0x940] sm:$0xff]  ;;  %v5163_v21 = vld [vmem:[%s12009_s1 + $0x6d0] sm:$0xff] }
  0x4e   :  { %5828 = vmatprep.subr.mxu0 %v186_v22  ;;  %638 = vmatprep.subr.mxu1 %v5156_v23  ;;  %v5240_v22 = vld [vmem:[%s12009_s1 + $0x938] sm:$0xff]  ;;  %v5162_v23 = vld [vmem:[%s12009_s1 + $0x6c8] sm:$0xff] }
  0x4f   :  { %5829 = vmatpush3.msra.mxu0 %v106_v24  ;;  %639 = vmatpush1.msra.mxu1 %v5155_v25  ;;  %v5236_v24 = vld [vmem:[%s12009_s1 + $0x918] sm:$0xff]  ;;  %v5158_v25 = vld [vmem:[%s12009_s1 + $0x6a8] sm:$0xff] }
  0x50   :  { %5830 = vmatprep.subr.mxu0 %v181_v26  ;;  %640 = vmatprep.subr.mxu1 %v5151_v27  ;;  %v5235_v26 = vld [vmem:[%s12009_s1 + $0x910] sm:$0xff]  ;;  %v5157_v27 = vld [vmem:[%s12009_s1 + $0x6a0] sm:$0xff] }
  0x51   :  { %5831 = vmatpush3.msra.mxu0 %v101_v28  ;;  %641 = vmatpush1.msra.mxu1 %v5150_v29  ;;  %v5231_v28 = vld [vmem:[%s12009_s1 + $0x8f0] sm:$0xff]  ;;  %v5153_v29 = vld [vmem:[%s12009_s1 + $0x680] sm:$0xff] }
  0x52   :  { %5832 = vmatprep.subr.mxu0 %v176_v30  ;;  %642 = vmatprep.subr.mxu1 %v5146_v31  ;;  %v5230_v30 = vld [vmem:[%s12009_s1 + $0x8e8] sm:$0xff]  ;;  %v5152_v31 = vld [vmem:[%s12009_s1 + $0x678] sm:$0xff] }
  0x53   :  { %5833 = vmatpush3.msra.mxu0 %v96_v32  ;;  %643 = vmatpush1.msra.mxu1 %v5145_v33  ;;  %v5226_v32 = vld [vmem:[%s12009_s1 + $0x8c8] sm:$0xff]  ;;  %v5148_v33 = vld [vmem:[%s12009_s1 + $0x658] sm:$0xff] }
  0x54   :  { %5834 = vmatprep.subr.mxu0 %v171_v34  ;;  %644 = vmatprep.subr.mxu1 %v5141_v35  ;;  %v5225_v34 = vld [vmem:[%s12009_s1 + $0x8c0] sm:$0xff]  ;;  %v5147_v35 = vld [vmem:[%s12009_s1 + $0x650] sm:$0xff] }
  0x55   :  { %5835 = vmatpush3.msra.mxu0 %v91_v36  ;;  %645 = vmatpush1.msra.mxu1 %v5140_v37  ;;  %v5221_v36 = vld [vmem:[%s12009_s1 + $0x8a0] sm:$0xff]  ;;  %v5143_v37 = vld [vmem:[%s12009_s1 + $0x630] sm:$0xff] }
  0x56   :  { %5836 = vmatprep.subr.mxu0 %v166_v38  ;;  %646 = vmatprep.subr.mxu1 %v5136_v39  ;;  %v5220_v38 = vld [vmem:[%s12009_s1 + $0x898] sm:$0xff]  ;;  %v5142_v39 = vld [vmem:[%s12009_s1 + $0x628] sm:$0xff] }
  0x57   :  { %5837 = vmatpush3.msra.mxu0 %v86_v40  ;;  %647 = vmatpush1.msra.mxu1 %v5135_v41  ;;  %v5216_v40 = vld [vmem:[%s12009_s1 + $0x878] sm:$0xff]  ;;  %v5138_v41 = vld [vmem:[%s12009_s1 + $0x608] sm:$0xff] }
  0x58   :  { %5838 = vmatprep.subr.mxu0 %v161_v42  ;;  %648 = vmatprep.subr.mxu1 %v5131_v43  ;;  %v5215_v42 = vld [vmem:[%s12009_s1 + $0x870] sm:$0xff]  ;;  %v5137_v43 = vld [vmem:[%s12009_s1 + $0x600] sm:$0xff] }
  0x59   :  { %5839 = vmatpush3.msra.mxu0 %v81_v44  ;;  %649 = vmatpush1.msra.mxu1 %v5130_v45  ;;  %v5211_v44 = vld [vmem:[%s12009_s1 + $0x850] sm:$0xff]  ;;  %v5133_v45 = vld [vmem:[%s12009_s1 + $0x5e0] sm:$0xff] }
  0x5a   :  { %5840 = vmatprep.subr.mxu0 %v156_v46  ;;  %650 = vmatprep.subr.mxu1 %v5126_v47  ;;  %v5210_v46 = vld [vmem:[%s12009_s1 + $0x848] sm:$0xff]  ;;  %v5132_v47 = vld [vmem:[%s12009_s1 + $0x5d8] sm:$0xff] }
  0x5b   :  { %5841 = vmatpush3.msra.mxu0 %v76_v48  ;;  %651 = vmatpush1.msra.mxu1 %v5125_v49  ;;  %v5206_v48 = vld [vmem:[%s12009_s1 + $0x828] sm:$0xff]  ;;  %v5128_v49 = vld [vmem:[%s12009_s1 + $0x5b8] sm:$0xff] }
  0x5c   :  { %5842 = vmatprep.subr.mxu0 %v151_v50  ;;  %652 = vmatprep.subr.mxu1 %v5121_v51  ;;  %v5205_v50 = vld [vmem:[%s12009_s1 + $0x820] sm:$0xff]  ;;  %v5127_v51 = vld [vmem:[%s12009_s1 + $0x5b0] sm:$0xff] }
  0x5d   :  { %5843 = vmatpush3.msra.mxu0 %v71_v52  ;;  %653 = vmatpush1.msra.mxu1 %v5120_v53  ;;  %v5201_v52 = vld [vmem:[%s12009_s1 + $0x800] sm:$0xff]  ;;  %v5123_v53 = vld [vmem:[%s12009_s1 + $0x590] sm:$0xff] }
  0x5e   :  { %5844 = vmatprep.subr.mxu0 %v146_v54  ;;  %654 = vmatprep.subr.mxu1 %v5116_v55  ;;  %v5200_v54 = vld [vmem:[%s12009_s1 + $0x7f8] sm:$0xff]  ;;  %v5122_v55 = vld [vmem:[%s12009_s1 + $0x588] sm:$0xff] }
  0x5f   :  { %5845 = vmatpush3.msra.mxu0 %v66_v57  ;;  %655 = vmatpush1.msra.mxu1 %v5115_v58  ;;  %v5196_v57 = vld [vmem:[%s12009_s1 + $0x7d8] sm:$0xff]  ;;  %v5118_v58 = vld [vmem:[%s12009_s1 + $0x568] sm:$0xff] }
  0x60   :  { %5846 = vmatprep.subr.mxu0 %v141_v59  ;;  %656 = vmatprep.subr.mxu1 %v5111_v60  ;;  %v5195_v59 = vld [vmem:[%s12009_s1 + $0x7d0] sm:$0xff]  ;;  %v5117_v60 = vld [vmem:[%s12009_s1 + $0x560] sm:$0xff] }
  0x61   :  { %5847 = vmatpush3.msra.mxu0 %v61_v61  ;;  %657 = vmatpush1.msra.mxu1 %v5110_v62  ;;  %v5191_v61 = vld [vmem:[%s12009_s1 + $0x7b0] sm:$0xff]  ;;  %v5113_v62 = vld [vmem:[%s12009_s1 + $0x540] sm:$0xff] }
  0x62   :  { %5848 = vmatprep.subr.mxu0 %v136_v0  ;;  %658 = vmatprep.subr.mxu1 %v5106_v1  ;;  %v5190_v0 = vld [vmem:[%s12009_s1 + $0x7a8] sm:$0xff]  ;;  %v5112_v1 = vld [vmem:[%s12009_s1 + $0x538] sm:$0xff] }
  0x63   :  { %5849 = vmatpush3.msra.mxu0 %v56_v2  ;;  %456 = vmatprep.mubr.f32.mxu0 %v7088_v63  ;;  %v5186_v2 = vld [vmem:[%s12009_s1 + $0x788] sm:$0xff] }
  0x64   :  { %659 = vmatpush1.msra.mxu1 %v5105_v3  ;;  %457 = vmatmul.mubr.f32.vlgmr.msra.gmra.mxu0 %v7066_v56  ;;  %v5108_v3 = vld [vmem:[%s12009_s1 + $0x518] sm:$0xff] }
  0x65   :  { %660 = vmatprep.subr.mxu1 %v5261_v4  ;;  %699 = vmatprep.subr.mxu0 %v5183_v5  ;;  %v5185_v4 = vld [vmem:[%s12009_s1 + $0x780] sm:$0xff]  ;;  %v5107_v5 = vld [vmem:[%s12009_s1 + $0x510] sm:$0xff] }
  0x66   :  { %661 = vmatpush2.msra.mxu1 %v5260_v6  ;;  %700 = vmatpush1.msra.mxu0 %v5182_v7  ;;  %v5263_v6 = vld [vmem:[%s12009_s1 + $0x9f0] sm:$0xff]  ;;  %v5264_v7 = vld [vmem:[%s12009_s1 + $0x9f8] sm:$0xff] }
  0x67   :  { %662 = vmatprep.subr.mxu1 %v5256_v8  ;;  %701 = vmatprep.subr.mxu0 %v5178_v9  ;;  %v5262_v8 = vld [vmem:[%s12009_s1 + $0x9e8] sm:$0xff]  ;;  %v5184_v9 = vld [vmem:[%s12009_s1 + $0x778] sm:$0xff] }
  0x68   :  { %663 = vmatpush2.msra.mxu1 %v5255_v10  ;;  %702 = vmatpush1.msra.mxu0 %v5177_v11  ;;  %v5258_v10 = vld [vmem:[%s12009_s1 + $0x9c8] sm:$0xff]  ;;  %v5259_v11 = vld [vmem:[%s12009_s1 + $0x9d0] sm:$0xff] }
  0x69   :  { %664 = vmatprep.subr.mxu1 %v5251_v12  ;;  %703 = vmatprep.subr.mxu0 %v5173_v13  ;;  %v5257_v12 = vld [vmem:[%s12009_s1 + $0x9c0] sm:$0xff]  ;;  %v5179_v13 = vld [vmem:[%s12009_s1 + $0x750] sm:$0xff] }
  0x6a   :  { %665 = vmatpush2.msra.mxu1 %v5250_v14  ;;  %704 = vmatpush1.msra.mxu0 %v5172_v15  ;;  %v5253_v14 = vld [vmem:[%s12009_s1 + $0x9a0] sm:$0xff]  ;;  %v5254_v15 = vld [vmem:[%s12009_s1 + $0x9a8] sm:$0xff] }
  0x6b   :  { %666 = vmatprep.subr.mxu1 %v5246_v16  ;;  %705 = vmatprep.subr.mxu0 %v5168_v17  ;;  %v5252_v16 = vld [vmem:[%s12009_s1 + $0x998] sm:$0xff]  ;;  %v5174_v17 = vld [vmem:[%s12009_s1 + $0x728] sm:$0xff] }
  0x6c   :  { %667 = vmatpush2.msra.mxu1 %v5245_v18  ;;  %706 = vmatpush1.msra.mxu0 %v5167_v19  ;;  %v5248_v18 = vld [vmem:[%s12009_s1 + $0x978] sm:$0xff]  ;;  %v5249_v19 = vld [vmem:[%s12009_s1 + $0x980] sm:$0xff] }
  0x6d   :  { %668 = vmatprep.subr.mxu1 %v5241_v20  ;;  %707 = vmatprep.subr.mxu0 %v5163_v21  ;;  %v5247_v20 = vld [vmem:[%s12009_s1 + $0x970] sm:$0xff]  ;;  %v5169_v21 = vld [vmem:[%s12009_s1 + $0x700] sm:$0xff] }
  0x6e   :  { %669 = vmatpush2.msra.mxu1 %v5240_v22  ;;  %708 = vmatpush1.msra.mxu0 %v5162_v23  ;;  %v5243_v22 = vld [vmem:[%s12009_s1 + $0x950] sm:$0xff]  ;;  %v5244_v23 = vld [vmem:[%s12009_s1 + $0x958] sm:$0xff] }
  0x6f   :  { %670 = vmatprep.subr.mxu1 %v5236_v24  ;;  %709 = vmatprep.subr.mxu0 %v5158_v25  ;;  %v5242_v24 = vld [vmem:[%s12009_s1 + $0x948] sm:$0xff]  ;;  %v5164_v25 = vld [vmem:[%s12009_s1 + $0x6d8] sm:$0xff] }
  0x70   :  { %671 = vmatpush2.msra.mxu1 %v5235_v26  ;;  %710 = vmatpush1.msra.mxu0 %v5157_v27  ;;  %v5238_v26 = vld [vmem:[%s12009_s1 + $0x928] sm:$0xff]  ;;  %v5239_v27 = vld [vmem:[%s12009_s1 + $0x930] sm:$0xff] }
  0x71   :  { %672 = vmatprep.subr.mxu1 %v5231_v28  ;;  %711 = vmatprep.subr.mxu0 %v5153_v29  ;;  %v5237_v28 = vld [vmem:[%s12009_s1 + $0x920] sm:$0xff]  ;;  %v5159_v29 = vld [vmem:[%s12009_s1 + $0x6b0] sm:$0xff] }
  0x72   :  { %673 = vmatpush2.msra.mxu1 %v5230_v30  ;;  %712 = vmatpush1.msra.mxu0 %v5152_v31  ;;  %v5233_v30 = vld [vmem:[%s12009_s1 + $0x900] sm:$0xff]  ;;  %v5234_v31 = vld [vmem:[%s12009_s1 + $0x908] sm:$0xff] }
  0x73   :  { %674 = vmatprep.subr.mxu1 %v5226_v32  ;;  %713 = vmatprep.subr.mxu0 %v5148_v33  ;;  %v5232_v32 = vld [vmem:[%s12009_s1 + $0x8f8] sm:$0xff]  ;;  %v5154_v33 = vld [vmem:[%s12009_s1 + $0x688] sm:$0xff] }
  0x74   :  { %675 = vmatpush2.msra.mxu1 %v5225_v34  ;;  %714 = vmatpush1.msra.mxu0 %v5147_v35  ;;  %v5228_v34 = vld [vmem:[%s12009_s1 + $0x8d8] sm:$0xff]  ;;  %v5229_v35 = vld [vmem:[%s12009_s1 + $0x8e0] sm:$0xff] }
  0x75   :  { %676 = vmatprep.subr.mxu1 %v5221_v36  ;;  %715 = vmatprep.subr.mxu0 %v5143_v37  ;;  %v5227_v36 = vld [vmem:[%s12009_s1 + $0x8d0] sm:$0xff]  ;;  %v5149_v37 = vld [vmem:[%s12009_s1 + $0x660] sm:$0xff] }
  0x76   :  { %677 = vmatpush2.msra.mxu1 %v5220_v38  ;;  %716 = vmatpush1.msra.mxu0 %v5142_v39  ;;  %v5223_v38 = vld [vmem:[%s12009_s1 + $0x8b0] sm:$0xff]  ;;  %v5224_v39 = vld [vmem:[%s12009_s1 + $0x8b8] sm:$0xff] }
  0x77   :  { %678 = vmatprep.subr.mxu1 %v5216_v40  ;;  %717 = vmatprep.subr.mxu0 %v5138_v41  ;;  %v5222_v40 = vld [vmem:[%s12009_s1 + $0x8a8] sm:$0xff]  ;;  %v5144_v41 = vld [vmem:[%s12009_s1 + $0x638] sm:$0xff] }
  0x78   :  { %679 = vmatpush2.msra.mxu1 %v5215_v42  ;;  %718 = vmatpush1.msra.mxu0 %v5137_v43  ;;  %v5218_v42 = vld [vmem:[%s12009_s1 + $0x888] sm:$0xff]  ;;  %v5219_v43 = vld [vmem:[%s12009_s1 + $0x890] sm:$0xff] }
  0x79   :  { %680 = vmatprep.subr.mxu1 %v5211_v44  ;;  %719 = vmatprep.subr.mxu0 %v5133_v45  ;;  %v5217_v44 = vld [vmem:[%s12009_s1 + $0x880] sm:$0xff]  ;;  %v5139_v45 = vld [vmem:[%s12009_s1 + $0x610] sm:$0xff] }
  0x7a   :  { %681 = vmatpush2.msra.mxu1 %v5210_v46  ;;  %720 = vmatpush1.msra.mxu0 %v5132_v47  ;;  %v5213_v46 = vld [vmem:[%s12009_s1 + $0x860] sm:$0xff]  ;;  %v5214_v47 = vld [vmem:[%s12009_s1 + $0x868] sm:$0xff] }
  0x7b   :  { %682 = vmatprep.subr.mxu1 %v5206_v48  ;;  %721 = vmatprep.subr.mxu0 %v5128_v49  ;;  %v5212_v48 = vld [vmem:[%s12009_s1 + $0x858] sm:$0xff]  ;;  %v5134_v49 = vld [vmem:[%s12009_s1 + $0x5e8] sm:$0xff] }
  0x7c   :  { %683 = vmatpush2.msra.mxu1 %v5205_v50  ;;  %722 = vmatpush1.msra.mxu0 %v5127_v51  ;;  %v5208_v50 = vld [vmem:[%s12009_s1 + $0x838] sm:$0xff]  ;;  %v5209_v51 = vld [vmem:[%s12009_s1 + $0x840] sm:$0xff] }
  0x7d   :  { %684 = vmatprep.subr.mxu1 %v5201_v52  ;;  %723 = vmatprep.subr.mxu0 %v5123_v53  ;;  %v5207_v52 = vld [vmem:[%s12009_s1 + $0x830] sm:$0xff]  ;;  %v5129_v53 = vld [vmem:[%s12009_s1 + $0x5c0] sm:$0xff] }
  0x7e   :  { %685 = vmatpush2.msra.mxu1 %v5200_v54  ;;  %724 = vmatpush1.msra.mxu0 %v5122_v55  ;;  %v5203_v54 = vld [vmem:[%s12009_s1 + $0x810] sm:$0xff]  ;;  %v5204_v55 = vld [vmem:[%s12009_s1 + $0x818] sm:$0xff] }
  0x7f   :  { %686 = vmatprep.subr.mxu1 %v5196_v57  ;;  %725 = vmatprep.subr.mxu0 %v5118_v58  ;;  %v5202_v57 = vld [vmem:[%s12009_s1 + $0x808] sm:$0xff]  ;;  %v5124_v58 = vld [vmem:[%s12009_s1 + $0x598] sm:$0xff] }
  0x80   :  { %687 = vmatpush2.msra.mxu1 %v5195_v59  ;;  %726 = vmatpush1.msra.mxu0 %v5117_v60  ;;  %v5198_v59 = vld [vmem:[%s12009_s1 + $0x7e8] sm:$0xff]  ;;  %v5199_v60 = vld [vmem:[%s12009_s1 + $0x7f0] sm:$0xff] }
  0x81   :  { %688 = vmatprep.subr.mxu1 %v5191_v61  ;;  %727 = vmatprep.subr.mxu0 %v5113_v62  ;;  %v5197_v61 = vld [vmem:[%s12009_s1 + $0x7e0] sm:$0xff]  ;;  %v5119_v62 = vld [vmem:[%s12009_s1 + $0x570] sm:$0xff] }
  0x82   :  { %689 = vmatpush2.msra.mxu1 %v5190_v0  ;;  %728 = vmatpush1.msra.mxu0 %v5112_v1  ;;  %v5193_v0 = vld [vmem:[%s12009_s1 + $0x7c0] sm:$0xff]  ;;  %v5194_v1 = vld [vmem:[%s12009_s1 + $0x7c8] sm:$0xff] }
  0x83   :  { %690 = vmatprep.subr.mxu1 %v5186_v2  ;;  %729 = vmatprep.subr.mxu0 %v5108_v3  ;;  %v5192_v2 = vld [vmem:[%s12009_s1 + $0x7b8] sm:$0xff]  ;;  %v5114_v3 = vld [vmem:[%s12009_s1 + $0x548] sm:$0xff] }
  0x84   :  { %691 = vmatpush2.msra.mxu1 %v5185_v4  ;;  %692 = vmatprep.mubr.f32.mxu1 %v7088_v63  ;;  %v5188_v4 = vld [vmem:[%s12009_s1 + $0x798] sm:$0xff] }
  0x85   :  { %730 = vmatpush1.msra.mxu0 %v5107_v5  ;;  %693 = vmatmul.mubr.f32.vlgmr.msra.gmra.mxu1 %v7066_v56  ;;  %v5189_v5 = vld [vmem:[%s12009_s1 + $0x7a0] sm:$0xff] }
  0x86   :  { %731 = vmatprep.subr.mxu0 %v5263_v6  ;;  %5853 = vmatprep.subr.mxu1 %v5264_v7  ;;  %v5187_v6 = vld [vmem:[%s12009_s1 + $0x790] sm:$0xff]  ;;  %v5109_v7 = vld [vmem:[%s12009_s1 + $0x520] sm:$0xff] }
  0x87   :  { %732 = vmatpush2.msra.mxu0 %v5262_v8  ;;  %5854 = vmatpush3.msra.mxu1 %v5184_v9  ;;  %v5341_v8 = vld [vmem:[%s12009_s1 + $0xc60] sm:$0xff]  ;;  %v5343_v9 = vld [vmem:[%s12009_s1 + $0xc70] sm:$0xff] }
  0x88   :  { %733 = vmatprep.subr.mxu0 %v5258_v10  ;;  %5855 = vmatprep.subr.mxu1 %v5259_v11  ;;  %v5340_v10 = vld [vmem:[%s12009_s1 + $0xc58] sm:$0xff]  ;;  %v5342_v11 = vld [vmem:[%s12009_s1 + $0xc68] sm:$0xff] }
  0x89   :  { %734 = vmatpush2.msra.mxu0 %v5257_v12  ;;  %5856 = vmatpush3.msra.mxu1 %v5179_v13  ;;  %v5336_v12 = vld [vmem:[%s12009_s1 + $0xc38] sm:$0xff]  ;;  %v5338_v13 = vld [vmem:[%s12009_s1 + $0xc48] sm:$0xff] }
  0x8a   :  { %735 = vmatprep.subr.mxu0 %v5253_v14  ;;  %5857 = vmatprep.subr.mxu1 %v5254_v15  ;;  %v5335_v14 = vld [vmem:[%s12009_s1 + $0xc30] sm:$0xff]  ;;  %v5337_v15 = vld [vmem:[%s12009_s1 + $0xc40] sm:$0xff] }
  0x8b   :  { %736 = vmatpush2.msra.mxu0 %v5252_v16  ;;  %5858 = vmatpush3.msra.mxu1 %v5174_v17  ;;  %v5333_v16 = vld [vmem:[%s12009_s1 + $0xc20] sm:$0xff]  ;;  %v5330_v17 = vld [vmem:[%s12009_s1 + $0xc08] sm:$0xff] }
  0x8c   :  { %737 = vmatprep.subr.mxu0 %v5248_v18  ;;  %5859 = vmatprep.subr.mxu1 %v5249_v19  ;;  %v5332_v18 = vld [vmem:[%s12009_s1 + $0xc18] sm:$0xff]  ;;  %v5326_v19 = vld [vmem:[%s12009_s1 + $0xbe8] sm:$0xff] }
  0x8d   :  { %738 = vmatpush2.msra.mxu0 %v5247_v20  ;;  %5860 = vmatpush3.msra.mxu1 %v5169_v21  ;;  %v5328_v20 = vld [vmem:[%s12009_s1 + $0xbf8] sm:$0xff]  ;;  %v5325_v21 = vld [vmem:[%s12009_s1 + $0xbe0] sm:$0xff] }
  0x8e   :  { %739 = vmatprep.subr.mxu0 %v5243_v22  ;;  %5861 = vmatprep.subr.mxu1 %v5244_v23  ;;  %v5327_v22 = vld [vmem:[%s12009_s1 + $0xbf0] sm:$0xff]  ;;  %v5321_v23 = vld [vmem:[%s12009_s1 + $0xbc0] sm:$0xff] }
  0x8f   :  { %740 = vmatpush2.msra.mxu0 %v5242_v24  ;;  %5862 = vmatpush3.msra.mxu1 %v5164_v25  ;;  %v5323_v24 = vld [vmem:[%s12009_s1 + $0xbd0] sm:$0xff]  ;;  %v5320_v25 = vld [vmem:[%s12009_s1 + $0xbb8] sm:$0xff] }
  0x90   :  { %741 = vmatprep.subr.mxu0 %v5238_v26  ;;  %5863 = vmatprep.subr.mxu1 %v5239_v27  ;;  %v5322_v26 = vld [vmem:[%s12009_s1 + $0xbc8] sm:$0xff]  ;;  %v5316_v27 = vld [vmem:[%s12009_s1 + $0xb98] sm:$0xff] }
  0x91   :  { %742 = vmatpush2.msra.mxu0 %v5237_v28  ;;  %5864 = vmatpush3.msra.mxu1 %v5159_v29  ;;  %v5318_v28 = vld [vmem:[%s12009_s1 + $0xba8] sm:$0xff]  ;;  %v5315_v29 = vld [vmem:[%s12009_s1 + $0xb90] sm:$0xff] }
  0x92   :  { %743 = vmatprep.subr.mxu0 %v5233_v30  ;;  %5865 = vmatprep.subr.mxu1 %v5234_v31  ;;  %v5317_v30 = vld [vmem:[%s12009_s1 + $0xba0] sm:$0xff]  ;;  %v5311_v31 = vld [vmem:[%s12009_s1 + $0xb70] sm:$0xff] }
  0x93   :  { %744 = vmatpush2.msra.mxu0 %v5232_v32  ;;  %5866 = vmatpush3.msra.mxu1 %v5154_v33  ;;  %v5313_v32 = vld [vmem:[%s12009_s1 + $0xb80] sm:$0xff]  ;;  %v5310_v33 = vld [vmem:[%s12009_s1 + $0xb68] sm:$0xff] }
  0x94   :  { %745 = vmatprep.subr.mxu0 %v5228_v34  ;;  %5867 = vmatprep.subr.mxu1 %v5229_v35  ;;  %v5312_v34 = vld [vmem:[%s12009_s1 + $0xb78] sm:$0xff]  ;;  %v5306_v35 = vld [vmem:[%s12009_s1 + $0xb48] sm:$0xff] }
  0x95   :  { %746 = vmatpush2.msra.mxu0 %v5227_v36  ;;  %5868 = vmatpush3.msra.mxu1 %v5149_v37  ;;  %v5308_v36 = vld [vmem:[%s12009_s1 + $0xb58] sm:$0xff]  ;;  %v5305_v37 = vld [vmem:[%s12009_s1 + $0xb40] sm:$0xff] }
  0x96   :  { %747 = vmatprep.subr.mxu0 %v5223_v38  ;;  %5869 = vmatprep.subr.mxu1 %v5224_v39  ;;  %v5307_v38 = vld [vmem:[%s12009_s1 + $0xb50] sm:$0xff]  ;;  %v5301_v39 = vld [vmem:[%s12009_s1 + $0xb20] sm:$0xff] }
  0x97   :  { %748 = vmatpush2.msra.mxu0 %v5222_v40  ;;  %5870 = vmatpush3.msra.mxu1 %v5144_v41  ;;  %v5303_v40 = vld [vmem:[%s12009_s1 + $0xb30] sm:$0xff]  ;;  %v5300_v41 = vld [vmem:[%s12009_s1 + $0xb18] sm:$0xff] }
  0x98   :  { %749 = vmatprep.subr.mxu0 %v5218_v42  ;;  %5871 = vmatprep.subr.mxu1 %v5219_v43  ;;  %v5302_v42 = vld [vmem:[%s12009_s1 + $0xb28] sm:$0xff]  ;;  %v5296_v43 = vld [vmem:[%s12009_s1 + $0xaf8] sm:$0xff] }
  0x99   :  { %750 = vmatpush2.msra.mxu0 %v5217_v44  ;;  %5872 = vmatpush3.msra.mxu1 %v5139_v45  ;;  %v5298_v44 = vld [vmem:[%s12009_s1 + $0xb08] sm:$0xff]  ;;  %v5295_v45 = vld [vmem:[%s12009_s1 + $0xaf0] sm:$0xff] }
  0x9a   :  { %751 = vmatprep.subr.mxu0 %v5213_v46  ;;  %5873 = vmatprep.subr.mxu1 %v5214_v47  ;;  %v5297_v46 = vld [vmem:[%s12009_s1 + $0xb00] sm:$0xff]  ;;  %v5291_v47 = vld [vmem:[%s12009_s1 + $0xad0] sm:$0xff] }
  0x9b   :  { %752 = vmatpush2.msra.mxu0 %v5212_v48  ;;  %5874 = vmatpush3.msra.mxu1 %v5134_v49  ;;  %v5293_v48 = vld [vmem:[%s12009_s1 + $0xae0] sm:$0xff]  ;;  %v5290_v49 = vld [vmem:[%s12009_s1 + $0xac8] sm:$0xff] }
  0x9c   :  { %753 = vmatprep.subr.mxu0 %v5208_v50  ;;  %5875 = vmatprep.subr.mxu1 %v5209_v51  ;;  %v5292_v50 = vld [vmem:[%s12009_s1 + $0xad8] sm:$0xff]  ;;  %v5286_v51 = vld [vmem:[%s12009_s1 + $0xaa8] sm:$0xff] }
  0x9d   :  { %754 = vmatpush2.msra.mxu0 %v5207_v52  ;;  %5876 = vmatpush3.msra.mxu1 %v5129_v53  ;;  %v5288_v52 = vld [vmem:[%s12009_s1 + $0xab8] sm:$0xff]  ;;  %v5285_v53 = vld [vmem:[%s12009_s1 + $0xaa0] sm:$0xff] }
  0x9e   :  { %755 = vmatprep.subr.mxu0 %v5203_v54  ;;  %5877 = vmatprep.subr.mxu1 %v5204_v55  ;;  %v5287_v54 = vld [vmem:[%s12009_s1 + $0xab0] sm:$0xff]  ;;  %v5281_v55 = vld [vmem:[%s12009_s1 + $0xa80] sm:$0xff] }
  0x9f   :  { %756 = vmatpush2.msra.mxu0 %v5202_v57  ;;  %5878 = vmatpush3.msra.mxu1 %v5124_v58  ;;  %v5283_v57 = vld [vmem:[%s12009_s1 + $0xa90] sm:$0xff]  ;;  %v5280_v58 = vld [vmem:[%s12009_s1 + $0xa78] sm:$0xff] }
  0xa0   :  { %757 = vmatprep.subr.mxu0 %v5198_v59  ;;  %5879 = vmatprep.subr.mxu1 %v5199_v60  ;;  %v5282_v59 = vld [vmem:[%s12009_s1 + $0xa88] sm:$0xff]  ;;  %v5276_v60 = vld [vmem:[%s12009_s1 + $0xa58] sm:$0xff] }
  0xa1   :  { %758 = vmatpush2.msra.mxu0 %v5197_v61  ;;  %5880 = vmatpush3.msra.mxu1 %v5119_v62  ;;  %v5278_v61 = vld [vmem:[%s12009_s1 + $0xa68] sm:$0xff]  ;;  %v5275_v62 = vld [vmem:[%s12009_s1 + $0xa50] sm:$0xff] }
  0xa2   :  { %759 = vmatprep.subr.mxu0 %v5193_v0  ;;  %5881 = vmatprep.subr.mxu1 %v5194_v1  ;;  %v5277_v0 = vld [vmem:[%s12009_s1 + $0xa60] sm:$0xff]  ;;  %v5271_v1 = vld [vmem:[%s12009_s1 + $0xa30] sm:$0xff] }
  0xa3   :  { %760 = vmatpush2.msra.mxu0 %v5192_v2  ;;  %5882 = vmatpush3.msra.mxu1 %v5114_v3  ;;  %v5273_v2 = vld [vmem:[%s12009_s1 + $0xa40] sm:$0xff]  ;;  %v5270_v3 = vld [vmem:[%s12009_s1 + $0xa28] sm:$0xff] }
  0xa4   :  { %761 = vmatprep.subr.mxu0 %v5188_v4  ;;  %5883 = vmatprep.subr.mxu1 %v5189_v5  ;;  %v5272_v4 = vld [vmem:[%s12009_s1 + $0xa38] sm:$0xff]  ;;  %v5266_v5 = vld [vmem:[%s12009_s1 + $0xa08] sm:$0xff] }
  0xa5   :  { %762 = vmatpush2.msra.mxu0 %v5187_v6  ;;  %763 = vmatprep.mubr.f32.mxu0 %v7088_v63  ;;  %v5268_v6 = vld [vmem:[%s12009_s1 + $0xa18] sm:$0xff] }
  0xa6   :  { %5884 = vmatpush3.msra.mxu1 %v5109_v7  ;;  %834 = vmatprep.mubr.f32.mxu1 %v7088_v63  ;;  %v5265_v7 = vld [vmem:[%s12009_s1 + $0xa00] sm:$0xff] }
  0xa7   :  { %764 = vmatmul.mubr.f32.vlgmr.msra.gmra.mxu0 %v7066_v56  ;;  %835 = vmatmul.mubr.f32.vlgmr.msra.gmra.mxu1 %v7066_v56  ;;  %v5331_v56 = vld [vmem:[%s12009_s1 + $0xc10] sm:$0xff] }
  0xa8   :  { %1011 = vmatprep.subr.mxu0 %v5341_v8  ;;  %1082 = vmatprep.subr.mxu1 %v5343_v9  ;;  %v5267_v8 = vld [vmem:[%s12009_s1 + $0xa10] sm:$0xff]  ;;  %v5421_v9 = vld [vmem:[%s12009_s1 + $0xee0] sm:$0xff] }
  0xa9   :  { %1012 = vmatpush1.msra.mxu0 %v5340_v10  ;;  %1083 = vmatpush1.msra.mxu1 %v5342_v11  ;;  %v5423_v10 = vld [vmem:[%s12009_s1 + $0xef0] sm:$0xff]  ;;  %v5420_v11 = vld [vmem:[%s12009_s1 + $0xed8] sm:$0xff] }
  0xaa   :  { %1013 = vmatprep.subr.mxu0 %v5336_v12  ;;  %1084 = vmatprep.subr.mxu1 %v5338_v13  ;;  %v5422_v12 = vld [vmem:[%s12009_s1 + $0xee8] sm:$0xff]  ;;  %v5416_v13 = vld [vmem:[%s12009_s1 + $0xeb8] sm:$0xff] }
  0xab   :  { %1014 = vmatpush1.msra.mxu0 %v5335_v14  ;;  %1085 = vmatpush1.msra.mxu1 %v5337_v15  ;;  %v5418_v14 = vld [vmem:[%s12009_s1 + $0xec8] sm:$0xff]  ;;  %v5415_v15 = vld [vmem:[%s12009_s1 + $0xeb0] sm:$0xff] }
  0xac   :  { %1015 = vmatprep.subr.mxu0 %v5331_v56  ;;  %1086 = vmatprep.subr.mxu1 %v5333_v16  ;;  %v5417_v56 = vld [vmem:[%s12009_s1 + $0xec0] sm:$0xff]  ;;  %v5411_v16 = vld [vmem:[%s12009_s1 + $0xe90] sm:$0xff] }
  0xad   :  { %1016 = vmatpush1.msra.mxu0 %v5330_v17  ;;  %1087 = vmatpush1.msra.mxu1 %v5332_v18  ;;  %v5413_v17 = vld [vmem:[%s12009_s1 + $0xea0] sm:$0xff]  ;;  %v5410_v18 = vld [vmem:[%s12009_s1 + $0xe88] sm:$0xff] }
  0xae   :  { %1017 = vmatprep.subr.mxu0 %v5326_v19  ;;  %1088 = vmatprep.subr.mxu1 %v5328_v20  ;;  %v5412_v19 = vld [vmem:[%s12009_s1 + $0xe98] sm:$0xff]  ;;  %v5406_v20 = vld [vmem:[%s12009_s1 + $0xe68] sm:$0xff] }
  0xaf   :  { %1018 = vmatpush1.msra.mxu0 %v5325_v21  ;;  %1089 = vmatpush1.msra.mxu1 %v5327_v22  ;;  %v5408_v21 = vld [vmem:[%s12009_s1 + $0xe78] sm:$0xff]  ;;  %v5405_v22 = vld [vmem:[%s12009_s1 + $0xe60] sm:$0xff] }
  0xb0   :  { %1019 = vmatprep.subr.mxu0 %v5321_v23  ;;  %1090 = vmatprep.subr.mxu1 %v5323_v24  ;;  %v5407_v23 = vld [vmem:[%s12009_s1 + $0xe70] sm:$0xff]  ;;  %v5401_v24 = vld [vmem:[%s12009_s1 + $0xe40] sm:$0xff] }
  0xb1   :  { %1020 = vmatpush1.msra.mxu0 %v5320_v25  ;;  %1091 = vmatpush1.msra.mxu1 %v5322_v26  ;;  %v5403_v25 = vld [vmem:[%s12009_s1 + $0xe50] sm:$0xff]  ;;  %v5400_v26 = vld [vmem:[%s12009_s1 + $0xe38] sm:$0xff] }
  0xb2   :  { %1021 = vmatprep.subr.mxu0 %v5316_v27  ;;  %1092 = vmatprep.subr.mxu1 %v5318_v28  ;;  %v5402_v27 = vld [vmem:[%s12009_s1 + $0xe48] sm:$0xff]  ;;  %v5396_v28 = vld [vmem:[%s12009_s1 + $0xe18] sm:$0xff] }
  0xb3   :  { %1022 = vmatpush1.msra.mxu0 %v5315_v29  ;;  %1093 = vmatpush1.msra.mxu1 %v5317_v30  ;;  %v5398_v29 = vld [vmem:[%s12009_s1 + $0xe28] sm:$0xff]  ;;  %v5395_v30 = vld [vmem:[%s12009_s1 + $0xe10] sm:$0xff] }
  0xb4   :  { %1023 = vmatprep.subr.mxu0 %v5311_v31  ;;  %1094 = vmatprep.subr.mxu1 %v5313_v32  ;;  %v5397_v31 = vld [vmem:[%s12009_s1 + $0xe20] sm:$0xff]  ;;  %v5391_v32 = vld [vmem:[%s12009_s1 + $0xdf0] sm:$0xff] }
  0xb5   :  { %1024 = vmatpush1.msra.mxu0 %v5310_v33  ;;  %1095 = vmatpush1.msra.mxu1 %v5312_v34  ;;  %v5393_v33 = vld [vmem:[%s12009_s1 + $0xe00] sm:$0xff]  ;;  %v5390_v34 = vld [vmem:[%s12009_s1 + $0xde8] sm:$0xff] }
  0xb6   :  { %1025 = vmatprep.subr.mxu0 %v5306_v35  ;;  %1096 = vmatprep.subr.mxu1 %v5308_v36  ;;  %v5392_v35 = vld [vmem:[%s12009_s1 + $0xdf8] sm:$0xff]  ;;  %v5386_v36 = vld [vmem:[%s12009_s1 + $0xdc8] sm:$0xff] }
  0xb7   :  { %1026 = vmatpush1.msra.mxu0 %v5305_v37  ;;  %1097 = vmatpush1.msra.mxu1 %v5307_v38  ;;  %v5388_v37 = vld [vmem:[%s12009_s1 + $0xdd8] sm:$0xff]  ;;  %v5385_v38 = vld [vmem:[%s12009_s1 + $0xdc0] sm:$0xff] }
  0xb8   :  { %1027 = vmatprep.subr.mxu0 %v5301_v39  ;;  %1098 = vmatprep.subr.mxu1 %v5303_v40  ;;  %v5387_v39 = vld [vmem:[%s12009_s1 + $0xdd0] sm:$0xff]  ;;  %v5381_v40 = vld [vmem:[%s12009_s1 + $0xda0] sm:$0xff] }
  0xb9   :  { %1028 = vmatpush1.msra.mxu0 %v5300_v41  ;;  %1099 = vmatpush1.msra.mxu1 %v5302_v42  ;;  %v5383_v41 = vld [vmem:[%s12009_s1 + $0xdb0] sm:$0xff]  ;;  %v5380_v42 = vld [vmem:[%s12009_s1 + $0xd98] sm:$0xff] }
  0xba   :  { %1029 = vmatprep.subr.mxu0 %v5296_v43  ;;  %1100 = vmatprep.subr.mxu1 %v5298_v44  ;;  %v5382_v43 = vld [vmem:[%s12009_s1 + $0xda8] sm:$0xff]  ;;  %v5376_v44 = vld [vmem:[%s12009_s1 + $0xd78] sm:$0xff] }
  0xbb   :  { %1030 = vmatpush1.msra.mxu0 %v5295_v45  ;;  %1101 = vmatpush1.msra.mxu1 %v5297_v46  ;;  %v5378_v45 = vld [vmem:[%s12009_s1 + $0xd88] sm:$0xff] }
  0xbc   :  { %1031 = vmatprep.subr.mxu0 %v5291_v47  ;;  %1102 = vmatprep.subr.mxu1 %v5293_v48 }
  0xbd   :  { %1032 = vmatpush1.msra.mxu0 %v5290_v49  ;;  %1103 = vmatpush1.msra.mxu1 %v5292_v50 }
  0xbe   :  { %1033 = vmatprep.subr.mxu0 %v5286_v51  ;;  %1104 = vmatprep.subr.mxu1 %v5288_v52 }
  0xbf   :  { %1034 = vmatpush1.msra.mxu0 %v5285_v53  ;;  %1105 = vmatpush1.msra.mxu1 %v5287_v54 }
  0xc0   :  { %1035 = vmatprep.subr.mxu0 %v5281_v55  ;;  %1106 = vmatprep.subr.mxu1 %v5283_v57 }
  0xc1   :  { %1036 = vmatpush1.msra.mxu0 %v5280_v58  ;;  %1107 = vmatpush1.msra.mxu1 %v5282_v59 }
  0xc2   :  { %1037 = vmatprep.subr.mxu0 %v5276_v60  ;;  %1108 = vmatprep.subr.mxu1 %v5278_v61 }
  0xc3   :  { %1038 = vmatpush1.msra.mxu0 %v5275_v62  ;;  %1109 = vmatpush1.msra.mxu1 %v5277_v0 }
  0xc4   :  { %1039 = vmatprep.subr.mxu0 %v5271_v1  ;;  %1110 = vmatprep.subr.mxu1 %v5273_v2 }
  0xc5   :  { %1040 = vmatpush1.msra.mxu0 %v5270_v3  ;;  %1111 = vmatpush1.msra.mxu1 %v5272_v4 }
  0xc6   :  { %1041 = vmatprep.subr.mxu0 %v5266_v5  ;;  %1112 = vmatprep.subr.mxu1 %v5268_v6 }
  0xc7   :  { %1042 = vmatpush1.msra.mxu0 %v5265_v7  ;;  %1113 = vmatpush1.msra.mxu1 %v5267_v8 }
  0xc8   :  { %1043 = vmatprep.subr.mxu0 %v5421_v9  ;;  %1114 = vmatprep.subr.mxu1 %v5423_v10 }
  0xc9   :  { %1044 = vmatpush2.msra.mxu0 %v5420_v11  ;;  %1115 = vmatpush2.msra.mxu1 %v5422_v12 }
  0xca   :  { %1045 = vmatprep.subr.mxu0 %v5416_v13  ;;  %1116 = vmatprep.subr.mxu1 %v5418_v14 }
  0xcb   :  { %1046 = vmatpush2.msra.mxu0 %v5415_v15  ;;  %1117 = vmatpush2.msra.mxu1 %v5417_v56 }
  0xcc   :  { %1047 = vmatprep.subr.mxu0 %v5411_v16  ;;  %1118 = vmatprep.subr.mxu1 %v5413_v17 }
  0xcd   :  { %1048 = vmatpush2.msra.mxu0 %v5410_v18  ;;  %1119 = vmatpush2.msra.mxu1 %v5412_v19 }
  0xce   :  { %1049 = vmatprep.subr.mxu0 %v5406_v20  ;;  %1120 = vmatprep.subr.mxu1 %v5408_v21 }
  0xcf   :  { %1050 = vmatpush2.msra.mxu0 %v5405_v22  ;;  %1121 = vmatpush2.msra.mxu1 %v5407_v23 }
  0xd0   :  { %1051 = vmatprep.subr.mxu0 %v5401_v24  ;;  %1122 = vmatprep.subr.mxu1 %v5403_v25 }
  0xd1   :  { %1052 = vmatpush2.msra.mxu0 %v5400_v26  ;;  %1123 = vmatpush2.msra.mxu1 %v5402_v27 }
  0xd2   :  { %1053 = vmatprep.subr.mxu0 %v5396_v28  ;;  %1124 = vmatprep.subr.mxu1 %v5398_v29 }
  0xd3   :  { %1054 = vmatpush2.msra.mxu0 %v5395_v30  ;;  %1125 = vmatpush2.msra.mxu1 %v5397_v31 }
  0xd4   :  { %1055 = vmatprep.subr.mxu0 %v5391_v32  ;;  %1126 = vmatprep.subr.mxu1 %v5393_v33 }
  0xd5   :  { %1056 = vmatpush2.msra.mxu0 %v5390_v34  ;;  %1127 = vmatpush2.msra.mxu1 %v5392_v35 }
  0xd6   :  { %1057 = vmatprep.subr.mxu0 %v5386_v36  ;;  %1128 = vmatprep.subr.mxu1 %v5388_v37 }
  0xd7   :  { %1058 = vmatpush2.msra.mxu0 %v5385_v38  ;;  %1129 = vmatpush2.msra.mxu1 %v5387_v39 }
  0xd8   :  { %20 = vsyncpa [#allocation3], 0  ;;  %1059 = vmatprep.subr.mxu0 %v5381_v40  ;;  %1130 = vmatprep.subr.mxu1 %v5383_v41  ;;  %v5375_v46 = vld [vmem:[%s12009_s1 + $0xd70] sm:$0xff]  ;;  %v5377_v47 = vld [vmem:[%s12009_s1 + $0xd80] sm:$0xff]  ;;  %vm2003_vm0 = vcmask 523264   ;;  %vm6621_vm1 = vmmov 0  }
  0xd9   :  { %1060 = vmatpush2.msra.mxu0 %v5380_v42  ;;  %1131 = vmatpush2.msra.mxu1 %v5382_v43  ;;  %v5371_v48 = vld [vmem:[%s12009_s1 + $0xd50] sm:$0xff]  ;;  %v5373_v49 = vld [vmem:[%s12009_s1 + $0xd60] sm:$0xff]  ;;  %v5370_v50 = vld [vmem:[%s12009_s1 + $0xd48] sm:$0xff]  ;;  %vm4843_vm2 = vcmask 261120   ;;  %s6622_s26 = smov [#allocation2]   ;;  %vm5088_vm3 = vcmask 74752  }
  0xda   :  { %1061 = vmatprep.subr.mxu0 %v5376_v44  ;;  %1132 = vmatprep.subr.mxu1 %v5378_v45  ;;  %v5372_v51 = vld [vmem:[%s12009_s1 + $0xd58] sm:$0xff]  ;;  %v5366_v52 = vld [vmem:[%s12009_s1 + $0xd28] sm:$0xff]  ;;  %v5365_v54 = vld [vmem:[%s12009_s1 + $0xd20] sm:$0xff] }
  0xdb   :  { %1062 = vmatpush2.msra.mxu0 %v5375_v46  ;;  %1133 = vmatpush2.msra.mxu1 %v5377_v47  ;;  %v5368_v53 = vld [vmem:[%s12009_s1 + $0xd38] sm:$0xff]  ;;  %v5367_v55 = vld [vmem:[%s12009_s1 + $0xd30] sm:$0xff]  ;;  %v5361_v57 = vld [vmem:[%s12009_s1 + $0xd00] sm:$0xff] }
  0xdc   :  { %1063 = vmatprep.subr.mxu0 %v5371_v48  ;;  %1134 = vmatprep.subr.mxu1 %v5373_v49  ;;  %v5363_v58 = vld [vmem:[%s12009_s1 + $0xd10] sm:$0xff]  ;;  %v5360_v59 = vld [vmem:[%s12009_s1 + $0xcf8] sm:$0xff]  ;;  %v5362_v60 = vld [vmem:[%s12009_s1 + $0xd08] sm:$0xff] }
  0xdd   :  { %1064 = vmatpush2.msra.mxu0 %v5370_v50  ;;  %1135 = vmatpush2.msra.mxu1 %v5372_v51  ;;  %v5356_v61 = vld [vmem:[%s12009_s1 + $0xcd8] sm:$0xff]  ;;  %v5358_v62 = vld [vmem:[%s12009_s1 + $0xce8] sm:$0xff]  ;;  %v5355_v0 = vld [vmem:[%s12009_s1 + $0xcd0] sm:$0xff] }
  0xde   :  { %1065 = vmatprep.subr.mxu0 %v5366_v52  ;;  %1136 = vmatprep.subr.mxu1 %v5368_v53  ;;  %v5357_v1 = vld [vmem:[%s12009_s1 + $0xce0] sm:$0xff]  ;;  %v5351_v2 = vld [vmem:[%s12009_s1 + $0xcb0] sm:$0xff]  ;;  %v5350_v4 = vld [vmem:[%s12009_s1 + $0xca8] sm:$0xff] }
  0xdf   :  { %1066 = vmatpush2.msra.mxu0 %v5365_v54  ;;  %1137 = vmatpush2.msra.mxu1 %v5367_v55  ;;  %v5353_v3 = vld [vmem:[%s12009_s1 + $0xcc0] sm:$0xff]  ;;  %v5352_v5 = vld [vmem:[%s12009_s1 + $0xcb8] sm:$0xff]  ;;  %v5346_v6 = vld [vmem:[%s12009_s1 + $0xc88] sm:$0xff] }
  0xe0   :  { %1067 = vmatprep.subr.mxu0 %v5361_v57  ;;  %1138 = vmatprep.subr.mxu1 %v5363_v58  ;;  %v5348_v7 = vld [vmem:[%s12009_s1 + $0xc98] sm:$0xff]  ;;  %v5345_v8 = vld [vmem:[%s12009_s1 + $0xc80] sm:$0xff]  ;;  %v5347_v9 = vld [vmem:[%s12009_s1 + $0xc90] sm:$0xff] }
  0xe1   :  { %1068 = vmatpush2.msra.mxu0 %v5360_v59  ;;  %1139 = vmatpush2.msra.mxu1 %v5362_v60  ;;  %v5424_v10 = vld [vmem:[%s12009_s1 + $0xef8] sm:$0xff]  ;;  %v5501_v11 = vld [vmem:[%s12009_s1 + $0x1160] sm:$0xff]  ;;  %v5419_v15 = vld [vmem:[%s12009_s1 + $0xed0] sm:$0xff] }
  0xe2   :  { %1069 = vmatprep.subr.mxu0 %v5356_v61  ;;  %1140 = vmatprep.subr.mxu1 %v5358_v62  ;;  %v5344_v12 = vld [vmem:[%s12009_s1 + $0xc78] sm:$0xff]  ;;  %v8085_v14 = vld.sshfl [vmem:[%s12008_s0] sm:$0x33 pattern:$0x76325410]  ;;  %v5339_v16 = vld [vmem:[%s12009_s1 + $0xc50] sm:$0xff] }
  0xe3   :  { %1070 = vmatpush2.msra.mxu0 %v5355_v0  ;;  %1141 = vmatpush2.msra.mxu1 %v5357_v1  ;;  %v5500_v13 = vld [vmem:[%s12009_s1 + $0x1158] sm:$0xff]  ;;  %v5495_v17 = vld [vmem:[%s12009_s1 + $0x1130] sm:$0xff]  ;;  %v5414_v18 = vld [vmem:[%s12009_s1 + $0xea8] sm:$0xff] }
  0xe4   :  { %1071 = vmatprep.subr.mxu0 %v5351_v2  ;;  %1142 = vmatprep.subr.mxu1 %v5353_v3  ;;  %v5496_v56 = vld [vmem:[%s12009_s1 + $0x1138] sm:$0xff]  ;;  %v5491_v19 = vld [vmem:[%s12009_s1 + $0x1110] sm:$0xff]  ;;  %v5334_v20 = vld [vmem:[%s12009_s1 + $0xc28] sm:$0xff] }
  0xe5   :  { %1072 = vmatpush2.msra.mxu0 %v5350_v4  ;;  %1143 = vmatpush2.msra.mxu1 %v5352_v5  ;;  %v5490_v21 = vld [vmem:[%s12009_s1 + $0x1108] sm:$0xff]  ;;  %v5409_v22 = vld [vmem:[%s12009_s1 + $0xe80] sm:$0xff]  ;;  %v5404_v26 = vld [vmem:[%s12009_s1 + $0xe58] sm:$0xff] }
  0xe6   :  { %1073 = vmatprep.subr.mxu0 %v5346_v6  ;;  %1144 = vmatprep.subr.mxu1 %v5348_v7  ;;  %v5486_v23 = vld [vmem:[%s12009_s1 + $0x10e8] sm:$0xff]  ;;  %v5329_v24 = vld [vmem:[%s12009_s1 + $0xc00] sm:$0xff]  ;;  %v5324_v28 = vld [vmem:[%s12009_s1 + $0xbd8] sm:$0xff] }
  0xe7   :  { %1074 = vmatpush2.msra.mxu0 %v5345_v8  ;;  %1075 = vmatprep.mubr.f32.mxu0 %v7088_v63  ;;  %v5485_v25 = vld [vmem:[%s12009_s1 + $0x10e0] sm:$0xff]  ;;  %v5480_v29 = vld [vmem:[%s12009_s1 + $0x10b8] sm:$0xff]  ;;  %v5399_v30 = vld [vmem:[%s12009_s1 + $0xe30] sm:$0xff] }
  0xe8   :  { %1145 = vmatpush2.msra.mxu1 %v5347_v9  ;;  %1146 = vmatprep.mubr.f32.mxu1 %v7088_v63  ;;  %v5481_v27 = vld [vmem:[%s12009_s1 + $0x10c0] sm:$0xff]  ;;  %v5476_v31 = vld [vmem:[%s12009_s1 + $0x1098] sm:$0xff]  ;;  %v5319_v32 = vld [vmem:[%s12009_s1 + $0xbb0] sm:$0xff] }
  0xe9   :  { %1076 = vmatmul.mubr.f32.vlgmr.msra.gmra.mxu0 %v8085_v14  ;;  %1147 = vmatmul.mubr.f32.vlgmr.msra.gmra.mxu1 %v8085_v14  ;;  %v5475_v33 = vld [vmem:[%s12009_s1 + $0x1090] sm:$0xff]  ;;  %v5394_v34 = vld [vmem:[%s12009_s1 + $0xe08] sm:$0xff]  ;;  %v5389_v38 = vld [vmem:[%s12009_s1 + $0xde0] sm:$0xff] }
  0xea   :  { %5888 = vmatprep.subr.mxu0 %v5424_v10  ;;  %1394 = vmatprep.subr.mxu1 %v5501_v11  ;;  %v5471_v35 = vld [vmem:[%s12009_s1 + $0x1070] sm:$0xff]  ;;  %v5314_v36 = vld [vmem:[%s12009_s1 + $0xb88] sm:$0xff]  ;;  %v5309_v40 = vld [vmem:[%s12009_s1 + $0xb60] sm:$0xff] }
  0xeb   :  { %5889 = vmatpush3.msra.mxu0 %v5344_v12  ;;  %1395 = vmatpush1.msra.mxu1 %v5500_v13  ;;  %v5470_v37 = vld [vmem:[%s12009_s1 + $0x1068] sm:$0xff]  ;;  %v5465_v41 = vld [vmem:[%s12009_s1 + $0x1040] sm:$0xff]  ;;  %v5384_v42 = vld [vmem:[%s12009_s1 + $0xdb8] sm:$0xff] }
  0xec   :  { %5890 = vmatprep.subr.mxu0 %v5419_v15  ;;  %1396 = vmatprep.subr.mxu1 %v5496_v56  ;;  %v5466_v39 = vld [vmem:[%s12009_s1 + $0x1048] sm:$0xff]  ;;  %v5461_v43 = vld [vmem:[%s12009_s1 + $0x1020] sm:$0xff]  ;;  %v5304_v44 = vld [vmem:[%s12009_s1 + $0xb38] sm:$0xff] }
  0xed   :  { %5891 = vmatpush3.msra.mxu0 %v5339_v16  ;;  %1397 = vmatpush1.msra.mxu1 %v5495_v17  ;;  %v5460_v45 = vld [vmem:[%s12009_s1 + $0x1018] sm:$0xff]  ;;  %v5379_v46 = vld [vmem:[%s12009_s1 + $0xd90] sm:$0xff]  ;;  %v5374_v50 = vld [vmem:[%s12009_s1 + $0xd68] sm:$0xff] }
  0xee   :  { %5892 = vmatprep.subr.mxu0 %v5414_v18  ;;  %1398 = vmatprep.subr.mxu1 %v5491_v19  ;;  %v5456_v47 = vld [vmem:[%s12009_s1 + $0xff8] sm:$0xff]  ;;  %v5299_v48 = vld [vmem:[%s12009_s1 + $0xb10] sm:$0xff]  ;;  %v5294_v52 = vld [vmem:[%s12009_s1 + $0xae8] sm:$0xff] }
  0xef   :  { %5893 = vmatpush3.msra.mxu0 %v5334_v20  ;;  %1399 = vmatpush1.msra.mxu1 %v5490_v21  ;;  %v5455_v49 = vld [vmem:[%s12009_s1 + $0xff0] sm:$0xff]  ;;  %v5450_v53 = vld [vmem:[%s12009_s1 + $0xfc8] sm:$0xff]  ;;  %v5369_v54 = vld [vmem:[%s12009_s1 + $0xd40] sm:$0xff] }
  0xf0   :  { %5894 = vmatprep.subr.mxu0 %v5409_v22  ;;  %1400 = vmatprep.subr.mxu1 %v5486_v23  ;;  %v5451_v51 = vld [vmem:[%s12009_s1 + $0xfd0] sm:$0xff]  ;;  %v5446_v55 = vld [vmem:[%s12009_s1 + $0xfa8] sm:$0xff]  ;;  %v5289_v57 = vld [vmem:[%s12009_s1 + $0xac0] sm:$0xff] }
  0xf1   :  { %5895 = vmatpush3.msra.mxu0 %v5329_v24  ;;  %1401 = vmatpush1.msra.mxu1 %v5485_v25  ;;  %v5445_v58 = vld [vmem:[%s12009_s1 + $0xfa0] sm:$0xff]  ;;  %v5364_v59 = vld [vmem:[%s12009_s1 + $0xd18] sm:$0xff]  ;;  %v5359_v0 = vld [vmem:[%s12009_s1 + $0xcf0] sm:$0xff] }
  0xf2   :  { %5896 = vmatprep.subr.mxu0 %v5404_v26  ;;  %1402 = vmatprep.subr.mxu1 %v5481_v27  ;;  %v5441_v60 = vld [vmem:[%s12009_s1 + $0xf80] sm:$0xff]  ;;  %v5284_v61 = vld [vmem:[%s12009_s1 + $0xa98] sm:$0xff]  ;;  %v5279_v2 = vld [vmem:[%s12009_s1 + $0xa70] sm:$0xff] }
  0xf3   :  { %5897 = vmatpush3.msra.mxu0 %v5324_v28  ;;  %1403 = vmatpush1.msra.mxu1 %v5480_v29  ;;  %v5440_v62 = vld [vmem:[%s12009_s1 + $0xf78] sm:$0xff]  ;;  %v5435_v3 = vld [vmem:[%s12009_s1 + $0xf50] sm:$0xff]  ;;  %v5354_v4 = vld [vmem:[%s12009_s1 + $0xcc8] sm:$0xff] }
  0xf4   :  { %5898 = vmatprep.subr.mxu0 %v5399_v30  ;;  %1404 = vmatprep.subr.mxu1 %v5476_v31  ;;  %v5436_v1 = vld [vmem:[%s12009_s1 + $0xf58] sm:$0xff]  ;;  %v5431_v5 = vld [vmem:[%s12009_s1 + $0xf30] sm:$0xff]  ;;  %v5274_v6 = vld [vmem:[%s12009_s1 + $0xa48] sm:$0xff] }
  0xf5   :  { %5899 = vmatpush3.msra.mxu0 %v5319_v32  ;;  %1405 = vmatpush1.msra.mxu1 %v5475_v33  ;;  %v5430_v7 = vld [vmem:[%s12009_s1 + $0xf28] sm:$0xff]  ;;  %v5349_v8 = vld [vmem:[%s12009_s1 + $0xca0] sm:$0xff]  ;;  %v5503_v13 = vld [vmem:[%s12009_s1 + $0x1170] sm:$0xff] }
  0xf6   :  { %5900 = vmatprep.subr.mxu0 %v5394_v34  ;;  %1406 = vmatprep.subr.mxu1 %v5471_v35  ;;  %v5426_v9 = vld [vmem:[%s12009_s1 + $0xf08] sm:$0xff]  ;;  %v5269_v10 = vld [vmem:[%s12009_s1 + $0xa20] sm:$0xff]  ;;  %v5580_v15 = vld [vmem:[%s12009_s1 + $0x13d8] sm:$0xff] }
  0xf7   :  { %5901 = vmatpush3.msra.mxu0 %v5314_v36  ;;  %1407 = vmatpush1.msra.mxu1 %v5470_v37  ;;  %v5425_v11 = vld [vmem:[%s12009_s1 + $0xf00] sm:$0xff]  ;;  %v5502_v56 = vld [vmem:[%s12009_s1 + $0x1168] sm:$0xff]  ;;  %v5576_v16 = vld [vmem:[%s12009_s1 + $0x13b8] sm:$0xff] }
  0xf8   :  { %5902 = vmatprep.subr.mxu0 %v5389_v38  ;;  %1408 = vmatprep.subr.mxu1 %v5466_v39  ;;  %v5581_v12 = vld [vmem:[%s12009_s1 + $0x13e0] sm:$0xff]  ;;  %v5498_v17 = vld [vmem:[%s12009_s1 + $0x1148] sm:$0xff]  ;;  %v5575_v18 = vld [vmem:[%s12009_s1 + $0x13b0] sm:$0xff] }
  0xf9   :  { %5903 = vmatpush3.msra.mxu0 %v5309_v40  ;;  %1409 = vmatpush1.msra.mxu1 %v5465_v41  ;;  %v5497_v19 = vld [vmem:[%s12009_s1 + $0x1140] sm:$0xff]  ;;  %v5571_v20 = vld [vmem:[%s12009_s1 + $0x1390] sm:$0xff]  ;;  %v5570_v22 = vld [vmem:[%s12009_s1 + $0x1388] sm:$0xff] }
  0xfa   :  { %5904 = vmatprep.subr.mxu0 %v5384_v42  ;;  %1410 = vmatprep.subr.mxu1 %v5461_v43  ;;  %v5493_v21 = vld [vmem:[%s12009_s1 + $0x1120] sm:$0xff]  ;;  %v5492_v23 = vld [vmem:[%s12009_s1 + $0x1118] sm:$0xff]  ;;  %v5566_v24 = vld [vmem:[%s12009_s1 + $0x1368] sm:$0xff] }
  0xfb   :  { %5905 = vmatpush3.msra.mxu0 %v5304_v44  ;;  %1411 = vmatpush1.msra.mxu1 %v5460_v45  ;;  %v5488_v25 = vld [vmem:[%s12009_s1 + $0x10f8] sm:$0xff]  ;;  %v5565_v26 = vld [vmem:[%s12009_s1 + $0x1360] sm:$0xff]  ;;  %v5487_v27 = vld [vmem:[%s12009_s1 + $0x10f0] sm:$0xff] }
  0xfc   :  { %5906 = vmatprep.subr.mxu0 %v5379_v46  ;;  %1412 = vmatprep.subr.mxu1 %v5456_v47  ;;  %v5561_v28 = vld [vmem:[%s12009_s1 + $0x1340] sm:$0xff]  ;;  %v5483_v29 = vld [vmem:[%s12009_s1 + $0x10d0] sm:$0xff]  ;;  %v5560_v30 = vld [vmem:[%s12009_s1 + $0x1338] sm:$0xff] }
  0xfd   :  { %5907 = vmatpush3.msra.mxu0 %v5299_v48  ;;  %1413 = vmatpush1.msra.mxu1 %v5455_v49  ;;  %v5482_v31 = vld [vmem:[%s12009_s1 + $0x10c8] sm:$0xff]  ;;  %v5556_v32 = vld [vmem:[%s12009_s1 + $0x1318] sm:$0xff]  ;;  %v5555_v34 = vld [vmem:[%s12009_s1 + $0x1310] sm:$0xff] }
  0xfe   :  { %5908 = vmatprep.subr.mxu0 %v5374_v50  ;;  %1414 = vmatprep.subr.mxu1 %v5451_v51  ;;  %v5478_v33 = vld [vmem:[%s12009_s1 + $0x10a8] sm:$0xff]  ;;  %v5477_v35 = vld [vmem:[%s12009_s1 + $0x10a0] sm:$0xff]  ;;  %v5551_v36 = vld [vmem:[%s12009_s1 + $0x12f0] sm:$0xff] }
  0xff   :  { %5909 = vmatpush3.msra.mxu0 %v5294_v52  ;;  %1415 = vmatpush1.msra.mxu1 %v5450_v53  ;;  %v5473_v37 = vld [vmem:[%s12009_s1 + $0x1080] sm:$0xff]  ;;  %v5550_v38 = vld [vmem:[%s12009_s1 + $0x12e8] sm:$0xff]  ;;  %v5472_v39 = vld [vmem:[%s12009_s1 + $0x1078] sm:$0xff] }
 0x100   :  { %5910 = vmatprep.subr.mxu0 %v5369_v54  ;;  %1416 = vmatprep.subr.mxu1 %v5446_v55  ;;  %v5546_v40 = vld [vmem:[%s12009_s1 + $0x12c8] sm:$0xff]  ;;  %v5468_v41 = vld [vmem:[%s12009_s1 + $0x1058] sm:$0xff]  ;;  %v5545_v42 = vld [vmem:[%s12009_s1 + $0x12c0] sm:$0xff] }
 0x101   :  { %5911 = vmatpush3.msra.mxu0 %v5289_v57  ;;  %1417 = vmatpush1.msra.mxu1 %v5445_v58  ;;  %v5467_v43 = vld [vmem:[%s12009_s1 + $0x1050] sm:$0xff]  ;;  %v5541_v44 = vld [vmem:[%s12009_s1 + $0x12a0] sm:$0xff]  ;;  %v5540_v46 = vld [vmem:[%s12009_s1 + $0x1298] sm:$0xff] }
 0x102   :  { %5912 = vmatprep.subr.mxu0 %v5364_v59  ;;  %1418 = vmatprep.subr.mxu1 %v5441_v60  ;;  %v5463_v45 = vld [vmem:[%s12009_s1 + $0x1030] sm:$0xff]  ;;  %v5462_v47 = vld [vmem:[%s12009_s1 + $0x1028] sm:$0xff]  ;;  %v5536_v48 = vld [vmem:[%s12009_s1 + $0x1278] sm:$0xff] }
 0x103   :  { %5913 = vmatpush3.msra.mxu0 %v5284_v61  ;;  %1419 = vmatpush1.msra.mxu1 %v5440_v62  ;;  %v5458_v49 = vld [vmem:[%s12009_s1 + $0x1008] sm:$0xff]  ;;  %v5535_v50 = vld [vmem:[%s12009_s1 + $0x1270] sm:$0xff]  ;;  %v5457_v51 = vld [vmem:[%s12009_s1 + $0x1000] sm:$0xff] }
 0x104   :  { %5914 = vmatprep.subr.mxu0 %v5359_v0  ;;  %1420 = vmatprep.subr.mxu1 %v5436_v1  ;;  %v5531_v52 = vld [vmem:[%s12009_s1 + $0x1250] sm:$0xff]  ;;  %v5453_v53 = vld [vmem:[%s12009_s1 + $0xfe0] sm:$0xff]  ;;  %v5530_v54 = vld [vmem:[%s12009_s1 + $0x1248] sm:$0xff] }
 0x105   :  { %5915 = vmatpush3.msra.mxu0 %v5279_v2  ;;  %1421 = vmatpush1.msra.mxu1 %v5435_v3  ;;  %v5452_v55 = vld [vmem:[%s12009_s1 + $0xfd8] sm:$0xff]  ;;  %v5526_v57 = vld [vmem:[%s12009_s1 + $0x1228] sm:$0xff]  ;;  %v5525_v59 = vld [vmem:[%s12009_s1 + $0x1220] sm:$0xff] }
 0x106   :  { %5916 = vmatprep.subr.mxu0 %v5354_v4  ;;  %1422 = vmatprep.subr.mxu1 %v5431_v5  ;;  %v5448_v58 = vld [vmem:[%s12009_s1 + $0xfb8] sm:$0xff]  ;;  %v5447_v60 = vld [vmem:[%s12009_s1 + $0xfb0] sm:$0xff]  ;;  %v5521_v61 = vld [vmem:[%s12009_s1 + $0x1200] sm:$0xff] }
 0x107   :  { %5917 = vmatpush3.msra.mxu0 %v5274_v6  ;;  %1423 = vmatpush1.msra.mxu1 %v5430_v7  ;;  %v5443_v62 = vld [vmem:[%s12009_s1 + $0xf90] sm:$0xff]  ;;  %v5520_v0 = vld [vmem:[%s12009_s1 + $0x11f8] sm:$0xff]  ;;  %v5442_v1 = vld [vmem:[%s12009_s1 + $0xf88] sm:$0xff] }
 0x108   :  { %5918 = vmatprep.subr.mxu0 %v5349_v8  ;;  %1424 = vmatprep.subr.mxu1 %v5426_v9  ;;  %v5516_v2 = vld [vmem:[%s12009_s1 + $0x11d8] sm:$0xff]  ;;  %v5438_v3 = vld [vmem:[%s12009_s1 + $0xf68] sm:$0xff]  ;;  %v5515_v4 = vld [vmem:[%s12009_s1 + $0x11d0] sm:$0xff] }
 0x109   :  { %5919 = vmatpush3.msra.mxu0 %v5269_v10  ;;  %1217 = vmatprep.mubr.f32.mxu0 %v7088_v63  ;;  %v5437_v5 = vld [vmem:[%s12009_s1 + $0xf60] sm:$0xff]  ;;  %v5511_v6 = vld [vmem:[%s12009_s1 + $0x11b0] sm:$0xff]  ;;  %v5510_v8 = vld [vmem:[%s12009_s1 + $0x11a8] sm:$0xff] }
 0x10a   :  { %1425 = vmatpush1.msra.mxu1 %v5425_v11  ;;  %1218 = vmatmul.mubr.f32.vlgmr.msra.gmra.mxu0 %v8085_v14  ;;  %v5433_v7 = vld [vmem:[%s12009_s1 + $0xf40] sm:$0xff]  ;;  %v5432_v9 = vld [vmem:[%s12009_s1 + $0xf38] sm:$0xff]  ;;  %v5506_v10 = vld [vmem:[%s12009_s1 + $0x1188] sm:$0xff] }
 0x10b   :  { %1426 = vmatprep.subr.mxu1 %v5581_v12  ;;  %1465 = vmatprep.subr.mxu0 %v5503_v13  ;;  %v5428_v11 = vld [vmem:[%s12009_s1 + $0xf18] sm:$0xff]  ;;  %v5505_v12 = vld [vmem:[%s12009_s1 + $0x1180] sm:$0xff]  ;;  %v5427_v13 = vld [vmem:[%s12009_s1 + $0xf10] sm:$0xff] }
 0x10c   :  { %1427 = vmatpush2.msra.mxu1 %v5580_v15  ;;  %1466 = vmatpush1.msra.mxu0 %v5502_v56  ;;  %v5583_v15 = vld [vmem:[%s12009_s1 + $0x13f0] sm:$0xff]  ;;  %v5584_v56 = vld [vmem:[%s12009_s1 + $0x13f8] sm:$0xff] }
 0x10d   :  { %1428 = vmatprep.subr.mxu1 %v5576_v16  ;;  %1467 = vmatprep.subr.mxu0 %v5498_v17  ;;  %v5582_v16 = vld [vmem:[%s12009_s1 + $0x13e8] sm:$0xff]  ;;  %v5504_v17 = vld [vmem:[%s12009_s1 + $0x1178] sm:$0xff] }
 0x10e   :  { %1429 = vmatpush2.msra.mxu1 %v5575_v18  ;;  %1468 = vmatpush1.msra.mxu0 %v5497_v19  ;;  %v5578_v18 = vld [vmem:[%s12009_s1 + $0x13c8] sm:$0xff]  ;;  %v5579_v19 = vld [vmem:[%s12009_s1 + $0x13d0] sm:$0xff] }
 0x10f   :  { %1430 = vmatprep.subr.mxu1 %v5571_v20  ;;  %1469 = vmatprep.subr.mxu0 %v5493_v21  ;;  %v5577_v20 = vld [vmem:[%s12009_s1 + $0x13c0] sm:$0xff]  ;;  %v5499_v21 = vld [vmem:[%s12009_s1 + $0x1150] sm:$0xff] }
 0x110   :  { %1431 = vmatpush2.msra.mxu1 %v5570_v22  ;;  %1470 = vmatpush1.msra.mxu0 %v5492_v23  ;;  %v5573_v22 = vld [vmem:[%s12009_s1 + $0x13a0] sm:$0xff]  ;;  %v5574_v23 = vld [vmem:[%s12009_s1 + $0x13a8] sm:$0xff] }
 0x111   :  { %1432 = vmatprep.subr.mxu1 %v5566_v24  ;;  %1471 = vmatprep.subr.mxu0 %v5488_v25  ;;  %v5572_v24 = vld [vmem:[%s12009_s1 + $0x1398] sm:$0xff]  ;;  %v5494_v25 = vld [vmem:[%s12009_s1 + $0x1128] sm:$0xff] }
 0x112   :  { %1433 = vmatpush2.msra.mxu1 %v5565_v26  ;;  %1472 = vmatpush1.msra.mxu0 %v5487_v27  ;;  %v5568_v26 = vld [vmem:[%s12009_s1 + $0x1378] sm:$0xff]  ;;  %v5569_v27 = vld [vmem:[%s12009_s1 + $0x1380] sm:$0xff] }
 0x113   :  { %1434 = vmatprep.subr.mxu1 %v5561_v28  ;;  %1473 = vmatprep.subr.mxu0 %v5483_v29  ;;  %v5567_v28 = vld [vmem:[%s12009_s1 + $0x1370] sm:$0xff]  ;;  %v5489_v29 = vld [vmem:[%s12009_s1 + $0x1100] sm:$0xff] }
 0x114   :  { %1435 = vmatpush2.msra.mxu1 %v5560_v30  ;;  %1474 = vmatpush1.msra.mxu0 %v5482_v31  ;;  %v5563_v30 = vld [vmem:[%s12009_s1 + $0x1350] sm:$0xff]  ;;  %v5564_v31 = vld [vmem:[%s12009_s1 + $0x1358] sm:$0xff] }
 0x115   :  { %1436 = vmatprep.subr.mxu1 %v5556_v32  ;;  %1475 = vmatprep.subr.mxu0 %v5478_v33  ;;  %v5562_v32 = vld [vmem:[%s12009_s1 + $0x1348] sm:$0xff]  ;;  %v5484_v33 = vld [vmem:[%s12009_s1 + $0x10d8] sm:$0xff] }
 0x116   :  { %1437 = vmatpush2.msra.mxu1 %v5555_v34  ;;  %1476 = vmatpush1.msra.mxu0 %v5477_v35  ;;  %v5558_v34 = vld [vmem:[%s12009_s1 + $0x1328] sm:$0xff]  ;;  %v5559_v35 = vld [vmem:[%s12009_s1 + $0x1330] sm:$0xff] }
 0x117   :  { %1438 = vmatprep.subr.mxu1 %v5551_v36  ;;  %1477 = vmatprep.subr.mxu0 %v5473_v37  ;;  %v5557_v36 = vld [vmem:[%s12009_s1 + $0x1320] sm:$0xff]  ;;  %v5479_v37 = vld [vmem:[%s12009_s1 + $0x10b0] sm:$0xff] }
 0x118   :  { %1439 = vmatpush2.msra.mxu1 %v5550_v38  ;;  %1478 = vmatpush1.msra.mxu0 %v5472_v39  ;;  %v5553_v38 = vld [vmem:[%s12009_s1 + $0x1300] sm:$0xff]  ;;  %v5554_v39 = vld [vmem:[%s12009_s1 + $0x1308] sm:$0xff] }
 0x119   :  { %1440 = vmatprep.subr.mxu1 %v5546_v40  ;;  %1479 = vmatprep.subr.mxu0 %v5468_v41  ;;  %v5552_v40 = vld [vmem:[%s12009_s1 + $0x12f8] sm:$0xff]  ;;  %v5474_v41 = vld [vmem:[%s12009_s1 + $0x1088] sm:$0xff] }
 0x11a   :  { %1441 = vmatpush2.msra.mxu1 %v5545_v42  ;;  %1480 = vmatpush1.msra.mxu0 %v5467_v43  ;;  %v5548_v42 = vld [vmem:[%s12009_s1 + $0x12d8] sm:$0xff]  ;;  %v5549_v43 = vld [vmem:[%s12009_s1 + $0x12e0] sm:$0xff] }
 0x11b   :  { %1442 = vmatprep.subr.mxu1 %v5541_v44  ;;  %1481 = vmatprep.subr.mxu0 %v5463_v45  ;;  %v5547_v44 = vld [vmem:[%s12009_s1 + $0x12d0] sm:$0xff]  ;;  %v5469_v45 = vld [vmem:[%s12009_s1 + $0x1060] sm:$0xff] }
 0x11c   :  { %1443 = vmatpush2.msra.mxu1 %v5540_v46  ;;  %1482 = vmatpush1.msra.mxu0 %v5462_v47  ;;  %v5543_v46 = vld [vmem:[%s12009_s1 + $0x12b0] sm:$0xff]  ;;  %v5544_v47 = vld [vmem:[%s12009_s1 + $0x12b8] sm:$0xff] }
 0x11d   :  { %1444 = vmatprep.subr.mxu1 %v5536_v48  ;;  %1483 = vmatprep.subr.mxu0 %v5458_v49  ;;  %v5542_v48 = vld [vmem:[%s12009_s1 + $0x12a8] sm:$0xff]  ;;  %v5464_v49 = vld [vmem:[%s12009_s1 + $0x1038] sm:$0xff] }
 0x11e   :  { %1445 = vmatpush2.msra.mxu1 %v5535_v50  ;;  %1484 = vmatpush1.msra.mxu0 %v5457_v51  ;;  %v5538_v50 = vld [vmem:[%s12009_s1 + $0x1288] sm:$0xff]  ;;  %v5539_v51 = vld [vmem:[%s12009_s1 + $0x1290] sm:$0xff] }
 0x11f   :  { %1446 = vmatprep.subr.mxu1 %v5531_v52  ;;  %1485 = vmatprep.subr.mxu0 %v5453_v53  ;;  %v5537_v52 = vld [vmem:[%s12009_s1 + $0x1280] sm:$0xff]  ;;  %v5459_v53 = vld [vmem:[%s12009_s1 + $0x1010] sm:$0xff] }
 0x120   :  { %1447 = vmatpush2.msra.mxu1 %v5530_v54  ;;  %1486 = vmatpush1.msra.mxu0 %v5452_v55  ;;  %v5533_v54 = vld [vmem:[%s12009_s1 + $0x1260] sm:$0xff]  ;;  %v5534_v55 = vld [vmem:[%s12009_s1 + $0x1268] sm:$0xff] }
 0x121   :  { %1448 = vmatprep.subr.mxu1 %v5526_v57  ;;  %1487 = vmatprep.subr.mxu0 %v5448_v58  ;;  %v5532_v57 = vld [vmem:[%s12009_s1 + $0x1258] sm:$0xff]  ;;  %v5454_v58 = vld [vmem:[%s12009_s1 + $0xfe8] sm:$0xff] }
 0x122   :  { %1449 = vmatpush2.msra.mxu1 %v5525_v59  ;;  %1488 = vmatpush1.msra.mxu0 %v5447_v60  ;;  %v5528_v59 = vld [vmem:[%s12009_s1 + $0x1238] sm:$0xff]  ;;  %v5529_v60 = vld [vmem:[%s12009_s1 + $0x1240] sm:$0xff] }
 0x123   :  { %1450 = vmatprep.subr.mxu1 %v5521_v61  ;;  %1489 = vmatprep.subr.mxu0 %v5443_v62  ;;  %v5527_v61 = vld [vmem:[%s12009_s1 + $0x1230] sm:$0xff]  ;;  %v5449_v62 = vld [vmem:[%s12009_s1 + $0xfc0] sm:$0xff] }
 0x124   :  { %1451 = vmatpush2.msra.mxu1 %v5520_v0  ;;  %1490 = vmatpush1.msra.mxu0 %v5442_v1  ;;  %v5523_v0 = vld [vmem:[%s12009_s1 + $0x1210] sm:$0xff]  ;;  %v5524_v1 = vld [vmem:[%s12009_s1 + $0x1218] sm:$0xff] }
 0x125   :  { %1452 = vmatprep.subr.mxu1 %v5516_v2  ;;  %1491 = vmatprep.subr.mxu0 %v5438_v3  ;;  %v5522_v2 = vld [vmem:[%s12009_s1 + $0x1208] sm:$0xff]  ;;  %v5444_v3 = vld [vmem:[%s12009_s1 + $0xf98] sm:$0xff] }
 0x126   :  { %1453 = vmatpush2.msra.mxu1 %v5515_v4  ;;  %1492 = vmatpush1.msra.mxu0 %v5437_v5  ;;  %v5518_v4 = vld [vmem:[%s12009_s1 + $0x11e8] sm:$0xff]  ;;  %v5519_v5 = vld [vmem:[%s12009_s1 + $0x11f0] sm:$0xff] }
 0x127   :  { %1454 = vmatprep.subr.mxu1 %v5511_v6  ;;  %1493 = vmatprep.subr.mxu0 %v5433_v7  ;;  %v5517_v6 = vld [vmem:[%s12009_s1 + $0x11e0] sm:$0xff]  ;;  %v5439_v7 = vld [vmem:[%s12009_s1 + $0xf70] sm:$0xff] }
 0x128   :  { %1455 = vmatpush2.msra.mxu1 %v5510_v8  ;;  %1494 = vmatpush1.msra.mxu0 %v5432_v9  ;;  %v5513_v8 = vld [vmem:[%s12009_s1 + $0x11c0] sm:$0xff]  ;;  %v5514_v9 = vld [vmem:[%s12009_s1 + $0x11c8] sm:$0xff] }
 0x129   :  { %1456 = vmatprep.subr.mxu1 %v5506_v10  ;;  %1495 = vmatprep.subr.mxu0 %v5428_v11  ;;  %v5512_v10 = vld [vmem:[%s12009_s1 + $0x11b8] sm:$0xff]  ;;  %v5434_v11 = vld [vmem:[%s12009_s1 + $0xf48] sm:$0xff] }
 0x12a   :  { %1457 = vmatpush2.msra.mxu1 %v5505_v12  ;;  %1458 = vmatprep.mubr.f32.mxu1 %v7088_v63  ;;  %v5508_v12 = vld [vmem:[%s12009_s1 + $0x1198] sm:$0xff] }
 0x12b   :  { %1496 = vmatpush1.msra.mxu0 %v5427_v13  ;;  %1459 = vmatmul.mubr.f32.vlgmr.msra.gmra.mxu1 %v8085_v14  ;;  %v5509_v13 = vld [vmem:[%s12009_s1 + $0x11a0] sm:$0xff] }
 0x12c   :  { %1497 = vmatprep.subr.mxu0 %v5583_v15  ;;  %5923 = vmatprep.subr.mxu1 %v5584_v56  ;;  %v5507_v15 = vld [vmem:[%s12009_s1 + $0x1190] sm:$0xff]  ;;  %v5429_v56 = vld [vmem:[%s12009_s1 + $0xf20] sm:$0xff] }
 0x12d   :  { %1498 = vmatpush2.msra.mxu0 %v5582_v16  ;;  %5924 = vmatpush3.msra.mxu1 %v5504_v17  ;;  %v1692_v16 = vld [vmem:[%s12011_s3 + $0x260] sm:$0xff]  ;;  %v1691_v17 = vld [vmem:[%s12011_s3 + $0x258] sm:$0xff] }
 0x12e   :  { %1499 = vmatprep.subr.mxu0 %v5578_v18  ;;  %5925 = vmatprep.subr.mxu1 %v5579_v19  ;;  %v1687_v18 = vld [vmem:[%s12011_s3 + $0x238] sm:$0xff]  ;;  %v1686_v19 = vld [vmem:[%s12011_s3 + $0x230] sm:$0xff] }
 0x12f   :  { %1500 = vmatpush2.msra.mxu0 %v5577_v20  ;;  %5926 = vmatpush3.msra.mxu1 %v5499_v21  ;;  %v1681_v20 = vld [vmem:[%s12011_s3 + $0x208] sm:$0xff]  ;;  %v1676_v21 = vld [vmem:[%s12011_s3 + $0x1e0] sm:$0xff] }
 0x130   :  { %1501 = vmatprep.subr.mxu0 %v5573_v22  ;;  %5927 = vmatprep.subr.mxu1 %v5574_v23  ;;  %v1672_v22 = vld [vmem:[%s12011_s3 + $0x1c0] sm:$0xff]  ;;  %v1671_v23 = vld [vmem:[%s12011_s3 + $0x1b8] sm:$0xff] }
 0x131   :  { %1502 = vmatpush2.msra.mxu0 %v5572_v24  ;;  %5928 = vmatpush3.msra.mxu1 %v5494_v25  ;;  %v1852_v24 = vld [vmem:[%s12011_s3 + $0x760] sm:$0xff]  ;;  %v1851_v25 = vld [vmem:[%s12011_s3 + $0x758] sm:$0xff] }
 0x132   :  { %1503 = vmatprep.subr.mxu0 %v5568_v26  ;;  %5929 = vmatprep.subr.mxu1 %v5569_v27  ;;  %v1667_v26 = vld [vmem:[%s12011_s3 + $0x198] sm:$0xff] }
 0x133   :  { %1504 = vmatpush2.msra.mxu0 %v5567_v28  ;;  %5930 = vmatpush3.msra.mxu1 %v5489_v29  ;;  %v1847_v27 = vld [vmem:[%s12011_s3 + $0x738] sm:$0xff]  ;;  %v1666_v28 = vld [vmem:[%s12011_s3 + $0x190] sm:$0xff] }
 0x134   :  { %1505 = vmatprep.subr.mxu0 %v5563_v30  ;;  %5931 = vmatprep.subr.mxu1 %v5564_v31  ;;  %v1846_v29 = vld [vmem:[%s12011_s3 + $0x730] sm:$0xff] }
 0x135   :  { %1506 = vmatpush2.msra.mxu0 %v5562_v32  ;;  %5932 = vmatpush3.msra.mxu1 %v5484_v33  ;;  %v1842_v30 = vld [vmem:[%s12011_s3 + $0x710] sm:$0xff]  ;;  %v1841_v32 = vld [vmem:[%s12011_s3 + $0x708] sm:$0xff] }
 0x136   :  { %1507 = vmatprep.subr.mxu0 %v5558_v34  ;;  %5933 = vmatprep.subr.mxu1 %v5559_v35  ;;  %v1662_v31 = vld [vmem:[%s12011_s3 + $0x170] sm:$0xff]  ;;  %v1661_v33 = vld [vmem:[%s12011_s3 + $0x168] sm:$0xff] }
 0x137   :  { %1508 = vmatpush2.msra.mxu0 %v5557_v36  ;;  %5934 = vmatpush3.msra.mxu1 %v5479_v37  ;;  %v1837_v34 = vld [vmem:[%s12011_s3 + $0x6e8] sm:$0xff]  ;;  %v1836_v36 = vld [vmem:[%s12011_s3 + $0x6e0] sm:$0xff] }
 0x138   :  { %1509 = vmatprep.subr.mxu0 %v5553_v38  ;;  %5935 = vmatprep.subr.mxu1 %v5554_v39  ;;  %v1657_v35 = vld [vmem:[%s12011_s3 + $0x148] sm:$0xff]  ;;  %v1656_v37 = vld [vmem:[%s12011_s3 + $0x140] sm:$0xff] }
 0x139   :  { %1510 = vmatpush2.msra.mxu0 %v5552_v40  ;;  %5936 = vmatpush3.msra.mxu1 %v5474_v41  ;;  %v1832_v38 = vld [vmem:[%s12011_s3 + $0x6c0] sm:$0xff]  ;;  %v1831_v40 = vld [vmem:[%s12011_s3 + $0x6b8] sm:$0xff] }
 0x13a   :  { %1511 = vmatprep.subr.mxu0 %v5548_v42  ;;  %5937 = vmatprep.subr.mxu1 %v5549_v43  ;;  %v1652_v39 = vld [vmem:[%s12011_s3 + $0x120] sm:$0xff]  ;;  %v1651_v41 = vld [vmem:[%s12011_s3 + $0x118] sm:$0xff] }
 0x13b   :  { %1512 = vmatpush2.msra.mxu0 %v5547_v44  ;;  %5938 = vmatpush3.msra.mxu1 %v5469_v45  ;;  %v1827_v42 = vld [vmem:[%s12011_s3 + $0x698] sm:$0xff]  ;;  %v1826_v44 = vld [vmem:[%s12011_s3 + $0x690] sm:$0xff] }
 0x13c   :  { %1513 = vmatprep.subr.mxu0 %v5543_v46  ;;  %5939 = vmatprep.subr.mxu1 %v5544_v47  ;;  %v1647_v43 = vld [vmem:[%s12011_s3 + $0xf8] sm:$0xff]  ;;  %v1646_v45 = vld [vmem:[%s12011_s3 + $0xf0] sm:$0xff] }
 0x13d   :  { %1514 = vmatpush2.msra.mxu0 %v5542_v48  ;;  %5940 = vmatpush3.msra.mxu1 %v5464_v49  ;;  %v1822_v46 = vld [vmem:[%s12011_s3 + $0x670] sm:$0xff]  ;;  %v1821_v48 = vld [vmem:[%s12011_s3 + $0x668] sm:$0xff] }
 0x13e   :  { %1515 = vmatprep.subr.mxu0 %v5538_v50  ;;  %5941 = vmatprep.subr.mxu1 %v5539_v51  ;;  %v1642_v47 = vld [vmem:[%s12011_s3 + $0xd0] sm:$0xff]  ;;  %v1641_v49 = vld [vmem:[%s12011_s3 + $0xc8] sm:$0xff] }
 0x13f   :  { %1516 = vmatpush2.msra.mxu0 %v5537_v52  ;;  %5942 = vmatpush3.msra.mxu1 %v5459_v53  ;;  %v1817_v50 = vld [vmem:[%s12011_s3 + $0x648] sm:$0xff]  ;;  %v1816_v52 = vld [vmem:[%s12011_s3 + $0x640] sm:$0xff] }
 0x140   :  { %1517 = vmatprep.subr.mxu0 %v5533_v54  ;;  %5943 = vmatprep.subr.mxu1 %v5534_v55  ;;  %v1637_v51 = vld [vmem:[%s12011_s3 + $0xa8] sm:$0xff]  ;;  %v1636_v53 = vld [vmem:[%s12011_s3 + $0xa0] sm:$0xff] }
 0x141   :  { %1518 = vmatpush2.msra.mxu0 %v5532_v57  ;;  %5944 = vmatpush3.msra.mxu1 %v5454_v58  ;;  %v1812_v54 = vld [vmem:[%s12011_s3 + $0x620] sm:$0xff]  ;;  %v1811_v57 = vld [vmem:[%s12011_s3 + $0x618] sm:$0xff] }
 0x142   :  { %1519 = vmatprep.subr.mxu0 %v5528_v59  ;;  %5945 = vmatprep.subr.mxu1 %v5529_v60  ;;  %v1632_v55 = vld [vmem:[%s12011_s3 + $0x80] sm:$0xff]  ;;  %v1631_v58 = vld [vmem:[%s12011_s3 + $0x78] sm:$0xff] }
 0x143   :  { %1520 = vmatpush2.msra.mxu0 %v5527_v61  ;;  %5946 = vmatpush3.msra.mxu1 %v5449_v62  ;;  %v1807_v59 = vld [vmem:[%s12011_s3 + $0x5f8] sm:$0xff]  ;;  %v1806_v61 = vld [vmem:[%s12011_s3 + $0x5f0] sm:$0xff] }
 0x144   :  { %1521 = vmatprep.subr.mxu0 %v5523_v0  ;;  %5947 = vmatprep.subr.mxu1 %v5524_v1  ;;  %v1627_v60 = vld [vmem:[%s12011_s3 + $0x58] sm:$0xff]  ;;  %v1626_v62 = vld [vmem:[%s12011_s3 + $0x50] sm:$0xff] }
 0x145   :  { %1522 = vmatpush2.msra.mxu0 %v5522_v2  ;;  %5948 = vmatpush3.msra.mxu1 %v5444_v3  ;;  %v1802_v0 = vld [vmem:[%s12011_s3 + $0x5d0] sm:$0xff]  ;;  %v1801_v2 = vld [vmem:[%s12011_s3 + $0x5c8] sm:$0xff] }
 0x146   :  { %1523 = vmatprep.subr.mxu0 %v5518_v4  ;;  %5949 = vmatprep.subr.mxu1 %v5519_v5  ;;  %v1622_v1 = vld [vmem:[%s12011_s3 + $0x30] sm:$0xff]  ;;  %v1621_v3 = vld [vmem:[%s12011_s3 + $0x28] sm:$0xff] }
 0x147   :  { %1524 = vmatpush2.msra.mxu0 %v5517_v6  ;;  %5950 = vmatpush3.msra.mxu1 %v5439_v7  ;;  %v1797_v4 = vld [vmem:[%s12011_s3 + $0x5a8] sm:$0xff]  ;;  %v1616_v6 = vld [vmem:[%s12011_s3] sm:$0xff] }
 0x148   :  { %1525 = vmatprep.subr.mxu0 %v5513_v8  ;;  %5951 = vmatprep.subr.mxu1 %v5514_v9  ;;  %v1617_v5 = vld [vmem:[%s12011_s3 + $0x8] sm:$0xff]  ;;  %v1772_v7 = vld [vmem:[%s12011_s3 + $0x4e0] sm:$0xff]  ;;  %v1771_v8 = vld [vmem:[%s12011_s3 + $0x4d8] sm:$0xff] }
 0x149   :  { %1526 = vmatpush2.msra.mxu0 %v5512_v10  ;;  %5952 = vmatpush3.msra.mxu1 %v5434_v11  ;;  %v1796_v9 = vld [vmem:[%s12011_s3 + $0x5a0] sm:$0xff]  ;;  %v1767_v10 = vld [vmem:[%s12011_s3 + $0x4b8] sm:$0xff] }
 0x14a   :  { %1527 = vmatprep.subr.mxu0 %v5508_v12  ;;  %5953 = vmatprep.subr.mxu1 %v5509_v13  ;;  %v1792_v11 = vld [vmem:[%s12011_s3 + $0x580] sm:$0xff]  ;;  %v1766_v12 = vld [vmem:[%s12011_s3 + $0x4b0] sm:$0xff]  ;;  %v1791_v13 = vld [vmem:[%s12011_s3 + $0x578] sm:$0xff] }
 0x14b   :  { %1528 = vmatpush2.msra.mxu0 %v5507_v15  ;;  %1529 = vmatprep.mubr.f32.mxu0 %v7088_v63  ;;  %v1762_v15 = vld [vmem:[%s12011_s3 + $0x490] sm:$0xff] }
 0x14c   :  { %5954 = vmatpush3.msra.mxu1 %v5429_v56  ;;  %1600 = vmatprep.mubr.f32.mxu1 %v7088_v63  ;;  %v1682_v63 = vld [vmem:[%s12011_s3 + $0x210] sm:$0xff]  ;;  %v1787_v56 = vld [vmem:[%s12011_s3 + $0x558] sm:$0xff] }
 0x14d   :  { %1530 = vmatmul.mubr.f32.vlgmr.msra.gmra.mxu0 %v8085_v14  ;;  %1601 = vmatmul.mubr.f32.vlgmr.msra.gmra.mxu1 %v8085_v14  ;;  %v1677_v14 = vld [vmem:[%s12011_s3 + $0x1e8] sm:$0xff] }
 0x14e   :  { %2007 = vmatprep.subr.mxu0 %v1692_v16  ;;  %2078 = vmatprep.subr.mxu1 %v1852_v24  ;;  %v1761_v16 = vld [vmem:[%s12011_s3 + $0x488] sm:$0xff]  ;;  %v1932_v24 = vld [vmem:[%s12011_s3 + $0x9e0] sm:$0xff] }
 0x14f   :  { %2008 = vmatpush1.msra.mxu0 %v1691_v17  ;;  %2079 = vmatpush1.msra.mxu1 %v1851_v25  ;;  %v1786_v17 = vld [vmem:[%s12011_s3 + $0x550] sm:$0xff]  ;;  %v1747_v25 = vld [vmem:[%s12011_s3 + $0x418] sm:$0xff] }
 0x150   :  { %2009 = vmatprep.subr.mxu0 %v1687_v18  ;;  %2080 = vmatprep.subr.mxu1 %v1847_v27  ;;  %v1757_v18 = vld [vmem:[%s12011_s3 + $0x468] sm:$0xff]  ;;  %v1927_v27 = vld [vmem:[%s12011_s3 + $0x9b8] sm:$0xff] }
 0x151   :  { %2010 = vmatpush1.msra.mxu0 %v1686_v19  ;;  %2081 = vmatpush1.msra.mxu1 %v1846_v29  ;;  %v1782_v19 = vld [vmem:[%s12011_s3 + $0x530] sm:$0xff] }
 0x152   :  { %2011 = vmatprep.subr.mxu0 %v1682_v63  ;;  %2082 = vmatprep.subr.mxu1 %v1842_v30  ;;  %v1756_v63 = vld [vmem:[%s12011_s3 + $0x460] sm:$0xff]  ;;  %v1926_v29 = vld [vmem:[%s12011_s3 + $0x9b0] sm:$0xff] }
 0x153   :  { %2012 = vmatpush1.msra.mxu0 %v1681_v20  ;;  %2083 = vmatpush1.msra.mxu1 %v1841_v32  ;;  %v1781_v20 = vld [vmem:[%s12011_s3 + $0x528] sm:$0xff]  ;;  %v1742_v30 = vld [vmem:[%s12011_s3 + $0x3f0] sm:$0xff] }
 0x154   :  { %2013 = vmatprep.subr.mxu0 %v1677_v14  ;;  %2084 = vmatprep.subr.mxu1 %v1837_v34  ;;  %v1752_v14 = vld [vmem:[%s12011_s3 + $0x440] sm:$0xff]  ;;  %v1741_v32 = vld [vmem:[%s12011_s3 + $0x3e8] sm:$0xff] }
 0x155   :  { %2014 = vmatpush1.msra.mxu0 %v1676_v21  ;;  %2085 = vmatpush1.msra.mxu1 %v1836_v36  ;;  %v1777_v21 = vld [vmem:[%s12011_s3 + $0x508] sm:$0xff]  ;;  %v1736_v36 = vld [vmem:[%s12011_s3 + $0x3c0] sm:$0xff] }
 0x156   :  { %2015 = vmatprep.subr.mxu0 %v1672_v22  ;;  %2086 = vmatprep.subr.mxu1 %v1832_v38  ;;  %v1776_v22 = vld [vmem:[%s12011_s3 + $0x500] sm:$0xff]  ;;  %v1737_v34 = vld [vmem:[%s12011_s3 + $0x3c8] sm:$0xff] }
 0x157   :  { %2016 = vmatpush1.msra.mxu0 %v1671_v23  ;;  %2087 = vmatpush1.msra.mxu1 %v1831_v40  ;;  %v1751_v23 = vld [vmem:[%s12011_s3 + $0x438] sm:$0xff]  ;;  %v1732_v38 = vld [vmem:[%s12011_s3 + $0x3a0] sm:$0xff] }
 0x158   :  { %2017 = vmatprep.subr.mxu0 %v1667_v26  ;;  %2088 = vmatprep.subr.mxu1 %v1827_v42  ;;  %v1931_v26 = vld [vmem:[%s12011_s3 + $0x9d8] sm:$0xff] }
 0x159   :  { %2018 = vmatpush1.msra.mxu0 %v1666_v28  ;;  %2089 = vmatpush1.msra.mxu1 %v1826_v44  ;;  %v1746_v28 = vld [vmem:[%s12011_s3 + $0x410] sm:$0xff]  ;;  %v1731_v40 = vld [vmem:[%s12011_s3 + $0x398] sm:$0xff] }
 0x15a   :  { %2019 = vmatprep.subr.mxu0 %v1662_v31  ;;  %2090 = vmatprep.subr.mxu1 %v1822_v46  ;;  %v1922_v31 = vld [vmem:[%s12011_s3 + $0x990] sm:$0xff]  ;;  %v1727_v42 = vld [vmem:[%s12011_s3 + $0x378] sm:$0xff] }
 0x15b   :  { %2020 = vmatpush1.msra.mxu0 %v1661_v33  ;;  %2091 = vmatpush1.msra.mxu1 %v1821_v48  ;;  %v1921_v33 = vld [vmem:[%s12011_s3 + $0x988] sm:$0xff]  ;;  %v1726_v44 = vld [vmem:[%s12011_s3 + $0x370] sm:$0xff] }
 0x15c   :  { %2021 = vmatprep.subr.mxu0 %v1657_v35  ;;  %2092 = vmatprep.subr.mxu1 %v1817_v50  ;;  %v1917_v35 = vld [vmem:[%s12011_s3 + $0x968] sm:$0xff]  ;;  %v1722_v46 = vld [vmem:[%s12011_s3 + $0x350] sm:$0xff] }
 0x15d   :  { %2022 = vmatpush1.msra.mxu0 %v1656_v37  ;;  %2093 = vmatpush1.msra.mxu1 %v1816_v52  ;;  %v1916_v37 = vld [vmem:[%s12011_s3 + $0x960] sm:$0xff]  ;;  %v1721_v48 = vld [vmem:[%s12011_s3 + $0x348] sm:$0xff] }
 0x15e   :  { %2023 = vmatprep.subr.mxu0 %v1652_v39  ;;  %2094 = vmatprep.subr.mxu1 %v1812_v54  ;;  %v1912_v39 = vld [vmem:[%s12011_s3 + $0x940] sm:$0xff]  ;;  %v1717_v50 = vld [vmem:[%s12011_s3 + $0x328] sm:$0xff] }
 0x15f   :  { %2024 = vmatpush1.msra.mxu0 %v1651_v41  ;;  %2095 = vmatpush1.msra.mxu1 %v1811_v57  ;;  %v1911_v41 = vld [vmem:[%s12011_s3 + $0x938] sm:$0xff]  ;;  %v1716_v52 = vld [vmem:[%s12011_s3 + $0x320] sm:$0xff] }
 0x160   :  { %2025 = vmatprep.subr.mxu0 %v1647_v43  ;;  %2096 = vmatprep.subr.mxu1 %v1807_v59  ;;  %v1907_v43 = vld [vmem:[%s12011_s3 + $0x918] sm:$0xff]  ;;  %v1712_v54 = vld [vmem:[%s12011_s3 + $0x300] sm:$0xff] }
 0x161   :  { %2026 = vmatpush1.msra.mxu0 %v1646_v45  ;;  %2097 = vmatpush1.msra.mxu1 %v1806_v61  ;;  %v1906_v45 = vld [vmem:[%s12011_s3 + $0x910] sm:$0xff]  ;;  %v1711_v57 = vld [vmem:[%s12011_s3 + $0x2f8] sm:$0xff] }
 0x162   :  { %2027 = vmatprep.subr.mxu0 %v1642_v47  ;;  %2098 = vmatprep.subr.mxu1 %v1802_v0  ;;  %v1902_v47 = vld [vmem:[%s12011_s3 + $0x8f0] sm:$0xff]  ;;  %v1707_v59 = vld [vmem:[%s12011_s3 + $0x2d8] sm:$0xff] }
 0x163   :  { %2028 = vmatpush1.msra.mxu0 %v1641_v49  ;;  %2099 = vmatpush1.msra.mxu1 %v1801_v2  ;;  %v1901_v49 = vld [vmem:[%s12011_s3 + $0x8e8] sm:$0xff]  ;;  %v1706_v61 = vld [vmem:[%s12011_s3 + $0x2d0] sm:$0xff] }
 0x164   :  { %2029 = vmatprep.subr.mxu0 %v1637_v51  ;;  %2100 = vmatprep.subr.mxu1 %v1797_v4  ;;  %v1897_v51 = vld [vmem:[%s12011_s3 + $0x8c8] sm:$0xff]  ;;  %v1702_v0 = vld [vmem:[%s12011_s3 + $0x2b0] sm:$0xff] }
 0x165   :  { %2030 = vmatpush1.msra.mxu0 %v1636_v53  ;;  %2101 = vmatpush1.msra.mxu1 %v1796_v9  ;;  %v1896_v53 = vld [vmem:[%s12011_s3 + $0x8c0] sm:$0xff]  ;;  %v1701_v2 = vld [vmem:[%s12011_s3 + $0x2a8] sm:$0xff] }
 0x166   :  { %2031 = vmatprep.subr.mxu0 %v1632_v55  ;;  %2102 = vmatprep.subr.mxu1 %v1792_v11  ;;  %v1892_v55 = vld [vmem:[%s12011_s3 + $0x8a0] sm:$0xff]  ;;  %v1697_v4 = vld [vmem:[%s12011_s3 + $0x288] sm:$0xff]  ;;  %v1867_v11 = vld [vmem:[%s12011_s3 + $0x7d8] sm:$0xff] }
 0x167   :  { %2032 = vmatpush1.msra.mxu0 %v1631_v58  ;;  %2103 = vmatpush1.msra.mxu1 %v1791_v13  ;;  %v1891_v58 = vld [vmem:[%s12011_s3 + $0x898] sm:$0xff]  ;;  %v1872_v9 = vld [vmem:[%s12011_s3 + $0x800] sm:$0xff]  ;;  %v1862_v13 = vld [vmem:[%s12011_s3 + $0x7b0] sm:$0xff] }
 0x168   :  { %2033 = vmatprep.subr.mxu0 %v1627_v60  ;;  %2104 = vmatprep.subr.mxu1 %v1787_v56  ;;  %v1887_v60 = vld [vmem:[%s12011_s3 + $0x878] sm:$0xff]  ;;  %v1857_v56 = vld [vmem:[%s12011_s3 + $0x788] sm:$0xff] }
 0x169   :  { %2034 = vmatpush1.msra.mxu0 %v1626_v62  ;;  %2105 = vmatpush1.msra.mxu1 %v1786_v17  ;;  %v1886_v62 = vld [vmem:[%s12011_s3 + $0x870] sm:$0xff] }
 0x16a   :  { %2035 = vmatprep.subr.mxu0 %v1622_v1  ;;  %2106 = vmatprep.subr.mxu1 %v1782_v19  ;;  %v1882_v1 = vld [vmem:[%s12011_s3 + $0x850] sm:$0xff] }
 0x16b   :  { %2036 = vmatpush1.msra.mxu0 %v1621_v3  ;;  %2107 = vmatpush1.msra.mxu1 %v1781_v20  ;;  %v1881_v3 = vld [vmem:[%s12011_s3 + $0x848] sm:$0xff]  ;;  %v1694_v17 = vld [vmem:[%s12011_s3 + $0x270] sm:$0xff] }
 0x16c   :  { %2037 = vmatprep.subr.mxu0 %v1617_v5  ;;  %2108 = vmatprep.subr.mxu1 %v1777_v21  ;;  %v1877_v5 = vld [vmem:[%s12011_s3 + $0x828] sm:$0xff]  ;;  %v214_v21 = vlaneseq }
 0x16d   :  { %2038 = vmatpush1.msra.mxu0 %v1616_v6  ;;  %2109 = vmatpush1.msra.mxu1 %v1776_v22  ;;  %v1696_v6 = vld [vmem:[%s12011_s3 + $0x280] sm:$0xff] }
 0x16e   :  { %2039 = vmatprep.subr.mxu0 %v1772_v7  ;;  %2110 = vmatprep.subr.mxu1 %v1932_v24  ;;  %v1972_v7 = vld [vmem:[%s12011_s3 + $0xb20] sm:$0xff] }
 0x16f   :  { %2040 = vmatpush2.msra.mxu0 %v1771_v8  ;;  %2111 = vmatpush2.msra.mxu1 %v1931_v26  ;;  %v1876_v8 = vld [vmem:[%s12011_s3 + $0x820] sm:$0xff] }
 0x170   :  { %2041 = vmatprep.subr.mxu0 %v1767_v10  ;;  %2112 = vmatprep.subr.mxu1 %v1927_v27  ;;  %v1871_v10 = vld [vmem:[%s12011_s3 + $0x7f8] sm:$0xff] }
 0x171   :  { %2042 = vmatpush2.msra.mxu0 %v1766_v12  ;;  %2113 = vmatpush2.msra.mxu1 %v1926_v29  ;;  %v1866_v12 = vld [vmem:[%s12011_s3 + $0x7d0] sm:$0xff] }
 0x172   :  { %2043 = vmatprep.subr.mxu0 %v1762_v15  ;;  %2114 = vmatprep.subr.mxu1 %v1922_v31  ;;  %v1861_v15 = vld [vmem:[%s12011_s3 + $0x7a8] sm:$0xff] }
 0x173   :  { %2044 = vmatpush2.msra.mxu0 %v1761_v16  ;;  %2115 = vmatpush2.msra.mxu1 %v1921_v33  ;;  %v1856_v16 = vld [vmem:[%s12011_s3 + $0x780] sm:$0xff] }
 0x174   :  { %2045 = vmatprep.subr.mxu0 %v1757_v18  ;;  %2116 = vmatprep.subr.mxu1 %v1917_v35  ;;  %v316_v18 = vpop.f32.mrf.mxu0 }
 0x175   :  { %2046 = vmatpush2.msra.mxu0 %v1756_v63  ;;  %2117 = vmatpush2.msra.mxu1 %v1916_v37  ;;  %v9051_v63 = vpop.f32.mrf.mxu1 }
 0x176   :  { %2047 = vmatprep.subr.mxu0 %v1752_v14  ;;  %2118 = vmatprep.subr.mxu1 %v1912_v39  ;;  %v318_v19 = vpop.f32.mrf.mxu0 }
 0x177   :  { %2048 = vmatpush2.msra.mxu0 %v1751_v23  ;;  %2119 = vmatpush2.msra.mxu1 %v1911_v41  ;;  %v9055_v14 = vpop.f32.mrf.mxu1 }
 0x178   :  { %2049 = vmatprep.subr.mxu0 %v1747_v25  ;;  %2120 = vmatprep.subr.mxu1 %v1907_v43  ;;  %v9053_v20 = vpop.f32.mrf.mxu0  ;;  %v9061_v25 = vshrl.u32 %v214_v21, 7 }
 0x179   :  { %2050 = vmatpush2.msra.mxu0 %v1746_v28  ;;  %2121 = vmatpush2.msra.mxu1 %v1906_v45  ;;  %v694_v23 = vpop.f32.mrf.mxu1 }
 0x17a   :  { %2051 = vmatprep.subr.mxu0 %v1742_v30  ;;  %2122 = vmatprep.subr.mxu1 %v1902_v47  ;;  %v9057_v22 = vpop.f32.mrf.mxu0  ;;  %v9068_v29 = vsub.s32 1, %v9061_v25  ;;  %v9073_v30 = vld [vmem:[%s12010_s2] sm:$0x1f]  ;;  %v9076_v31 = vsub.s32 0, %v9061_v25  ;;  %v9147_v21 = vsub.s32 2, %v9061_v25 }
 0x17b   :  { %2052 = vmatpush2.msra.mxu0 %v1741_v32  ;;  %2123 = vmatpush2.msra.mxu1 %v1901_v49  ;;  %v696_v26 = vpop.f32.mrf.mxu1 }
 0x17c   :  { %2053 = vmatprep.subr.mxu0 %v1737_v34  ;;  %2124 = vmatprep.subr.mxu1 %v1897_v51  ;;  %v9059_v24 = vpop.f32.mrf.mxu0  ;;  %v221_v34 = vrot.slane %v9073_v30, %v9068_v29  ;;  %v217_v35 = vrot.slane %v9073_v30, %v9076_v31 }
 0x17d   :  { %2054 = vmatpush2.msra.mxu0 %v1736_v36  ;;  %2125 = vmatpush2.msra.mxu1 %v1896_v53  ;;  %v9063_v27 = vpop.f32.mrf.mxu1 }
 0x17e   :  { %2055 = vmatprep.subr.mxu0 %v1732_v38  ;;  %2126 = vmatprep.subr.mxu1 %v1892_v55  ;;  %v9065_v28 = vpop.f32.mrf.mxu0  ;;  %v697_v38 = vadd.f32 %v696_v26, %v221_v34  ;;  %v695_v39 = vadd.f32 %v694_v23, %v217_v35  ;;  %v9150_v23 = vsub.s32 4, %v9061_v25 }
 0x17f   :  { %2056 = vmatpush2.msra.mxu0 %v1731_v40  ;;  %2127 = vmatpush2.msra.mxu1 %v1891_v58  ;;  %v9078_v33 = vpop.f32.mrf.mxu1  ;;  %v319_v40 = vadd.f32 %v318_v19, %v221_v34  ;;  %v1854_v19 = vld [vmem:[%s12011_s3 + $0x770] sm:$0xff] }
 0x180   :  { %2057 = vmatprep.subr.mxu0 %v1727_v42  ;;  %2128 = vmatprep.subr.mxu1 %v1887_v60  ;;  %v317_v42 = vadd.f32 %v316_v18, %v217_v35  ;;  %v841_v45 = vmax.f32 %v697_v38, 0.0  ;;  %v9141_v18 = vsub.s32 3, %v9061_v25  ;;  %v5852_v25 = vadd.f32 %v9057_v22, %v9053_v20 }
 0x181   :  { %2058 = vmatpush2.msra.mxu0 %v1726_v44  ;;  %2129 = vmatpush2.msra.mxu1 %v1886_v62 }
 0x182   :  { %2059 = vmatprep.subr.mxu0 %v1722_v46  ;;  %2130 = vmatprep.subr.mxu1 %v1882_v1  ;;  %v840_v46 = vmax.f32 %v695_v39, 0.0  ;;  %v462_v51 = vmax.f32 %v317_v42, 0.0  ;;  %v1971_v1 = vld [vmem:[%s12011_s3 + $0xb18] sm:$0xff] }
 0x183   :  { %2060 = vmatpush2.msra.mxu0 %v1721_v48  ;;  %2131 = vmatpush2.msra.mxu1 %v1881_v3  ;;  %v463_v48 = vmax.f32 %v319_v40, 0.0  ;;  %v1966_v3 = vld [vmem:[%s12011_s3 + $0xaf0] sm:$0xff] }
 0x184   :  { %2061 = vmatprep.subr.mxu0 %v1717_v50  ;;  %2132 = vmatprep.subr.mxu1 %v1877_v5  ;;  %v6620_v5 = vmov 0.0  }
 0x185   :  { %2062 = vmatpush2.msra.mxu0 %v1716_v52  ;;  %2133 = vmatpush2.msra.mxu1 %v1876_v8  ;;  %v1956_v8 = vld [vmem:[%s12011_s3 + $0xaa0] sm:$0xff] }
 0x186   :  { %2063 = vmatprep.subr.mxu0 %v1712_v54  ;;  %2134 = vmatprep.subr.mxu1 %v1872_v9  ;;  %v846_v54 = vmax.f32 %v463_v48, %v841_v45  ;;  %v1952_v9 = vld [vmem:[%s12011_s3 + $0xa80] sm:$0xff] }
 0x187   :  { %2064 = vmatpush2.msra.mxu0 %v1711_v57  ;;  %2135 = vmatpush2.msra.mxu1 %v1871_v10  ;;  %v845_v57 = vmax.f32 %v462_v51, %v840_v46  ;;  %v1951_v10 = vld [vmem:[%s12011_s3 + $0xa78] sm:$0xff] }
 0x188   :  { %2065 = vmatprep.subr.mxu0 %v1707_v59  ;;  %2136 = vmatprep.subr.mxu1 %v1867_v11  ;;  %v1947_v11 = vld [vmem:[%s12011_s3 + $0xa58] sm:$0xff] }
 0x189   :  { %2066 = vmatpush2.msra.mxu0 %v1706_v61  ;;  %2137 = vmatpush2.msra.mxu1 %v1866_v12  ;;  %v1946_v12 = vld [vmem:[%s12011_s3 + $0xa50] sm:$0xff] }
 0x18a   :  { %2067 = vmatprep.subr.mxu0 %v1702_v0  ;;  %2138 = vmatprep.subr.mxu1 %v1862_v13  ;;  %v1942_v13 = vld [vmem:[%s12011_s3 + $0xa30] sm:$0xff] }
 0x18b   :  { %2068 = vmatpush2.msra.mxu0 %v1701_v2  ;;  %2139 = vmatpush2.msra.mxu1 %v1861_v15  ;;  %v1967_v2 = vld [vmem:[%s12011_s3 + $0xaf8] sm:$0xff]  ;;  %v1941_v15 = vld [vmem:[%s12011_s3 + $0xa28] sm:$0xff] }
 0x18c   :  { %2069 = vmatprep.subr.mxu0 %v1697_v4  ;;  %2140 = vmatprep.subr.mxu1 %v1857_v56  ;;  %v1962_v4 = vld [vmem:[%s12011_s3 + $0xad0] sm:$0xff]  ;;  %v1937_v56 = vld [vmem:[%s12011_s3 + $0xa08] sm:$0xff] }
 0x18d   :  { %2070 = vmatpush2.msra.mxu0 %v1696_v6  ;;  %2141 = vmatpush2.msra.mxu1 %v1856_v16  ;;  %v1961_v6 = vld [vmem:[%s12011_s3 + $0xac8] sm:$0xff] }
 0x18e   :  { %2165 = vmatprep.subr.mxu0 %v1972_v7  ;;  %2220 = vmatprep.subr.mxu1 %v1694_v17  ;;  %v1957_v7 = vld [vmem:[%s12011_s3 + $0xaa8] sm:$0xff]  ;;  %v1936_v17 = vld [vmem:[%s12011_s3 + $0xa00] sm:$0xff] }
 0x1a9   :  { %v1077_v32 = vpop.f32.mrf.mxu0  ;;  %v9084_v36 = vpop.f32.mrf.mxu1 }
 0x1aa   :  { %v1078_v43 = vadd.f32 %v1077_v32, %v217_v35  ;;  %v229_v32 = vrot.slane %v9073_v30, %v9141_v18 }
 0x1ab   :  { %v1079_v37 = vpop.f32.mrf.mxu0  ;;  %v9086_v44 = vpop.f32.mrf.mxu1 }
 0x1ac   :  { %v1080_v41 = vadd.f32 %v1079_v37, %v221_v34  ;;  %v1223_v52 = vmax.f32 %v1078_v43, 0.0  ;;  %v233_v37 = vrot.slane %v9073_v30, %v9150_v23  ;;  %v768_v38 = vadd.f32 %v9065_v28, %v229_v32 }
 0x1ad   :  { %v1151_v43 = vadd.f32 %v9086_v44, %v229_v32 }
 0x1ae   :  { %v1224_v49 = vmax.f32 %v1080_v41, 0.0  ;;  %v1228_v61 = vmax.f32 %v845_v57, %v1223_v52  ;;  %v390_v41 = vadd.f32 %v9055_v14, %v229_v32  ;;  %v843_v46 = vmax.f32 %v768_v38, 0.0  ;;  %v1669_v38 = vld [vmem:[%s12011_s3 + $0x1a8] sm:$0xff] }
 0x1b0   :  { %v1229_v59 = vmax.f32 %v846_v54, %v1224_v49  ;;  %v465_v22 = vmax.f32 %v390_v41, 0.0  ;;  %v1226_v49 = vmax.f32 %v1151_v43, 0.0  ;;  %v1829_v41 = vld [vmem:[%s12011_s3 + $0x6a8] sm:$0xff]  ;;  %v1828_v43 = vld [vmem:[%s12011_s3 + $0x6a0] sm:$0xff] }
 0x1b2   :  { %v848_v44 = vmax.f32 %v465_v22, %v843_v46  ;;  %v1823_v46 = vld [vmem:[%s12011_s3 + $0x678] sm:$0xff]  ;;  %v1653_v22 = vld [vmem:[%s12011_s3 + $0x128] sm:$0xff] }
 0x1ca   :  { %v5920_v16 = vpop.f32.mrf.mxu0 }
 0x1cc   :  { %v5921_v26 = vpop.f32.mrf.mxu0 }
 0x1cd   :  { %v5922_v39 = vadd.f32 %v5921_v26, %v5920_v16  ;;  %v1844_v16 = vld [vmem:[%s12011_s3 + $0x720] sm:$0xff]  ;;  %v1678_v26 = vld [vmem:[%s12011_s3 + $0x1f0] sm:$0xff] }
 0x1eb   :  { %v1460_v47 = vpop.f32.mrf.mxu1 }
 0x1ec   :  { %v1461_v50 = vadd.f32 %v1460_v47, %v217_v35  ;;  %v225_v35 = vrot.slane %v9073_v30, %v9147_v21  ;;  %v1220_v30 = vadd.f32 %v5922_v39, %v233_v37  ;;  %v1833_v39 = vld [vmem:[%s12011_s3 + $0x6c8] sm:$0xff] }
 0x1ed   :  { %v1462_v53 = vpop.f32.mrf.mxu1 }
 0x1ee   :  { %v1463_v55 = vadd.f32 %v1462_v53, %v221_v34  ;;  %v1606_v58 = vmax.f32 %v1461_v50, 0.0  ;;  %v5887_v34 = vadd.f32 %v9078_v33, %v9063_v27  ;;  %v766_v40 = vadd.f32 %v9059_v24, %v225_v35 }
 0x1ef   :  { %v388_v27 = vadd.f32 %v9051_v63, %v225_v35  ;;  %v459_v33 = vadd.f32 %v5852_v25, %v233_v37  ;;  %v1149_v45 = vadd.f32 %v9084_v36, %v225_v35  ;;  %v1227_v54 = vmax.f32 %v1220_v30, 0.0  ;;  %v1834_v25 = vld [vmem:[%s12011_s3 + $0x6d0] sm:$0xff] }
 0x1f0   :  { %v1607_v60 = vmax.f32 %v1463_v55, 0.0  ;;  %v9090_v0 = vmax.f32 %v1228_v61, %v1606_v58  ;;  %v837_v42 = vadd.f32 %v5887_v34, %v233_v37  ;;  %v842_v47 = vmax.f32 %v766_v40, 0.0  ;;  %v1674_v34 = vld [vmem:[%s12011_s3 + $0x1d0] sm:$0xff]  ;;  %v1668_v40 = vld [vmem:[%s12011_s3 + $0x1a0] sm:$0xff] }
 0x1f1   :  { %v464_v24 = vmax.f32 %v388_v27, 0.0  ;;  %v466_v51 = vmax.f32 %v459_v33, 0.0  ;;  %v1225_v14 = vmax.f32 %v1149_v45, 0.0  ;;  %v1663_v27 = vld [vmem:[%s12011_s3 + $0x178] sm:$0xff]  ;;  %v1824_v33 = vld [vmem:[%s12011_s3 + $0x680] sm:$0xff]  ;;  %v1658_v30 = vld [vmem:[%s12011_s3 + $0x150] sm:$0xff] }
 0x1f2   :  { %v9088_v62 = vmax.f32 %v1229_v59, %v1607_v60  ;;  %v844_v28 = vmax.f32 %v837_v42, 0.0  ;;  %v1231_v59 = vmax.f32 %v848_v44, %v1226_v49  ;;  %v1664_v42 = vld [vmem:[%s12011_s3 + $0x180] sm:$0xff]  ;;  %v1659_v45 = vld [vmem:[%s12011_s3 + $0x158] sm:$0xff]  ;;  %v1649_v49 = vld [vmem:[%s12011_s3 + $0x108] sm:$0xff] }
 0x1f3   :  { %v847_v57 = vmax.f32 %v464_v24, %v842_v47  ;;  %v1819_v47 = vld [vmem:[%s12011_s3 + $0x658] sm:$0xff]  ;;  %v1648_v24 = vld [vmem:[%s12011_s3 + $0x100] sm:$0xff] }
 0x1f4   :  { %2071 = vmatprep.mubr.f32.mxu0 %v9088_v62  ;;  %v849_v58 = vmax.f32 %v466_v51, %v844_v28  ;;  %v1814_v28 = vld [vmem:[%s12011_s3 + $0x630] sm:$0xff]  ;;  %v1809_v51 = vld [vmem:[%s12011_s3 + $0x608] sm:$0xff]  ;;  %v1804_v44 = vld [vmem:[%s12011_s3 + $0x5e0] sm:$0xff] }
 0x1f5   :  { %2072 = vmatmul.mubr.f32.vlgmr.msra.gmra.mxu0 %v9090_v0 }
 0x1f6   :  { %2166 = vmatpush1.msra.mxu0 %v1971_v1  ;;  %2213 = vmatprep.mubr.f32.mxu0 %v6620_v5  ;;  %v1230_v1 = vmax.f32 %v847_v57, %v1225_v14  ;;  %v1644_v14 = vld [vmem:[%s12011_s3 + $0xe0] sm:$0xff]  ;;  %v1799_v57 = vld [vmem:[%s12011_s3 + $0x5b8] sm:$0xff] }
 0x1f7   :  { %2167 = vmatprep.subr.mxu0 %v1967_v2  ;;  %v1232_v2 = vmax.f32 %v849_v58, %v1227_v54  ;;  %v1639_v54 = vld [vmem:[%s12011_s3 + $0xb8] sm:$0xff]  ;;  %v1798_v58 = vld [vmem:[%s12011_s3 + $0x5b0] sm:$0xff] }
 0x1f8   :  { %2168 = vmatpush1.msra.mxu0 %v1966_v3 }
 0x1f9   :  { %2169 = vmatprep.subr.mxu0 %v1962_v4 }
 0x1fa   :  { %2170 = vmatpush1.msra.mxu0 %v1961_v6 }
 0x1fb   :  { %2171 = vmatprep.subr.mxu0 %v1957_v7  ;;  %v1693_v7 = vld [vmem:[%s12011_s3 + $0x268] sm:$0xff] }
 0x1fc   :  { %2172 = vmatpush1.msra.mxu0 %v1956_v8 }
 0x1fd   :  { %2173 = vmatprep.subr.mxu0 %v1952_v9  ;;  %v1689_v9 = vld [vmem:[%s12011_s3 + $0x248] sm:$0xff] }
 0x1fe   :  { %2174 = vmatpush1.msra.mxu0 %v1951_v10  ;;  %v1853_v10 = vld [vmem:[%s12011_s3 + $0x768] sm:$0xff] }
 0x1ff   :  { %2175 = vmatprep.subr.mxu0 %v1947_v11  ;;  %v1688_v11 = vld [vmem:[%s12011_s3 + $0x240] sm:$0xff] }
 0x200   :  { %2176 = vmatpush1.msra.mxu0 %v1946_v12  ;;  %v1849_v12 = vld [vmem:[%s12011_s3 + $0x748] sm:$0xff] }
 0x201   :  { %2177 = vmatprep.subr.mxu0 %v1942_v13  ;;  %v1684_v13 = vld [vmem:[%s12011_s3 + $0x220] sm:$0xff] }
 0x202   :  { %2178 = vmatpush1.msra.mxu0 %v1941_v15  ;;  %v1848_v15 = vld [vmem:[%s12011_s3 + $0x740] sm:$0xff] }
 0x203   :  { %2179 = vmatprep.subr.mxu0 %v1937_v56  ;;  %v1683_v56 = vld [vmem:[%s12011_s3 + $0x218] sm:$0xff] }
 0x204   :  { %2180 = vmatpush1.msra.mxu0 %v1936_v17  ;;  %v1679_v17 = vld [vmem:[%s12011_s3 + $0x1f8] sm:$0xff] }
 0x205   :  { %2291 = vmatprep.subr.mxu0 %v1854_v19  ;;  %v1843_v19 = vld [vmem:[%s12011_s3 + $0x718] sm:$0xff] }
 0x20d   :  { %v1531_v48 = vpop.f32.mrf.mxu0  ;;  %v5955_v20 = vpop.f32.mrf.mxu1 }
 0x20e   :  { %v1532_v50 = vadd.f32 %v1531_v48, %v225_v35  ;;  %v1838_v35 = vld [vmem:[%s12011_s3 + $0x6f0] sm:$0xff] }
 0x20f   :  { %v1533_v52 = vpop.f32.mrf.mxu0  ;;  %v5956_v53 = vpop.f32.mrf.mxu1  ;;  %v1654_v48 = vld [vmem:[%s12011_s3 + $0x130] sm:$0xff] }
 0x210   :  { %v1534_v63 = vadd.f32 %v1533_v52, %v229_v32  ;;  %v5957_v55 = vadd.f32 %v5956_v53, %v5955_v20  ;;  %v1608_v36 = vmax.f32 %v1532_v50, 0.0  ;;  %v1839_v32 = vld [vmem:[%s12011_s3 + $0x6f8] sm:$0xff]  ;;  %v1818_v20 = vld [vmem:[%s12011_s3 + $0x650] sm:$0xff]  ;;  %v1813_v50 = vld [vmem:[%s12011_s3 + $0x628] sm:$0xff] }
 0x211   :  { %v1808_v52 = vld [vmem:[%s12011_s3 + $0x600] sm:$0xff]  ;;  %v1643_v53 = vld [vmem:[%s12011_s3 + $0xd8] sm:$0xff] }
 0x212   :  { %v1609_v60 = vmax.f32 %v1534_v63, 0.0  ;;  %v1603_v61 = vadd.f32 %v5957_v55, %v233_v37  ;;  %v9170_v6 = vmax.f32 %v1230_v1, %v1608_v36  ;;  %v1673_v37 = vld [vmem:[%s12011_s3 + $0x1c8] sm:$0xff]  ;;  %v1803_v63 = vld [vmem:[%s12011_s3 + $0x5d8] sm:$0xff]  ;;  %v1638_v55 = vld [vmem:[%s12011_s3 + $0xb0] sm:$0xff] }
 0x213   :  { %v1634_v36 = vld [vmem:[%s12011_s3 + $0x90] sm:$0xff]  ;;  %v1793_v1 = vld [vmem:[%s12011_s3 + $0x588] sm:$0xff] }
 0x214   :  { %v9168_v3 = vmax.f32 %v1231_v59, %v1609_v60  ;;  %v1610_v4 = vmax.f32 %v1603_v61, 0.0  ;;  %v1633_v59 = vld [vmem:[%s12011_s3 + $0x88] sm:$0xff]  ;;  %v1794_v60 = vld [vmem:[%s12011_s3 + $0x590] sm:$0xff] }
 0x215   :  { %v1629_v61 = vld [vmem:[%s12011_s3 + $0x68] sm:$0xff] }
 0x216   :  { %v9175_v8 = vmax.f32 %v1232_v2, %v1610_v4  ;;  %2142 = vmatprep.mubr.f32.mxu1 %v9168_v3  ;;  %v1628_v2 = vld [vmem:[%s12011_s3 + $0x60] sm:$0xff]  ;;  %v1789_v4 = vld [vmem:[%s12011_s3 + $0x568] sm:$0xff] }
 0x217   :  { %2143 = vmatmul.mubr.f32.vlgmr.msra.gmra.mxu1 %v9170_v6 }
 0x218   :  { %2221 = vmatpush1.msra.mxu1 %v1693_v7  ;;  %5585 = vmatmul.mubr.msk.f32.vlgmr.msra.gmra.mxu0 %vm2003_vm0, %v9175_v8  ;;  %v1624_v7 = vld [vmem:[%s12011_s3 + $0x40] sm:$0xff] }
 0x219   :  { %2222 = vmatprep.subr.mxu1 %v1689_v9  ;;  %2284 = vmatprep.mubr.f32.mxu1 %v9088_v62  ;;  %v1788_v9 = vld [vmem:[%s12011_s3 + $0x560] sm:$0xff] }
 0x21a   :  { %2292 = vmatpush1.msra.mxu0 %v1853_v10  ;;  %2223 = vmatpush1.msra.mxu1 %v1688_v11  ;;  %v1623_v10 = vld [vmem:[%s12011_s3 + $0x38] sm:$0xff]  ;;  %v1784_v11 = vld [vmem:[%s12011_s3 + $0x540] sm:$0xff] }
 0x21b   :  { %2293 = vmatprep.subr.mxu0 %v1849_v12  ;;  %2355 = vmatprep.mubr.f32.mxu0 %v9168_v3  ;;  %v1619_v12 = vld [vmem:[%s12011_s3 + $0x18] sm:$0xff] }
 0x21c   :  { %2224 = vmatprep.subr.mxu1 %v1684_v13  ;;  %2294 = vmatpush1.msra.mxu0 %v1848_v15  ;;  %v1783_v13 = vld [vmem:[%s12011_s3 + $0x538] sm:$0xff]  ;;  %v1618_v15 = vld [vmem:[%s12011_s3 + $0x10] sm:$0xff] }
 0x21d   :  { %2225 = vmatpush1.msra.mxu1 %v1683_v56  ;;  %2295 = vmatprep.subr.mxu0 %v1844_v16  ;;  %v1779_v56 = vld [vmem:[%s12011_s3 + $0x518] sm:$0xff]  ;;  %v1774_v16 = vld [vmem:[%s12011_s3 + $0x4f0] sm:$0xff] }
 0x21e   :  { %2226 = vmatprep.subr.mxu1 %v1679_v17  ;;  %2296 = vmatpush1.msra.mxu0 %v1843_v19  ;;  %v1778_v17 = vld [vmem:[%s12011_s3 + $0x510] sm:$0xff]  ;;  %v1773_v19 = vld [vmem:[%s12011_s3 + $0x4e8] sm:$0xff] }
 0x21f   :  { %2227 = vmatpush1.msra.mxu1 %v1678_v26  ;;  %2297 = vmatprep.subr.mxu0 %v1839_v32  ;;  %v1934_v26 = vld [vmem:[%s12011_s3 + $0x9f0] sm:$0xff]  ;;  %v1769_v32 = vld [vmem:[%s12011_s3 + $0x4c8] sm:$0xff] }
 0x220   :  { %2228 = vmatprep.subr.mxu1 %v1674_v34  ;;  %2298 = vmatpush1.msra.mxu0 %v1838_v35  ;;  %v1933_v34 = vld [vmem:[%s12011_s3 + $0x9e8] sm:$0xff]  ;;  %v1768_v35 = vld [vmem:[%s12011_s3 + $0x4c0] sm:$0xff] }
 0x221   :  { %2229 = vmatpush1.msra.mxu1 %v1673_v37  ;;  %2299 = vmatprep.subr.mxu0 %v1834_v25  ;;  %v1929_v37 = vld [vmem:[%s12011_s3 + $0x9c8] sm:$0xff]  ;;  %v1764_v25 = vld [vmem:[%s12011_s3 + $0x4a0] sm:$0xff] }
 0x222   :  { %2230 = vmatprep.subr.mxu1 %v1669_v38  ;;  %2300 = vmatpush1.msra.mxu0 %v1833_v39  ;;  %v1928_v38 = vld [vmem:[%s12011_s3 + $0x9c0] sm:$0xff]  ;;  %v1763_v39 = vld [vmem:[%s12011_s3 + $0x498] sm:$0xff] }
 0x223   :  { %2231 = vmatpush1.msra.mxu1 %v1668_v40  ;;  %2301 = vmatprep.subr.mxu0 %v1829_v41  ;;  %v1924_v40 = vld [vmem:[%s12011_s3 + $0x9a0] sm:$0xff]  ;;  %v1759_v41 = vld [vmem:[%s12011_s3 + $0x478] sm:$0xff] }
 0x224   :  { %2232 = vmatprep.subr.mxu1 %v1664_v42  ;;  %2302 = vmatpush1.msra.mxu0 %v1828_v43  ;;  %v1923_v42 = vld [vmem:[%s12011_s3 + $0x998] sm:$0xff]  ;;  %v1758_v43 = vld [vmem:[%s12011_s3 + $0x470] sm:$0xff] }
 0x225   :  { %2233 = vmatpush1.msra.mxu1 %v1663_v27  ;;  %2303 = vmatprep.subr.mxu0 %v1824_v33  ;;  %v1919_v27 = vld [vmem:[%s12011_s3 + $0x978] sm:$0xff]  ;;  %v1754_v33 = vld [vmem:[%s12011_s3 + $0x450] sm:$0xff] }
 0x226   :  { %2234 = vmatprep.subr.mxu1 %v1659_v45  ;;  %2304 = vmatpush1.msra.mxu0 %v1823_v46  ;;  %v1918_v45 = vld [vmem:[%s12011_s3 + $0x970] sm:$0xff]  ;;  %v1753_v46 = vld [vmem:[%s12011_s3 + $0x448] sm:$0xff] }
 0x227   :  { %2235 = vmatpush1.msra.mxu1 %v1658_v30  ;;  %2305 = vmatprep.subr.mxu0 %v1819_v47  ;;  %v1914_v30 = vld [vmem:[%s12011_s3 + $0x950] sm:$0xff]  ;;  %v1749_v47 = vld [vmem:[%s12011_s3 + $0x428] sm:$0xff] }
 0x228   :  { %2236 = vmatprep.subr.mxu1 %v1654_v48  ;;  %2306 = vmatpush1.msra.mxu0 %v1818_v20  ;;  %v1913_v48 = vld [vmem:[%s12011_s3 + $0x948] sm:$0xff]  ;;  %v1748_v20 = vld [vmem:[%s12011_s3 + $0x420] sm:$0xff] }
 0x229   :  { %2237 = vmatpush1.msra.mxu1 %v1653_v22  ;;  %2307 = vmatprep.subr.mxu0 %v1814_v28  ;;  %v1909_v22 = vld [vmem:[%s12011_s3 + $0x928] sm:$0xff]  ;;  %v1744_v28 = vld [vmem:[%s12011_s3 + $0x400] sm:$0xff] }
 0x22a   :  { %2238 = vmatprep.subr.mxu1 %v1649_v49  ;;  %2308 = vmatpush1.msra.mxu0 %v1813_v50  ;;  %v1908_v49 = vld [vmem:[%s12011_s3 + $0x920] sm:$0xff]  ;;  %v1743_v50 = vld [vmem:[%s12011_s3 + $0x3f8] sm:$0xff] }
 0x22b   :  { %2239 = vmatpush1.msra.mxu1 %v1648_v24  ;;  %2309 = vmatprep.subr.mxu0 %v1809_v51  ;;  %v1904_v24 = vld [vmem:[%s12011_s3 + $0x900] sm:$0xff]  ;;  %v1739_v51 = vld [vmem:[%s12011_s3 + $0x3d8] sm:$0xff] }
 0x22c   :  { %2240 = vmatprep.subr.mxu1 %v1644_v14  ;;  %2310 = vmatpush1.msra.mxu0 %v1808_v52  ;;  %v1903_v14 = vld [vmem:[%s12011_s3 + $0x8f8] sm:$0xff]  ;;  %v1738_v52 = vld [vmem:[%s12011_s3 + $0x3d0] sm:$0xff] }
 0x22d   :  { %2241 = vmatpush1.msra.mxu1 %v1643_v53  ;;  %2311 = vmatprep.subr.mxu0 %v1804_v44  ;;  %v1899_v53 = vld [vmem:[%s12011_s3 + $0x8d8] sm:$0xff]  ;;  %v1734_v44 = vld [vmem:[%s12011_s3 + $0x3b0] sm:$0xff] }
 0x22e   :  { %2242 = vmatprep.subr.mxu1 %v1639_v54  ;;  %2312 = vmatpush1.msra.mxu0 %v1803_v63  ;;  %v1898_v54 = vld [vmem:[%s12011_s3 + $0x8d0] sm:$0xff]  ;;  %v1733_v63 = vld [vmem:[%s12011_s3 + $0x3a8] sm:$0xff] }
 0x22f   :  { %2243 = vmatpush1.msra.mxu1 %v1638_v55  ;;  %2313 = vmatprep.subr.mxu0 %v1799_v57  ;;  %v1894_v55 = vld [vmem:[%s12011_s3 + $0x8b0] sm:$0xff]  ;;  %v1729_v57 = vld [vmem:[%s12011_s3 + $0x388] sm:$0xff] }
 0x230   :  { %2244 = vmatprep.subr.mxu1 %v1634_v36  ;;  %2314 = vmatpush1.msra.mxu0 %v1798_v58  ;;  %v1893_v36 = vld [vmem:[%s12011_s3 + $0x8a8] sm:$0xff]  ;;  %v1728_v58 = vld [vmem:[%s12011_s3 + $0x380] sm:$0xff] }
 0x231   :  { %2245 = vmatpush1.msra.mxu1 %v1633_v59  ;;  %2315 = vmatprep.subr.mxu0 %v1794_v60  ;;  %v1889_v59 = vld [vmem:[%s12011_s3 + $0x888] sm:$0xff]  ;;  %v1724_v60 = vld [vmem:[%s12011_s3 + $0x360] sm:$0xff] }
 0x232   :  { %2246 = vmatprep.subr.mxu1 %v1629_v61  ;;  %2316 = vmatpush1.msra.mxu0 %v1793_v1  ;;  %v1888_v61 = vld [vmem:[%s12011_s3 + $0x880] sm:$0xff]  ;;  %v1723_v1 = vld [vmem:[%s12011_s3 + $0x358] sm:$0xff] }
 0x233   :  { %2247 = vmatpush1.msra.mxu1 %v1628_v2  ;;  %2317 = vmatprep.subr.mxu0 %v1789_v4  ;;  %v1884_v2 = vld [vmem:[%s12011_s3 + $0x860] sm:$0xff]  ;;  %v1719_v4 = vld [vmem:[%s12011_s3 + $0x338] sm:$0xff] }
 0x234   :  { %2248 = vmatprep.subr.mxu1 %v1624_v7  ;;  %2318 = vmatpush1.msra.mxu0 %v1788_v9  ;;  %v1883_v7 = vld [vmem:[%s12011_s3 + $0x858] sm:$0xff]  ;;  %v1718_v9 = vld [vmem:[%s12011_s3 + $0x330] sm:$0xff] }
 0x235   :  { %2249 = vmatpush1.msra.mxu1 %v1623_v10  ;;  %2319 = vmatprep.subr.mxu0 %v1784_v11  ;;  %v1879_v10 = vld [vmem:[%s12011_s3 + $0x838] sm:$0xff]  ;;  %v1714_v11 = vld [vmem:[%s12011_s3 + $0x310] sm:$0xff] }
 0x236   :  { %2250 = vmatprep.subr.mxu1 %v1619_v12  ;;  %2320 = vmatpush1.msra.mxu0 %v1783_v13  ;;  %v1878_v12 = vld [vmem:[%s12011_s3 + $0x830] sm:$0xff]  ;;  %v1713_v13 = vld [vmem:[%s12011_s3 + $0x308] sm:$0xff] }
 0x237   :  { %2251 = vmatpush1.msra.mxu1 %v1618_v15  ;;  %2321 = vmatprep.subr.mxu0 %v1779_v56  ;;  %v1874_v15 = vld [vmem:[%s12011_s3 + $0x810] sm:$0xff]  ;;  %v1709_v56 = vld [vmem:[%s12011_s3 + $0x2e8] sm:$0xff] }
 0x238   :  { %2252 = vmatprep.subr.mxu1 %v1774_v16  ;;  %2322 = vmatpush1.msra.mxu0 %v1778_v17  ;;  %v1873_v16 = vld [vmem:[%s12011_s3 + $0x808] sm:$0xff]  ;;  %v1708_v17 = vld [vmem:[%s12011_s3 + $0x2e0] sm:$0xff] }
 0x239   :  { %2253 = vmatpush2.msra.mxu1 %v1773_v19  ;;  %2323 = vmatprep.subr.mxu0 %v1934_v26  ;;  %v1869_v19 = vld [vmem:[%s12011_s3 + $0x7e8] sm:$0xff]  ;;  %v1704_v26 = vld [vmem:[%s12011_s3 + $0x2c0] sm:$0xff] }
 0x23a   :  { %2254 = vmatprep.subr.mxu1 %v1769_v32  ;;  %2324 = vmatpush2.msra.mxu0 %v1933_v34  ;;  %v1868_v32 = vld [vmem:[%s12011_s3 + $0x7e0] sm:$0xff]  ;;  %v1703_v34 = vld [vmem:[%s12011_s3 + $0x2b8] sm:$0xff] }
 0x23b   :  { %2255 = vmatpush2.msra.mxu1 %v1768_v35  ;;  %2325 = vmatprep.subr.mxu0 %v1929_v37  ;;  %v1864_v35 = vld [vmem:[%s12011_s3 + $0x7c0] sm:$0xff]  ;;  %v1699_v37 = vld [vmem:[%s12011_s3 + $0x298] sm:$0xff] }
 0x23c   :  { %2256 = vmatprep.subr.mxu1 %v1764_v25  ;;  %2326 = vmatpush2.msra.mxu0 %v1928_v38  ;;  %v1863_v25 = vld [vmem:[%s12011_s3 + $0x7b8] sm:$0xff]  ;;  %v1698_v38 = vld [vmem:[%s12011_s3 + $0x290] sm:$0xff] }
 0x23d   :  { %2257 = vmatpush2.msra.mxu1 %v1763_v39  ;;  %2327 = vmatprep.subr.mxu0 %v1924_v40  ;;  %v1859_v39 = vld [vmem:[%s12011_s3 + $0x798] sm:$0xff]  ;;  %v1858_v40 = vld [vmem:[%s12011_s3 + $0x790] sm:$0xff] }
 0x23e   :  { %2258 = vmatprep.subr.mxu1 %v1759_v41  ;;  %2328 = vmatpush2.msra.mxu0 %v1923_v42  ;;  %v1974_v41 = vld [vmem:[%s12011_s3 + $0xb30] sm:$0xff]  ;;  %v1973_v42 = vld [vmem:[%s12011_s3 + $0xb28] sm:$0xff] }
 0x23f   :  { %2259 = vmatpush2.msra.mxu1 %v1758_v43  ;;  %2329 = vmatprep.subr.mxu0 %v1919_v27  ;;  %v1775_v43 = vld [vmem:[%s12011_s3 + $0x4f8] sm:$0xff]  ;;  %v1969_v27 = vld [vmem:[%s12011_s3 + $0xb08] sm:$0xff] }
 0x240   :  { %2260 = vmatprep.subr.mxu1 %v1754_v33  ;;  %2330 = vmatpush2.msra.mxu0 %v1918_v45  ;;  %v1695_v33 = vld [vmem:[%s12011_s3 + $0x278] sm:$0xff]  ;;  %v1968_v45 = vld [vmem:[%s12011_s3 + $0xb00] sm:$0xff] }
 0x241   :  { %2261 = vmatpush2.msra.mxu1 %v1753_v46  ;;  %2331 = vmatprep.subr.mxu0 %v1914_v30  ;;  %v1770_v46 = vld [vmem:[%s12011_s3 + $0x4d0] sm:$0xff]  ;;  %v1964_v30 = vld [vmem:[%s12011_s3 + $0xae0] sm:$0xff] }
 0x242   :  { %2262 = vmatprep.subr.mxu1 %v1749_v47  ;;  %2332 = vmatpush2.msra.mxu0 %v1913_v48  ;;  %v1690_v47 = vld [vmem:[%s12011_s3 + $0x250] sm:$0xff]  ;;  %v1963_v48 = vld [vmem:[%s12011_s3 + $0xad8] sm:$0xff] }
 0x243   :  { %2263 = vmatpush2.msra.mxu1 %v1748_v20  ;;  %2333 = vmatprep.subr.mxu0 %v1909_v22  ;;  %v1765_v20 = vld [vmem:[%s12011_s3 + $0x4a8] sm:$0xff]  ;;  %v1959_v22 = vld [vmem:[%s12011_s3 + $0xab8] sm:$0xff] }
 0x244   :  { %2264 = vmatprep.subr.mxu1 %v1744_v28  ;;  %2334 = vmatpush2.msra.mxu0 %v1908_v49  ;;  %v1685_v28 = vld [vmem:[%s12011_s3 + $0x228] sm:$0xff]  ;;  %v1958_v49 = vld [vmem:[%s12011_s3 + $0xab0] sm:$0xff] }
 0x245   :  { %2265 = vmatpush2.msra.mxu1 %v1743_v50  ;;  %2335 = vmatprep.subr.mxu0 %v1904_v24  ;;  %v1760_v50 = vld [vmem:[%s12011_s3 + $0x480] sm:$0xff]  ;;  %v1954_v24 = vld [vmem:[%s12011_s3 + $0xa90] sm:$0xff] }
 0x246   :  { %2266 = vmatprep.subr.mxu1 %v1739_v51  ;;  %2336 = vmatpush2.msra.mxu0 %v1903_v14  ;;  %v1680_v51 = vld [vmem:[%s12011_s3 + $0x200] sm:$0xff]  ;;  %v1953_v14 = vld [vmem:[%s12011_s3 + $0xa88] sm:$0xff] }
 0x247   :  { %2267 = vmatpush2.msra.mxu1 %v1738_v52  ;;  %2337 = vmatprep.subr.mxu0 %v1899_v53  ;;  %v1755_v52 = vld [vmem:[%s12011_s3 + $0x458] sm:$0xff]  ;;  %v1949_v53 = vld [vmem:[%s12011_s3 + $0xa68] sm:$0xff] }
 0x248   :  { %2268 = vmatprep.subr.mxu1 %v1734_v44  ;;  %2338 = vmatpush2.msra.mxu0 %v1898_v54  ;;  %v1675_v44 = vld [vmem:[%s12011_s3 + $0x1d8] sm:$0xff]  ;;  %v1948_v54 = vld [vmem:[%s12011_s3 + $0xa60] sm:$0xff] }
 0x249   :  { %2269 = vmatpush2.msra.mxu1 %v1733_v63  ;;  %2339 = vmatprep.subr.mxu0 %v1894_v55  ;;  %v1750_v63 = vld [vmem:[%s12011_s3 + $0x430] sm:$0xff]  ;;  %v1944_v55 = vld [vmem:[%s12011_s3 + $0xa40] sm:$0xff] }
 0x24a   :  { %2270 = vmatprep.subr.mxu1 %v1729_v57  ;;  %2340 = vmatpush2.msra.mxu0 %v1893_v36  ;;  %v1670_v57 = vld [vmem:[%s12011_s3 + $0x1b0] sm:$0xff]  ;;  %v1943_v36 = vld [vmem:[%s12011_s3 + $0xa38] sm:$0xff] }
 0x24b   :  { %2271 = vmatpush2.msra.mxu1 %v1728_v58  ;;  %2341 = vmatprep.subr.mxu0 %v1889_v59  ;;  %v1745_v58 = vld [vmem:[%s12011_s3 + $0x408] sm:$0xff]  ;;  %v1939_v59 = vld [vmem:[%s12011_s3 + $0xa18] sm:$0xff] }
 0x24c   :  { %2272 = vmatprep.subr.mxu1 %v1724_v60  ;;  %2342 = vmatpush2.msra.mxu0 %v1888_v61  ;;  %v1665_v60 = vld [vmem:[%s12011_s3 + $0x188] sm:$0xff]  ;;  %v1938_v61 = vld [vmem:[%s12011_s3 + $0xa10] sm:$0xff] }
 0x24d   :  { %2273 = vmatpush2.msra.mxu1 %v1723_v1  ;;  %2343 = vmatprep.subr.mxu0 %v1884_v2  ;;  %v1740_v1 = vld [vmem:[%s12011_s3 + $0x3e0] sm:$0xff] }
 0x24e   :  { %2274 = vmatprep.subr.mxu1 %v1719_v4  ;;  %2344 = vmatpush2.msra.mxu0 %v1883_v7  ;;  %v1660_v2 = vld [vmem:[%s12011_s3 + $0x160] sm:$0xff]  ;;  %v1935_v4 = vld [vmem:[%s12011_s3 + $0x9f8] sm:$0xff] }
 0x24f   :  { %2275 = vmatpush2.msra.mxu1 %v1718_v9  ;;  %2345 = vmatprep.subr.mxu0 %v1879_v10  ;;  %v1735_v7 = vld [vmem:[%s12011_s3 + $0x3b8] sm:$0xff] }
 0x250   :  { %2276 = vmatprep.subr.mxu1 %v1714_v11  ;;  %2346 = vmatpush2.msra.mxu0 %v1878_v12  ;;  %v1855_v9 = vld [vmem:[%s12011_s3 + $0x778] sm:$0xff]  ;;  %v1930_v11 = vld [vmem:[%s12011_s3 + $0x9d0] sm:$0xff] }
 0x251   :  { %2277 = vmatpush2.msra.mxu1 %v1713_v13  ;;  %2347 = vmatprep.subr.mxu0 %v1874_v15  ;;  %v1655_v10 = vld [vmem:[%s12011_s3 + $0x138] sm:$0xff]  ;;  %v1730_v12 = vld [vmem:[%s12011_s3 + $0x390] sm:$0xff] }
 0x252   :  { %2278 = vmatprep.subr.mxu1 %v1709_v56  ;;  %2348 = vmatpush2.msra.mxu0 %v1873_v16  ;;  %v1850_v13 = vld [vmem:[%s12011_s3 + $0x750] sm:$0xff]  ;;  %v1925_v56 = vld [vmem:[%s12011_s3 + $0x9a8] sm:$0xff] }
 0x253   :  { %2279 = vmatpush2.msra.mxu1 %v1708_v17  ;;  %2349 = vmatprep.subr.mxu0 %v1869_v19  ;;  %v1650_v15 = vld [vmem:[%s12011_s3 + $0x110] sm:$0xff]  ;;  %v1725_v16 = vld [vmem:[%s12011_s3 + $0x368] sm:$0xff] }
 0x254   :  { %2280 = vmatprep.subr.mxu1 %v1704_v26  ;;  %2350 = vmatpush2.msra.mxu0 %v1868_v32  ;;  %v1845_v17 = vld [vmem:[%s12011_s3 + $0x728] sm:$0xff]  ;;  %v1920_v26 = vld [vmem:[%s12011_s3 + $0x980] sm:$0xff] }
 0x255   :  { %2281 = vmatpush2.msra.mxu1 %v1703_v34  ;;  %2351 = vmatprep.subr.mxu0 %v1864_v35  ;;  %v1645_v19 = vld [vmem:[%s12011_s3 + $0xe8] sm:$0xff]  ;;  %v1720_v32 = vld [vmem:[%s12011_s3 + $0x340] sm:$0xff] }
 0x256   :  { %2282 = vmatprep.subr.mxu1 %v1699_v37  ;;  %2352 = vmatpush2.msra.mxu0 %v1863_v25  ;;  %v1840_v34 = vld [vmem:[%s12011_s3 + $0x700] sm:$0xff]  ;;  %v1915_v37 = vld [vmem:[%s12011_s3 + $0x958] sm:$0xff] }
 0x257   :  { %2283 = vmatpush2.msra.mxu1 %v1698_v38  ;;  %2353 = vmatprep.subr.mxu0 %v1859_v39  ;;  %v1640_v35 = vld [vmem:[%s12011_s3 + $0xc0] sm:$0xff]  ;;  %v1715_v25 = vld [vmem:[%s12011_s3 + $0x318] sm:$0xff] }
 0x258   :  { %2285 = vmatmul.mubr.f32.vlgmr.msra.gmra.mxu1 %v9090_v0  ;;  %2354 = vmatpush2.msra.mxu0 %v1858_v40  ;;  %v1835_v38 = vld [vmem:[%s12011_s3 + $0x6d8] sm:$0xff]  ;;  %v1910_v40 = vld [vmem:[%s12011_s3 + $0x930] sm:$0xff] }
 0x259   :  { %2378 = vmatprep.subr.mxu1 %v1974_v41  ;;  %2356 = vmatmul.mubr.f32.vlgmr.msra.gmra.mxu0 %v9170_v6  ;;  %v1635_v39 = vld [vmem:[%s12011_s3 + $0x98] sm:$0xff]  ;;  %v1710_v41 = vld [vmem:[%s12011_s3 + $0x2f0] sm:$0xff] }
 0x25a   :  { %2379 = vmatpush1.msra.mxu1 %v1973_v42  ;;  %5958 = vmatprep.subr.mxu0 %v1775_v43  ;;  %v1830_v42 = vld [vmem:[%s12011_s3 + $0x6b0] sm:$0xff] }
 0x25b   :  { %2380 = vmatprep.subr.mxu1 %v1969_v27  ;;  %5959 = vmatpush3.msra.mxu0 %v1695_v33  ;;  %v1630_v43 = vld [vmem:[%s12011_s3 + $0x70] sm:$0xff]  ;;  %v1905_v27 = vld [vmem:[%s12011_s3 + $0x908] sm:$0xff] }
 0x25c   :  { %2497 = vmatprep.mubr.f32.mxu0 %v9088_v62  ;;  %2381 = vmatpush1.msra.mxu1 %v1968_v45  ;;  %v1705_v33 = vld [vmem:[%s12011_s3 + $0x2c8] sm:$0xff] }
 0x25d   :  { %5960 = vmatprep.subr.mxu0 %v1770_v46  ;;  %2382 = vmatprep.subr.mxu1 %v1964_v30  ;;  %v1825_v45 = vld [vmem:[%s12011_s3 + $0x688] sm:$0xff]  ;;  %v1900_v30 = vld [vmem:[%s12011_s3 + $0x8e0] sm:$0xff] }
 0x25e   :  { %5961 = vmatpush3.msra.mxu0 %v1690_v47  ;;  %2383 = vmatpush1.msra.mxu1 %v1963_v48  ;;  %v1625_v46 = vld [vmem:[%s12011_s3 + $0x48] sm:$0xff]  ;;  %v1700_v47 = vld [vmem:[%s12011_s3 + $0x2a0] sm:$0xff] }
 0x25f   :  { %5962 = vmatprep.subr.mxu0 %v1765_v20  ;;  %2384 = vmatprep.subr.mxu1 %v1959_v22  ;;  %v1820_v48 = vld [vmem:[%s12011_s3 + $0x660] sm:$0xff]  ;;  %v1895_v22 = vld [vmem:[%s12011_s3 + $0x8b8] sm:$0xff] }
 0x260   :  { %5963 = vmatpush3.msra.mxu0 %v1685_v28  ;;  %2385 = vmatpush1.msra.mxu1 %v1958_v49  ;;  %v1620_v20 = vld [vmem:[%s12011_s3 + $0x20] sm:$0xff]  ;;  %v1815_v28 = vld [vmem:[%s12011_s3 + $0x638] sm:$0xff]  ;;  %v1890_v49 = vld [vmem:[%s12011_s3 + $0x890] sm:$0xff] }
 0x261   :  { %5964 = vmatprep.subr.mxu0 %v1760_v50  ;;  %2386 = vmatprep.subr.mxu1 %v1954_v24  ;;  %v1975_v50 = vld [vmem:[%s12011_s3 + $0xb38] sm:$0xff]  ;;  %v1810_v24 = vld [vmem:[%s12011_s3 + $0x610] sm:$0xff] }
 0x262   :  { %5965 = vmatpush3.msra.mxu0 %v1680_v51  ;;  %2387 = vmatpush1.msra.mxu1 %v1953_v14  ;;  %v1885_v51 = vld [vmem:[%s12011_s3 + $0x868] sm:$0xff]  ;;  %v1970_v14 = vld [vmem:[%s12011_s3 + $0xb10] sm:$0xff] }
 0x263   :  { %5966 = vmatprep.subr.mxu0 %v1755_v52  ;;  %2388 = vmatprep.subr.mxu1 %v1949_v53  ;;  %v1805_v52 = vld [vmem:[%s12011_s3 + $0x5e8] sm:$0xff]  ;;  %v1880_v53 = vld [vmem:[%s12011_s3 + $0x840] sm:$0xff] }
 0x264   :  { %5967 = vmatpush3.msra.mxu0 %v1675_v44  ;;  %2389 = vmatpush1.msra.mxu1 %v1948_v54  ;;  %v1965_v44 = vld [vmem:[%s12011_s3 + $0xae8] sm:$0xff]  ;;  %v1800_v54 = vld [vmem:[%s12011_s3 + $0x5c0] sm:$0xff] }
 0x265   :  { %5968 = vmatprep.subr.mxu0 %v1750_v63  ;;  %2390 = vmatprep.subr.mxu1 %v1944_v55  ;;  %v1875_v63 = vld [vmem:[%s12011_s3 + $0x818] sm:$0xff]  ;;  %v1960_v55 = vld [vmem:[%s12011_s3 + $0xac0] sm:$0xff] }
 0x266   :  { %5969 = vmatpush3.msra.mxu0 %v1670_v57  ;;  %2391 = vmatpush1.msra.mxu1 %v1943_v36  ;;  %v1795_v57 = vld [vmem:[%s12011_s3 + $0x598] sm:$0xff]  ;;  %v1870_v36 = vld [vmem:[%s12011_s3 + $0x7f0] sm:$0xff] }
 0x267   :  { %5970 = vmatprep.subr.mxu0 %v1745_v58  ;;  %2392 = vmatprep.subr.mxu1 %v1939_v59  ;;  %v1955_v58 = vld [vmem:[%s12011_s3 + $0xa98] sm:$0xff]  ;;  %v1790_v59 = vld [vmem:[%s12011_s3 + $0x570] sm:$0xff] }
 0x268   :  { %5971 = vmatpush3.msra.mxu0 %v1665_v60  ;;  %2393 = vmatpush1.msra.mxu1 %v1938_v61  ;;  %v1865_v60 = vld [vmem:[%s12011_s3 + $0x7c8] sm:$0xff]  ;;  %v1950_v61 = vld [vmem:[%s12011_s3 + $0xa70] sm:$0xff] }
 0x269   :  { %2426 = vmatprep.mubr.f32.mxu1 %v6620_v5  ;;  %5972 = vmatprep.subr.mxu0 %v1740_v1  ;;  %v1785_v1 = vld [vmem:[%s12011_s3 + $0x548] sm:$0xff] }
 0x26a   :  { %5586 = vmatmul.mubr.msk.f32.vlgmr.msra.gmra.mxu1 %vm2003_vm0, %v9175_v8  ;;  %5973 = vmatpush3.msra.mxu0 %v1660_v2  ;;  %v1860_v2 = vld [vmem:[%s12011_s3 + $0x7a0] sm:$0xff] }
 0x26b   :  { %5993 = vmatprep.subr.mxu1 %v1935_v4  ;;  %5974 = vmatprep.subr.mxu0 %v1735_v7  ;;  %v1945_v4 = vld [vmem:[%s12011_s3 + $0xa48] sm:$0xff]  ;;  %v1780_v7 = vld [vmem:[%s12011_s3 + $0x520] sm:$0xff] }
 0x26c   :  { %5994 = vmatpush3.msra.mxu1 %v1855_v9  ;;  %2567 = vmatprep.mubr.f32.mxu1 %v9168_v3  ;;  %v1940_v9 = vld [vmem:[%s12011_s3 + $0xa20] sm:$0xff] }
 0x26d   :  { %5975 = vmatpush3.msra.mxu0 %v1655_v10  ;;  %5995 = vmatprep.subr.mxu1 %v1930_v11  ;;  %v2724_v10 = vld [vmem:[%s12013_s5 + $0x260] sm:$0xff]  ;;  %v2723_v11 = vld [vmem:[%s12013_s5 + $0x258] sm:$0xff] }
 0x26e   :  { %5976 = vmatprep.subr.mxu0 %v1730_v12  ;;  %5996 = vmatpush3.msra.mxu1 %v1850_v13  ;;  %v2884_v12 = vld [vmem:[%s12013_s5 + $0x760] sm:$0xff]  ;;  %v2719_v13 = vld [vmem:[%s12013_s5 + $0x238] sm:$0xff] }
 0x26f   :  { %5977 = vmatpush3.msra.mxu0 %v1650_v15  ;;  %5997 = vmatprep.subr.mxu1 %v1925_v56  ;;  %v2883_v15 = vld [vmem:[%s12013_s5 + $0x758] sm:$0xff]  ;;  %v2718_v56 = vld [vmem:[%s12013_s5 + $0x230] sm:$0xff] }
 0x270   :  { %5978 = vmatprep.subr.mxu0 %v1725_v16  ;;  %5998 = vmatpush3.msra.mxu1 %v1845_v17  ;;  %v2879_v16 = vld [vmem:[%s12013_s5 + $0x738] sm:$0xff]  ;;  %v2714_v17 = vld [vmem:[%s12013_s5 + $0x210] sm:$0xff] }
 0x271   :  { %5979 = vmatpush3.msra.mxu0 %v1645_v19  ;;  %5999 = vmatprep.subr.mxu1 %v1920_v26  ;;  %v2878_v19 = vld [vmem:[%s12013_s5 + $0x730] sm:$0xff]  ;;  %v2713_v26 = vld [vmem:[%s12013_s5 + $0x208] sm:$0xff] }
 0x272   :  { %5980 = vmatprep.subr.mxu0 %v1720_v32  ;;  %6000 = vmatpush3.msra.mxu1 %v1840_v34  ;;  %v2874_v32 = vld [vmem:[%s12013_s5 + $0x710] sm:$0xff]  ;;  %v2709_v34 = vld [vmem:[%s12013_s5 + $0x1e8] sm:$0xff] }
 0x273   :  { %5981 = vmatpush3.msra.mxu0 %v1640_v35  ;;  %6001 = vmatprep.subr.mxu1 %v1915_v37  ;;  %v2873_v35 = vld [vmem:[%s12013_s5 + $0x708] sm:$0xff]  ;;  %v2708_v37 = vld [vmem:[%s12013_s5 + $0x1e0] sm:$0xff] }
 0x274   :  { %5982 = vmatprep.subr.mxu0 %v1715_v25  ;;  %6002 = vmatpush3.msra.mxu1 %v1835_v38  ;;  %v2869_v25 = vld [vmem:[%s12013_s5 + $0x6e8] sm:$0xff]  ;;  %v2704_v38 = vld [vmem:[%s12013_s5 + $0x1c0] sm:$0xff] }
 0x275   :  { %5983 = vmatpush3.msra.mxu0 %v1635_v39  ;;  %6003 = vmatprep.subr.mxu1 %v1910_v40  ;;  %v2868_v39 = vld [vmem:[%s12013_s5 + $0x6e0] sm:$0xff]  ;;  %v2703_v40 = vld [vmem:[%s12013_s5 + $0x1b8] sm:$0xff] }
 0x276   :  { %5984 = vmatprep.subr.mxu0 %v1710_v41  ;;  %6004 = vmatpush3.msra.mxu1 %v1830_v42  ;;  %v2864_v41 = vld [vmem:[%s12013_s5 + $0x6c0] sm:$0xff]  ;;  %v2699_v42 = vld [vmem:[%s12013_s5 + $0x198] sm:$0xff] }
 0x277   :  { %5985 = vmatpush3.msra.mxu0 %v1630_v43  ;;  %6005 = vmatprep.subr.mxu1 %v1905_v27  ;;  %v2863_v43 = vld [vmem:[%s12013_s5 + $0x6b8] sm:$0xff]  ;;  %v2698_v27 = vld [vmem:[%s12013_s5 + $0x190] sm:$0xff] }
 0x278   :  { %5986 = vmatprep.subr.mxu0 %v1705_v33  ;;  %6006 = vmatpush3.msra.mxu1 %v1825_v45  ;;  %v2859_v33 = vld [vmem:[%s12013_s5 + $0x698] sm:$0xff]  ;;  %v2694_v45 = vld [vmem:[%s12013_s5 + $0x170] sm:$0xff] }
 0x279   :  { %5987 = vmatpush3.msra.mxu0 %v1625_v46  ;;  %6007 = vmatprep.subr.mxu1 %v1900_v30  ;;  %v2858_v46 = vld [vmem:[%s12013_s5 + $0x690] sm:$0xff]  ;;  %v2693_v30 = vld [vmem:[%s12013_s5 + $0x168] sm:$0xff] }
 0x27a   :  { %5988 = vmatprep.subr.mxu0 %v1700_v47  ;;  %6008 = vmatpush3.msra.mxu1 %v1820_v48  ;;  %v2854_v47 = vld [vmem:[%s12013_s5 + $0x670] sm:$0xff]  ;;  %v2689_v48 = vld [vmem:[%s12013_s5 + $0x148] sm:$0xff] }
 0x27b   :  { %5989 = vmatpush3.msra.mxu0 %v1620_v20  ;;  %6009 = vmatprep.subr.mxu1 %v1895_v22  ;;  %v2853_v20 = vld [vmem:[%s12013_s5 + $0x668] sm:$0xff]  ;;  %v2688_v22 = vld [vmem:[%s12013_s5 + $0x140] sm:$0xff] }
 0x27c   :  { %2498 = vmatmul.mubr.f32.vlgmr.msra.gmra.mxu0 %v9090_v0  ;;  %6010 = vmatpush3.msra.mxu1 %v1815_v28  ;;  %v2849_v28 = vld [vmem:[%s12013_s5 + $0x648] sm:$0xff] }
 0x27d   :  { %6447 = vmatprep.subr.mxu0 %v6620_v5  ;;  %6011 = vmatprep.subr.mxu1 %v1890_v49  ;;  %v2684_v49 = vld [vmem:[%s12013_s5 + $0x120] sm:$0xff] }
 0x27e   :  { %6448 = vmatpush3.msra.mxu0 %v1975_v50  ;;  %6012 = vmatpush3.msra.mxu1 %v1810_v24  ;;  %v2848_v50 = vld [vmem:[%s12013_s5 + $0x640] sm:$0xff]  ;;  %v2683_v24 = vld [vmem:[%s12013_s5 + $0x118] sm:$0xff] }
 0x27f   :  { %6449 = vmatprep.subr.mxu0 %v6620_v5  ;;  %6013 = vmatprep.subr.mxu1 %v1885_v51  ;;  %v2844_v51 = vld [vmem:[%s12013_s5 + $0x620] sm:$0xff] }
 0x280   :  { %6450 = vmatpush3.msra.mxu0 %v1970_v14  ;;  %6014 = vmatpush3.msra.mxu1 %v1805_v52  ;;  %v2679_v14 = vld [vmem:[%s12013_s5 + $0xf8] sm:$0xff] }
 0x281   :  { %6451 = vmatprep.subr.mxu0 %v6620_v5  ;;  %6015 = vmatprep.subr.mxu1 %v1880_v53  ;;  %v2843_v52 = vld [vmem:[%s12013_s5 + $0x618] sm:$0xff]  ;;  %v2678_v53 = vld [vmem:[%s12013_s5 + $0xf0] sm:$0xff] }
 0x282   :  { %6452 = vmatpush3.msra.mxu0 %v1965_v44  ;;  %6016 = vmatpush3.msra.mxu1 %v1800_v54  ;;  %v2839_v44 = vld [vmem:[%s12013_s5 + $0x5f8] sm:$0xff]  ;;  %v2674_v54 = vld [vmem:[%s12013_s5 + $0xd0] sm:$0xff] }
 0x283   :  { %6453 = vmatprep.subr.mxu0 %v6620_v5  ;;  %6017 = vmatprep.subr.mxu1 %v1875_v63  ;;  %v2838_v63 = vld [vmem:[%s12013_s5 + $0x5f0] sm:$0xff] }
 0x284   :  { %6454 = vmatpush3.msra.mxu0 %v1960_v55  ;;  %6018 = vmatpush3.msra.mxu1 %v1795_v57  ;;  %v2673_v55 = vld [vmem:[%s12013_s5 + $0xc8] sm:$0xff]  ;;  %v2834_v57 = vld [vmem:[%s12013_s5 + $0x5d0] sm:$0xff] }
 0x285   :  { %6455 = vmatprep.subr.mxu0 %v6620_v5  ;;  %6019 = vmatprep.subr.mxu1 %v1870_v36  ;;  %v2669_v36 = vld [vmem:[%s12013_s5 + $0xa8] sm:$0xff] }
 0x286   :  { %6456 = vmatpush3.msra.mxu0 %v1955_v58  ;;  %6020 = vmatpush3.msra.mxu1 %v1790_v59  ;;  %v2833_v58 = vld [vmem:[%s12013_s5 + $0x5c8] sm:$0xff]  ;;  %v2668_v59 = vld [vmem:[%s12013_s5 + $0xa0] sm:$0xff] }
 0x287   :  { %6457 = vmatprep.subr.mxu0 %v6620_v5  ;;  %6021 = vmatprep.subr.mxu1 %v1865_v60  ;;  %v2829_v60 = vld [vmem:[%s12013_s5 + $0x5a8] sm:$0xff] }
 0x288   :  { %6458 = vmatpush3.msra.mxu0 %v1950_v61  ;;  %6022 = vmatpush3.msra.mxu1 %v1785_v1  ;;  %v2664_v61 = vld [vmem:[%s12013_s5 + $0x80] sm:$0xff] }
 0x289   :  { %6459 = vmatprep.subr.mxu0 %v6620_v5  ;;  %6023 = vmatprep.subr.mxu1 %v1860_v2  ;;  %v2828_v1 = vld [vmem:[%s12013_s5 + $0x5a0] sm:$0xff]  ;;  %v2663_v2 = vld [vmem:[%s12013_s5 + $0x78] sm:$0xff] }
 0x28a   :  { %6460 = vmatpush3.msra.mxu0 %v1945_v4  ;;  %6024 = vmatpush3.msra.mxu1 %v1780_v7  ;;  %v2824_v4 = vld [vmem:[%s12013_s5 + $0x580] sm:$0xff]  ;;  %v2659_v7 = vld [vmem:[%s12013_s5 + $0x58] sm:$0xff] }
 0x28b   :  { %6461 = vmatprep.subr.mxu0 %v6620_v5  ;;  %2568 = vmatmul.mubr.f32.vlgmr.msra.gmra.mxu1 %v9170_v6 }
 0x28c   :  { %6462 = vmatpush3.msra.mxu0 %v1940_v9  ;;  %6463 = vmatprep.mubr.msk.f32.mxu0 %vm6621_vm1, %v6620_v5  ;;  %v2823_v9 = vld [vmem:[%s12013_s5 + $0x578] sm:$0xff] }
 0x28d   :  { %6464 = vmatmul.mubr.msk.f32.vlgmr.msra.gmra.mxu0 %vm2003_vm0, %v9175_v8  ;;  %3038 = vmatprep.subr.mxu1 %v2724_v10  ;;  %v2658_v10 = vld [vmem:[%s12013_s5 + $0x50] sm:$0xff] }
 0x28e   :  { %3039 = vmatpush1.msra.mxu1 %v2723_v11  ;;  %3109 = vmatprep.subr.mxu0 %v2884_v12  ;;  %v2819_v11 = vld [vmem:[%s12013_s5 + $0x558] sm:$0xff]  ;;  %v2654_v12 = vld [vmem:[%s12013_s5 + $0x30] sm:$0xff] }
 0x28f   :  { %3040 = vmatprep.subr.mxu1 %v2719_v13  ;;  %3110 = vmatpush1.msra.mxu0 %v2883_v15  ;;  %v2818_v13 = vld [vmem:[%s12013_s5 + $0x550] sm:$0xff]  ;;  %v2653_v15 = vld [vmem:[%s12013_s5 + $0x28] sm:$0xff] }
 0x290   :  { %3041 = vmatpush1.msra.mxu1 %v2718_v56  ;;  %3111 = vmatprep.subr.mxu0 %v2879_v16  ;;  %v2814_v56 = vld [vmem:[%s12013_s5 + $0x530] sm:$0xff]  ;;  %v2649_v16 = vld [vmem:[%s12013_s5 + $0x8] sm:$0xff] }
 0x291   :  { %3042 = vmatprep.subr.mxu1 %v2714_v17  ;;  %3112 = vmatpush1.msra.mxu0 %v2878_v19  ;;  %v2813_v17 = vld [vmem:[%s12013_s5 + $0x528] sm:$0xff]  ;;  %v2648_v19 = vld [vmem:[%s12013_s5] sm:$0xff] }
 0x292   :  { %3043 = vmatpush1.msra.mxu1 %v2713_v26  ;;  %3113 = vmatprep.subr.mxu0 %v2874_v32  ;;  %v2809_v26 = vld [vmem:[%s12013_s5 + $0x508] sm:$0xff]  ;;  %v2804_v32 = vld [vmem:[%s12013_s5 + $0x4e0] sm:$0xff] }
 0x293   :  { %3044 = vmatprep.subr.mxu1 %v2709_v34  ;;  %3114 = vmatpush1.msra.mxu0 %v2873_v35  ;;  %v2808_v34 = vld [vmem:[%s12013_s5 + $0x500] sm:$0xff]  ;;  %v2803_v35 = vld [vmem:[%s12013_s5 + $0x4d8] sm:$0xff] }
 0x294   :  { %3045 = vmatpush1.msra.mxu1 %v2708_v37  ;;  %3115 = vmatprep.subr.mxu0 %v2869_v25  ;;  %v2964_v37 = vld [vmem:[%s12013_s5 + $0x9e0] sm:$0xff]  ;;  %v2799_v25 = vld [vmem:[%s12013_s5 + $0x4b8] sm:$0xff] }
 0x295   :  { %3046 = vmatprep.subr.mxu1 %v2704_v38  ;;  %3116 = vmatpush1.msra.mxu0 %v2868_v39  ;;  %v2963_v38 = vld [vmem:[%s12013_s5 + $0x9d8] sm:$0xff]  ;;  %v2798_v39 = vld [vmem:[%s12013_s5 + $0x4b0] sm:$0xff] }
 0x296   :  { %3047 = vmatpush1.msra.mxu1 %v2703_v40  ;;  %3117 = vmatprep.subr.mxu0 %v2864_v41  ;;  %v2959_v40 = vld [vmem:[%s12013_s5 + $0x9b8] sm:$0xff]  ;;  %v2794_v41 = vld [vmem:[%s12013_s5 + $0x490] sm:$0xff] }
 0x297   :  { %3048 = vmatprep.subr.mxu1 %v2699_v42  ;;  %3118 = vmatpush1.msra.mxu0 %v2863_v43  ;;  %v2958_v42 = vld [vmem:[%s12013_s5 + $0x9b0] sm:$0xff]  ;;  %v2793_v43 = vld [vmem:[%s12013_s5 + $0x488] sm:$0xff] }
 0x298   :  { %3049 = vmatpush1.msra.mxu1 %v2698_v27  ;;  %3119 = vmatprep.subr.mxu0 %v2859_v33  ;;  %v2954_v27 = vld [vmem:[%s12013_s5 + $0x990] sm:$0xff]  ;;  %v2789_v33 = vld [vmem:[%s12013_s5 + $0x468] sm:$0xff] }
 0x299   :  { %3050 = vmatprep.subr.mxu1 %v2694_v45  ;;  %3120 = vmatpush1.msra.mxu0 %v2858_v46  ;;  %v2953_v45 = vld [vmem:[%s12013_s5 + $0x988] sm:$0xff]  ;;  %v2788_v46 = vld [vmem:[%s12013_s5 + $0x460] sm:$0xff] }
 0x29a   :  { %3051 = vmatpush1.msra.mxu1 %v2693_v30  ;;  %3121 = vmatprep.subr.mxu0 %v2854_v47  ;;  %v2949_v30 = vld [vmem:[%s12013_s5 + $0x968] sm:$0xff]  ;;  %v2784_v47 = vld [vmem:[%s12013_s5 + $0x440] sm:$0xff] }
 0x29b   :  { %3052 = vmatprep.subr.mxu1 %v2689_v48  ;;  %3122 = vmatpush1.msra.mxu0 %v2853_v20  ;;  %v2948_v48 = vld [vmem:[%s12013_s5 + $0x960] sm:$0xff]  ;;  %v2783_v20 = vld [vmem:[%s12013_s5 + $0x438] sm:$0xff] }
 0x29c   :  { %3053 = vmatpush1.msra.mxu1 %v2688_v22  ;;  %3123 = vmatprep.subr.mxu0 %v2849_v28  ;;  %v2944_v22 = vld [vmem:[%s12013_s5 + $0x940] sm:$0xff]  ;;  %v2779_v28 = vld [vmem:[%s12013_s5 + $0x418] sm:$0xff] }
 0x29d   :  { %3054 = vmatprep.subr.mxu1 %v2684_v49  ;;  %3124 = vmatpush1.msra.mxu0 %v2848_v50  ;;  %v2943_v49 = vld [vmem:[%s12013_s5 + $0x938] sm:$0xff]  ;;  %v2778_v50 = vld [vmem:[%s12013_s5 + $0x410] sm:$0xff] }
 0x29e   :  { %3055 = vmatpush1.msra.mxu1 %v2683_v24  ;;  %3125 = vmatprep.subr.mxu0 %v2844_v51  ;;  %v2939_v24 = vld [vmem:[%s12013_s5 + $0x918] sm:$0xff]  ;;  %v2774_v51 = vld [vmem:[%s12013_s5 + $0x3f0] sm:$0xff] }
 0x29f   :  { %3056 = vmatprep.subr.mxu1 %v2679_v14  ;;  %3126 = vmatpush1.msra.mxu0 %v2843_v52  ;;  %v2938_v14 = vld [vmem:[%s12013_s5 + $0x910] sm:$0xff]  ;;  %v2773_v52 = vld [vmem:[%s12013_s5 + $0x3e8] sm:$0xff] }
 0x2a0   :  { %3057 = vmatpush1.msra.mxu1 %v2678_v53  ;;  %3127 = vmatprep.subr.mxu0 %v2839_v44  ;;  %v2934_v53 = vld [vmem:[%s12013_s5 + $0x8f0] sm:$0xff]  ;;  %v2769_v44 = vld [vmem:[%s12013_s5 + $0x3c8] sm:$0xff] }
 0x2a1   :  { %3058 = vmatprep.subr.mxu1 %v2674_v54  ;;  %3128 = vmatpush1.msra.mxu0 %v2838_v63  ;;  %v2933_v54 = vld [vmem:[%s12013_s5 + $0x8e8] sm:$0xff]  ;;  %v2768_v63 = vld [vmem:[%s12013_s5 + $0x3c0] sm:$0xff] }
 0x2a2   :  { %3059 = vmatpush1.msra.mxu1 %v2673_v55  ;;  %3129 = vmatprep.subr.mxu0 %v2834_v57  ;;  %v2929_v55 = vld [vmem:[%s12013_s5 + $0x8c8] sm:$0xff]  ;;  %v2764_v57 = vld [vmem:[%s12013_s5 + $0x3a0] sm:$0xff] }
 0x2a3   :  { %3060 = vmatprep.subr.mxu1 %v2669_v36  ;;  %3130 = vmatpush1.msra.mxu0 %v2833_v58  ;;  %v2928_v36 = vld [vmem:[%s12013_s5 + $0x8c0] sm:$0xff]  ;;  %v2763_v58 = vld [vmem:[%s12013_s5 + $0x398] sm:$0xff] }
 0x2a4   :  { %3061 = vmatpush1.msra.mxu1 %v2668_v59  ;;  %3131 = vmatprep.subr.mxu0 %v2829_v60  ;;  %v2924_v59 = vld [vmem:[%s12013_s5 + $0x8a0] sm:$0xff]  ;;  %v2759_v60 = vld [vmem:[%s12013_s5 + $0x378] sm:$0xff] }
 0x2a5   :  { %3062 = vmatprep.subr.mxu1 %v2664_v61  ;;  %3132 = vmatpush1.msra.mxu0 %v2828_v1  ;;  %v2923_v61 = vld [vmem:[%s12013_s5 + $0x898] sm:$0xff]  ;;  %v2758_v1 = vld [vmem:[%s12013_s5 + $0x370] sm:$0xff] }
 0x2a6   :  { %3063 = vmatpush1.msra.mxu1 %v2663_v2  ;;  %3133 = vmatprep.subr.mxu0 %v2824_v4  ;;  %v2919_v2 = vld [vmem:[%s12013_s5 + $0x878] sm:$0xff]  ;;  %v2754_v4 = vld [vmem:[%s12013_s5 + $0x350] sm:$0xff] }
 0x2a7   :  { %3064 = vmatprep.subr.mxu1 %v2659_v7  ;;  %3134 = vmatpush1.msra.mxu0 %v2823_v9  ;;  %v2918_v7 = vld [vmem:[%s12013_s5 + $0x870] sm:$0xff]  ;;  %v2753_v9 = vld [vmem:[%s12013_s5 + $0x348] sm:$0xff] }
 0x2a8   :  { %3065 = vmatpush1.msra.mxu1 %v2658_v10  ;;  %3135 = vmatprep.subr.mxu0 %v2819_v11  ;;  %v2914_v10 = vld [vmem:[%s12013_s5 + $0x850] sm:$0xff]  ;;  %v2749_v11 = vld [vmem:[%s12013_s5 + $0x328] sm:$0xff] }
 0x2a9   :  { %3066 = vmatprep.subr.mxu1 %v2654_v12  ;;  %3136 = vmatpush1.msra.mxu0 %v2818_v13  ;;  %v2913_v12 = vld [vmem:[%s12013_s5 + $0x848] sm:$0xff]  ;;  %v2748_v13 = vld [vmem:[%s12013_s5 + $0x320] sm:$0xff] }
 0x2aa   :  { %3067 = vmatpush1.msra.mxu1 %v2653_v15  ;;  %3137 = vmatprep.subr.mxu0 %v2814_v56  ;;  %v2909_v15 = vld [vmem:[%s12013_s5 + $0x828] sm:$0xff]  ;;  %v2744_v56 = vld [vmem:[%s12013_s5 + $0x300] sm:$0xff] }
 0x2ab   :  { %3068 = vmatprep.subr.mxu1 %v2649_v16  ;;  %3138 = vmatpush1.msra.mxu0 %v2813_v17  ;;  %v2908_v16 = vld [vmem:[%s12013_s5 + $0x820] sm:$0xff]  ;;  %v2743_v17 = vld [vmem:[%s12013_s5 + $0x2f8] sm:$0xff] }
 0x2ac   :  { %3069 = vmatpush1.msra.mxu1 %v2648_v19  ;;  %3139 = vmatprep.subr.mxu0 %v2809_v26  ;;  %v2904_v19 = vld [vmem:[%s12013_s5 + $0x800] sm:$0xff]  ;;  %v2739_v26 = vld [vmem:[%s12013_s5 + $0x2d8] sm:$0xff] }
 0x2ad   :  { %3070 = vmatprep.subr.mxu1 %v2804_v32  ;;  %3140 = vmatpush1.msra.mxu0 %v2808_v34  ;;  %v2903_v32 = vld [vmem:[%s12013_s5 + $0x7f8] sm:$0xff]  ;;  %v2738_v34 = vld [vmem:[%s12013_s5 + $0x2d0] sm:$0xff] }
 0x2ae   :  { %3071 = vmatpush2.msra.mxu1 %v2803_v35  ;;  %3141 = vmatprep.subr.mxu0 %v2964_v37  ;;  %v2899_v35 = vld [vmem:[%s12013_s5 + $0x7d8] sm:$0xff]  ;;  %v2734_v37 = vld [vmem:[%s12013_s5 + $0x2b0] sm:$0xff] }
 0x2af   :  { %3072 = vmatprep.subr.mxu1 %v2799_v25  ;;  %3142 = vmatpush2.msra.mxu0 %v2963_v38  ;;  %v2898_v25 = vld [vmem:[%s12013_s5 + $0x7d0] sm:$0xff]  ;;  %v2733_v38 = vld [vmem:[%s12013_s5 + $0x2a8] sm:$0xff] }
 0x2b0   :  { %3073 = vmatpush2.msra.mxu1 %v2798_v39  ;;  %3143 = vmatprep.subr.mxu0 %v2959_v40  ;;  %v2894_v39 = vld [vmem:[%s12013_s5 + $0x7b0] sm:$0xff]  ;;  %v2729_v40 = vld [vmem:[%s12013_s5 + $0x288] sm:$0xff] }
 0x2b1   :  { %3074 = vmatprep.subr.mxu1 %v2794_v41  ;;  %3144 = vmatpush2.msra.mxu0 %v2958_v42  ;;  %v2893_v41 = vld [vmem:[%s12013_s5 + $0x7a8] sm:$0xff]  ;;  %v2728_v42 = vld [vmem:[%s12013_s5 + $0x280] sm:$0xff] }
 0x2b2   :  { %3075 = vmatpush2.msra.mxu1 %v2793_v43  ;;  %3145 = vmatprep.subr.mxu0 %v2954_v27  ;;  %v2889_v43 = vld [vmem:[%s12013_s5 + $0x788] sm:$0xff]  ;;  %v2888_v27 = vld [vmem:[%s12013_s5 + $0x780] sm:$0xff] }
 0x2b3   :  { %3076 = vmatprep.subr.mxu1 %v2789_v33  ;;  %3146 = vmatpush2.msra.mxu0 %v2953_v45  ;;  %v3004_v33 = vld [vmem:[%s12013_s5 + $0xb20] sm:$0xff]  ;;  %v2726_v45 = vld [vmem:[%s12013_s5 + $0x270] sm:$0xff] }
 0x2b4   :  { %3077 = vmatpush2.msra.mxu1 %v2788_v46  ;;  %3147 = vmatprep.subr.mxu0 %v2949_v30  ;;  %v10236_v46 = vld [vmem:[%s12012_s4] sm:$0x1f] }
 0x2b5   :  { %3078 = vmatprep.subr.mxu1 %v2784_v47  ;;  %3148 = vmatpush2.msra.mxu0 %v2948_v48  ;;  %v2073_v30 = vpop.f32.mrf.mxu0  ;;  %v1981_v47 = vrot.slane %v10236_v46, %v9076_v31  ;;  %v1985_v48 = vrot.slane %v10236_v46, %v9068_v29 }
 0x2b6   :  { %3079 = vmatpush2.msra.mxu1 %v2783_v20  ;;  %3149 = vmatprep.subr.mxu0 %v2944_v22 }
 0x2b7   :  { %3080 = vmatprep.subr.mxu1 %v2779_v28  ;;  %3150 = vmatpush2.msra.mxu0 %v2943_v49  ;;  %v2075_v20 = vpop.f32.mrf.mxu0  ;;  %v2074_v22 = vadd.f32 %v2073_v30, %v1981_v47  ;;  %v2715_v30 = vld [vmem:[%s12013_s5 + $0x218] sm:$0xff] }
 0x2b8   :  { %3081 = vmatpush2.msra.mxu1 %v2778_v50  ;;  %3151 = vmatprep.subr.mxu0 %v2939_v24  ;;  %v2076_v49 = vadd.f32 %v2075_v20, %v1985_v48  ;;  %v2711_v47 = vld [vmem:[%s12013_s5 + $0x1f8] sm:$0xff]  ;;  %v2710_v48 = vld [vmem:[%s12013_s5 + $0x1f0] sm:$0xff] }
 0x2b9   :  { %3082 = vmatprep.subr.mxu1 %v2774_v51  ;;  %3152 = vmatpush2.msra.mxu0 %v2938_v14  ;;  %v2706_v20 = vld [vmem:[%s12013_s5 + $0x1d0] sm:$0xff] }
 0x2ba   :  { %3083 = vmatpush2.msra.mxu1 %v2773_v52  ;;  %3153 = vmatprep.subr.mxu0 %v2934_v53 }
 0x2bb   :  { %3084 = vmatprep.subr.mxu1 %v2769_v44  ;;  %3154 = vmatpush2.msra.mxu0 %v2933_v54 }
 0x2bc   :  { %3085 = vmatpush2.msra.mxu1 %v2768_v63  ;;  %3155 = vmatprep.subr.mxu0 %v2929_v55  ;;  %v3003_v55 = vld [vmem:[%s12013_s5 + $0xb18] sm:$0xff] }
 0x2bd   :  { %3086 = vmatprep.subr.mxu1 %v2764_v57  ;;  %3156 = vmatpush2.msra.mxu0 %v2928_v36  ;;  %v2999_v57 = vld [vmem:[%s12013_s5 + $0xaf8] sm:$0xff]  ;;  %v2998_v36 = vld [vmem:[%s12013_s5 + $0xaf0] sm:$0xff] }
 0x2be   :  { %3087 = vmatpush2.msra.mxu1 %v2763_v58  ;;  %3157 = vmatprep.subr.mxu0 %v2924_v59  ;;  %v2994_v58 = vld [vmem:[%s12013_s5 + $0xad0] sm:$0xff]  ;;  %v2993_v59 = vld [vmem:[%s12013_s5 + $0xac8] sm:$0xff] }
 0x2bf   :  { %3088 = vmatprep.subr.mxu1 %v2759_v60  ;;  %3158 = vmatpush2.msra.mxu0 %v2923_v61  ;;  %v2989_v60 = vld [vmem:[%s12013_s5 + $0xaa8] sm:$0xff]  ;;  %v2988_v61 = vld [vmem:[%s12013_s5 + $0xaa0] sm:$0xff] }
 0x2c0   :  { %3089 = vmatpush2.msra.mxu1 %v2758_v1  ;;  %3159 = vmatprep.subr.mxu0 %v2919_v2  ;;  %v2984_v1 = vld [vmem:[%s12013_s5 + $0xa80] sm:$0xff]  ;;  %v2983_v2 = vld [vmem:[%s12013_s5 + $0xa78] sm:$0xff] }
 0x2c1   :  { %3090 = vmatprep.subr.mxu1 %v2754_v4  ;;  %3160 = vmatpush2.msra.mxu0 %v2918_v7  ;;  %v2979_v4 = vld [vmem:[%s12013_s5 + $0xa58] sm:$0xff]  ;;  %v2978_v7 = vld [vmem:[%s12013_s5 + $0xa50] sm:$0xff] }
 0x2c2   :  { %3091 = vmatpush2.msra.mxu1 %v2753_v9  ;;  %3161 = vmatprep.subr.mxu0 %v2914_v10  ;;  %v2974_v9 = vld [vmem:[%s12013_s5 + $0xa30] sm:$0xff]  ;;  %v2973_v10 = vld [vmem:[%s12013_s5 + $0xa28] sm:$0xff] }
 0x2c3   :  { %3092 = vmatprep.subr.mxu1 %v2749_v11  ;;  %3162 = vmatpush2.msra.mxu0 %v2913_v12  ;;  %v2969_v11 = vld [vmem:[%s12013_s5 + $0xa08] sm:$0xff]  ;;  %v2968_v12 = vld [vmem:[%s12013_s5 + $0xa00] sm:$0xff] }
 0x2c4   :  { %3093 = vmatpush2.msra.mxu1 %v2748_v13  ;;  %3163 = vmatprep.subr.mxu0 %v2909_v15  ;;  %v2886_v13 = vld [vmem:[%s12013_s5 + $0x770] sm:$0xff] }
 0x2c5   :  { %3094 = vmatprep.subr.mxu1 %v2744_v56  ;;  %3164 = vmatpush2.msra.mxu0 %v2908_v16  ;;  %v1989_v56 = vrot.slane %v10236_v46, %v9147_v21  ;;  %v1993_v16 = vrot.slane %v10236_v46, %v9141_v18 }
 0x2c6   :  { %3095 = vmatpush2.msra.mxu1 %v2743_v17  ;;  %3165 = vmatprep.subr.mxu0 %v2904_v19 }
 0x2c7   :  { %3096 = vmatprep.subr.mxu1 %v2739_v26  ;;  %3166 = vmatpush2.msra.mxu0 %v2903_v32 }
 0x2c8   :  { %3097 = vmatpush2.msra.mxu1 %v2738_v34  ;;  %3167 = vmatprep.subr.mxu0 %v2899_v35 }
 0x2c9   :  { %3098 = vmatprep.subr.mxu1 %v2734_v37  ;;  %3168 = vmatpush2.msra.mxu0 %v2898_v25 }
 0x2ca   :  { %3099 = vmatpush2.msra.mxu1 %v2733_v38  ;;  %3169 = vmatprep.subr.mxu0 %v2894_v39 }
 0x2cb   :  { %3100 = vmatprep.subr.mxu1 %v2729_v40  ;;  %3170 = vmatpush2.msra.mxu0 %v2893_v41 }
 0x2cc   :  { %3101 = vmatpush2.msra.mxu1 %v2728_v42  ;;  %3171 = vmatprep.subr.mxu0 %v2889_v43  ;;  %v2725_v43 = vld [vmem:[%s12013_s5 + $0x268] sm:$0xff] }
 0x2cd   :  { %3172 = vmatpush2.msra.mxu0 %v2888_v27  ;;  %3196 = vmatprep.subr.mxu1 %v3004_v33  ;;  %v2721_v27 = vld [vmem:[%s12013_s5 + $0x248] sm:$0xff]  ;;  %v2720_v33 = vld [vmem:[%s12013_s5 + $0x240] sm:$0xff] }
 0x2ce   :  { %3251 = vmatprep.subr.mxu0 %v2726_v45  ;;  %v2716_v45 = vld [vmem:[%s12013_s5 + $0x220] sm:$0xff] }
 0x2d7   :  { %v2144_v28 = vpop.f32.mrf.mxu1 }
 0x2d8   :  { %v2145_v50 = vadd.f32 %v2144_v28, %v2074_v22  ;;  %v2215_v24 = vpop.f32.mrf.mxu0  ;;  %v2705_v22 = vld [vmem:[%s12013_s5 + $0x1c8] sm:$0xff] }
 0x2d9   :  { %v2146_v51 = vpop.f32.mrf.mxu1  ;;  %v2701_v28 = vld [vmem:[%s12013_s5 + $0x1a8] sm:$0xff] }
 0x2da   :  { %v2147_v14 = vadd.f32 %v2146_v51, %v2076_v49  ;;  %v2217_v52 = vpop.f32.mrf.mxu0  ;;  %v2216_v53 = vadd.f32 %v2215_v24, %v2145_v50  ;;  %v2700_v49 = vld [vmem:[%s12013_s5 + $0x1a0] sm:$0xff]  ;;  %v2695_v24 = vld [vmem:[%s12013_s5 + $0x178] sm:$0xff] }
 0x2db   :  { %v2696_v50 = vld [vmem:[%s12013_s5 + $0x180] sm:$0xff]  ;;  %v2691_v51 = vld [vmem:[%s12013_s5 + $0x158] sm:$0xff] }
 0x2dc   :  { %v2218_v44 = vadd.f32 %v2217_v52, %v2147_v14  ;;  %v10244_v63 = vmax.f32 %v2216_v53, 0.0  ;;  %v2690_v14 = vld [vmem:[%s12013_s5 + $0x150] sm:$0xff]  ;;  %v2685_v53 = vld [vmem:[%s12013_s5 + $0x128] sm:$0xff] }
 0x2dd   :  { %v2686_v52 = vld [vmem:[%s12013_s5 + $0x130] sm:$0xff] }
 0x2de   :  { %v10242_v54 = vmax.f32 %v2218_v44, 0.0  ;;  %v2681_v44 = vld [vmem:[%s12013_s5 + $0x108] sm:$0xff] }
 0x2e0   :  { %3102 = vmatprep.mubr.f32.mxu1 %v10242_v54 }
 0x2e1   :  { %3103 = vmatmul.mubr.f32.vlgmr.msra.gmra.mxu1 %v10244_v63 }
 0x2e2   :  { %3197 = vmatpush1.msra.mxu1 %v3003_v55  ;;  %3244 = vmatprep.mubr.f32.mxu1 %v6620_v5  ;;  %v2680_v55 = vld [vmem:[%s12013_s5 + $0x100] sm:$0xff] }
 0x2e3   :  { %3198 = vmatprep.subr.mxu1 %v2999_v57 }
 0x2e4   :  { %3199 = vmatpush1.msra.mxu1 %v2998_v36  ;;  %v2676_v36 = vld [vmem:[%s12013_s5 + $0xe0] sm:$0xff] }
 0x2e5   :  { %3200 = vmatprep.subr.mxu1 %v2994_v58  ;;  %v2675_v58 = vld [vmem:[%s12013_s5 + $0xd8] sm:$0xff] }
 0x2e6   :  { %3201 = vmatpush1.msra.mxu1 %v2993_v59  ;;  %v2671_v59 = vld [vmem:[%s12013_s5 + $0xb8] sm:$0xff] }
 0x2e7   :  { %3202 = vmatprep.subr.mxu1 %v2989_v60  ;;  %v2670_v60 = vld [vmem:[%s12013_s5 + $0xb0] sm:$0xff] }
 0x2e8   :  { %3203 = vmatpush1.msra.mxu1 %v2988_v61 }
 0x2e9   :  { %3204 = vmatprep.subr.mxu1 %v2984_v1  ;;  %v2666_v1 = vld [vmem:[%s12013_s5 + $0x90] sm:$0xff] }
 0x2ea   :  { %3205 = vmatpush1.msra.mxu1 %v2983_v2  ;;  %v2665_v2 = vld [vmem:[%s12013_s5 + $0x88] sm:$0xff] }
 0x2eb   :  { %3206 = vmatprep.subr.mxu1 %v2979_v4  ;;  %v2661_v4 = vld [vmem:[%s12013_s5 + $0x68] sm:$0xff] }
 0x2ec   :  { %3207 = vmatpush1.msra.mxu1 %v2978_v7  ;;  %v1997_v7 = vrot.slane %v10236_v46, %v9150_v23  ;;  %v2651_v46 = vld [vmem:[%s12013_s5 + $0x18] sm:$0xff] }
 0x2ed   :  { %3208 = vmatprep.subr.mxu1 %v2974_v9 }
 0x2ee   :  { %3209 = vmatpush1.msra.mxu1 %v2973_v10  ;;  %v2660_v10 = vld [vmem:[%s12013_s5 + $0x60] sm:$0xff] }
 0x2ef   :  { %3210 = vmatprep.subr.mxu1 %v2969_v11 }
 0x2f0   :  { %3211 = vmatpush1.msra.mxu1 %v2968_v12  ;;  %v2656_v12 = vld [vmem:[%s12013_s5 + $0x40] sm:$0xff] }
 0x2f1   :  { %3322 = vmatprep.subr.mxu1 %v2886_v13  ;;  %v2655_v13 = vld [vmem:[%s12013_s5 + $0x38] sm:$0xff] }
 0x318   :  { %v2286_v15 = vpop.f32.mrf.mxu1 }
 0x319   :  { %v2357_v17 = vpop.f32.mrf.mxu0  ;;  %v2287_v26 = vadd.f32 %v2286_v15, %v1989_v56 }
 0x31a   :  { %v2288_v19 = vpop.f32.mrf.mxu1 }
 0x31b   :  { %v2289_v32 = vadd.f32 %v2288_v19, %v1993_v16  ;;  %v2359_v34 = vpop.f32.mrf.mxu0  ;;  %v2358_v35 = vadd.f32 %v2357_v17, %v2287_v26  ;;  %v2650_v19 = vld [vmem:[%s12013_s5 + $0x10] sm:$0xff] }
 0x31d   :  { %v2360_v25 = vadd.f32 %v2359_v34, %v2289_v32  ;;  %v2806_v32 = vld [vmem:[%s12013_s5 + $0x4f0] sm:$0xff] }
 0x32a   :  { %v2428_v37 = vpop.f32.mrf.mxu1 }
 0x32b   :  { %v2429_v38 = vadd.f32 %v2428_v37, %v2358_v35  ;;  %v2805_v35 = vld [vmem:[%s12013_s5 + $0x4e8] sm:$0xff] }
 0x32c   :  { %v2430_v39 = vpop.f32.mrf.mxu1  ;;  %v2801_v37 = vld [vmem:[%s12013_s5 + $0x4c8] sm:$0xff] }
 0x32d   :  { %v2431_v40 = vadd.f32 %v2430_v39, %v2360_v25  ;;  %v10303_v42 = vmax.f32 %v2429_v38, 0.0  ;;  %v2800_v38 = vld [vmem:[%s12013_s5 + $0x4c0] sm:$0xff] }
 0x32e   :  { %v2796_v39 = vld [vmem:[%s12013_s5 + $0x4a0] sm:$0xff] }
 0x32f   :  { %v10301_v41 = vmax.f32 %v2431_v40, 0.0 }
 0x331   :  { %3173 = vmatprep.mubr.f32.mxu0 %v10301_v41 }
 0x332   :  { %3174 = vmatmul.mubr.f32.vlgmr.msra.gmra.mxu0 %v10303_v42 }
 0x333   :  { %3252 = vmatpush1.msra.mxu0 %v2725_v43  ;;  %3315 = vmatprep.mubr.f32.mxu0 %v10242_v54  ;;  %v2885_v43 = vld [vmem:[%s12013_s5 + $0x768] sm:$0xff] }
 0x334   :  { %3253 = vmatprep.subr.mxu0 %v2721_v27  ;;  %v2795_v27 = vld [vmem:[%s12013_s5 + $0x498] sm:$0xff] }
 0x335   :  { %3254 = vmatpush1.msra.mxu0 %v2720_v33  ;;  %v2881_v33 = vld [vmem:[%s12013_s5 + $0x748] sm:$0xff] }
 0x336   :  { %3255 = vmatprep.subr.mxu0 %v2716_v45  ;;  %v2791_v45 = vld [vmem:[%s12013_s5 + $0x478] sm:$0xff] }
 0x337   :  { %3256 = vmatpush1.msra.mxu0 %v2715_v30  ;;  %v2880_v30 = vld [vmem:[%s12013_s5 + $0x740] sm:$0xff] }
 0x338   :  { %3257 = vmatprep.subr.mxu0 %v2711_v47  ;;  %v2790_v47 = vld [vmem:[%s12013_s5 + $0x470] sm:$0xff] }
 0x339   :  { %3258 = vmatpush1.msra.mxu0 %v2710_v48  ;;  %v2876_v48 = vld [vmem:[%s12013_s5 + $0x720] sm:$0xff] }
 0x33a   :  { %3259 = vmatprep.subr.mxu0 %v2706_v20  ;;  %v2786_v20 = vld [vmem:[%s12013_s5 + $0x450] sm:$0xff] }
 0x33b   :  { %3260 = vmatpush1.msra.mxu0 %v2705_v22  ;;  %v2875_v22 = vld [vmem:[%s12013_s5 + $0x718] sm:$0xff] }
 0x33c   :  { %3261 = vmatprep.subr.mxu0 %v2701_v28  ;;  %v5990_v57 = vpop.f32.mrf.mxu0  ;;  %v2785_v28 = vld [vmem:[%s12013_s5 + $0x448] sm:$0xff] }
 0x33d   :  { %3262 = vmatpush1.msra.mxu0 %v2700_v49  ;;  %v2871_v49 = vld [vmem:[%s12013_s5 + $0x6f8] sm:$0xff] }
 0x33e   :  { %3263 = vmatprep.subr.mxu0 %v2696_v50  ;;  %v5991_v61 = vpop.f32.mrf.mxu0  ;;  %v2781_v50 = vld [vmem:[%s12013_s5 + $0x428] sm:$0xff] }
 0x33f   :  { %3264 = vmatpush1.msra.mxu0 %v2695_v24  ;;  %v5992_v9 = vadd.f32 %v5991_v61, %v5990_v57  ;;  %v2870_v24 = vld [vmem:[%s12013_s5 + $0x6f0] sm:$0xff]  ;;  %v2771_v57 = vld [vmem:[%s12013_s5 + $0x3d8] sm:$0xff] }
 0x340   :  { %3265 = vmatprep.subr.mxu0 %v2691_v51  ;;  %v2780_v51 = vld [vmem:[%s12013_s5 + $0x420] sm:$0xff]  ;;  %v2855_v61 = vld [vmem:[%s12013_s5 + $0x678] sm:$0xff] }
 0x341   :  { %3266 = vmatpush1.msra.mxu0 %v2690_v14  ;;  %v2500_v16 = vadd.f32 %v5992_v9, %v1997_v7  ;;  %v2866_v14 = vld [vmem:[%s12013_s5 + $0x6d0] sm:$0xff]  ;;  %v2760_v9 = vld [vmem:[%s12013_s5 + $0x380] sm:$0xff] }
 0x342   :  { %3267 = vmatprep.subr.mxu0 %v2686_v52  ;;  %v2776_v52 = vld [vmem:[%s12013_s5 + $0x400] sm:$0xff]  ;;  %v2850_v7 = vld [vmem:[%s12013_s5 + $0x650] sm:$0xff] }
 0x343   :  { %3268 = vmatpush1.msra.mxu0 %v2685_v53  ;;  %v2865_v53 = vld [vmem:[%s12013_s5 + $0x6c8] sm:$0xff] }
 0x344   :  { %3269 = vmatprep.subr.mxu0 %v2681_v44  ;;  %v2775_v44 = vld [vmem:[%s12013_s5 + $0x3f8] sm:$0xff] }
 0x345   :  { %3270 = vmatpush1.msra.mxu0 %v2680_v55  ;;  %v2861_v55 = vld [vmem:[%s12013_s5 + $0x6a8] sm:$0xff] }
 0x346   :  { %3271 = vmatprep.subr.mxu0 %v2676_v36  ;;  %v2860_v36 = vld [vmem:[%s12013_s5 + $0x6a0] sm:$0xff] }
 0x347   :  { %3272 = vmatpush1.msra.mxu0 %v2675_v58  ;;  %v2770_v58 = vld [vmem:[%s12013_s5 + $0x3d0] sm:$0xff] }
 0x348   :  { %3273 = vmatprep.subr.mxu0 %v2671_v59  ;;  %v2856_v59 = vld [vmem:[%s12013_s5 + $0x680] sm:$0xff] }
 0x349   :  { %3274 = vmatpush1.msra.mxu0 %v2670_v60  ;;  %v2766_v60 = vld [vmem:[%s12013_s5 + $0x3b0] sm:$0xff] }
 0x34a   :  { %3275 = vmatprep.subr.mxu0 %v2666_v1  ;;  %v2765_v1 = vld [vmem:[%s12013_s5 + $0x3a8] sm:$0xff] }
 0x34b   :  { %v6025_v11 = vpop.f32.mrf.mxu1  ;;  %3276 = vmatpush1.msra.mxu0 %v2665_v2  ;;  %v2851_v2 = vld [vmem:[%s12013_s5 + $0x658] sm:$0xff] }
 0x34c   :  { %3277 = vmatprep.subr.mxu0 %v2661_v4  ;;  %v2761_v4 = vld [vmem:[%s12013_s5 + $0x388] sm:$0xff] }
 0x34d   :  { %v2639_v15 = vpop.f32.mrf.mxu0  ;;  %v6026_v56 = vpop.f32.mrf.mxu1  ;;  %3278 = vmatpush1.msra.mxu0 %v2660_v10  ;;  %v2846_v10 = vld [vmem:[%s12013_s5 + $0x630] sm:$0xff] }
 0x34e   :  { %v6027_v17 = vadd.f32 %v6026_v56, %v6025_v11  ;;  %3279 = vmatprep.subr.mxu0 %v2656_v12  ;;  %v2756_v11 = vld [vmem:[%s12013_s5 + $0x360] sm:$0xff]  ;;  %v2845_v12 = vld [vmem:[%s12013_s5 + $0x628] sm:$0xff]  ;;  %v2751_v56 = vld [vmem:[%s12013_s5 + $0x338] sm:$0xff] }
 0x34f   :  { %v6465_v26 = vpop.f32.mrf.mxu0  ;;  %3280 = vmatpush1.msra.mxu0 %v2655_v13  ;;  %v2755_v13 = vld [vmem:[%s12013_s5 + $0x358] sm:$0xff] }
 0x350   :  { %v2570_v34 = vadd.f32 %v6027_v17, %v2500_v16  ;;  %3281 = vmatprep.subr.mxu0 %v2651_v46  ;;  %v2840_v46 = vld [vmem:[%s12013_s5 + $0x600] sm:$0xff]  ;;  %v2750_v16 = vld [vmem:[%s12013_s5 + $0x330] sm:$0xff]  ;;  %v2835_v26 = vld [vmem:[%s12013_s5 + $0x5d8] sm:$0xff] }
 0x351   :  { %3282 = vmatpush1.msra.mxu0 %v2650_v19  ;;  %v2836_v17 = vld [vmem:[%s12013_s5 + $0x5e0] sm:$0xff]  ;;  %v2746_v19 = vld [vmem:[%s12013_s5 + $0x310] sm:$0xff] }
 0x352   :  { %v2640_v25 = vadd.f32 %v2639_v15, %v2570_v34  ;;  %3283 = vmatprep.subr.mxu0 %v2806_v32  ;;  %v2841_v15 = vld [vmem:[%s12013_s5 + $0x608] sm:$0xff]  ;;  %v2831_v34 = vld [vmem:[%s12013_s5 + $0x5b8] sm:$0xff] }
 0x353   :  { %3284 = vmatpush2.msra.mxu0 %v2805_v35  ;;  %v2745_v32 = vld [vmem:[%s12013_s5 + $0x308] sm:$0xff] }
 0x354   :  { %v10418_v40 = vmax.f32 %v2640_v25, 0.0  ;;  %3285 = vmatprep.subr.mxu0 %v2801_v37  ;;  %v2741_v35 = vld [vmem:[%s12013_s5 + $0x2e8] sm:$0xff]  ;;  %v2830_v37 = vld [vmem:[%s12013_s5 + $0x5b0] sm:$0xff]  ;;  %v2740_v25 = vld [vmem:[%s12013_s5 + $0x2e0] sm:$0xff] }
 0x355   :  { %3286 = vmatpush2.msra.mxu0 %v2800_v38  ;;  %v2826_v38 = vld [vmem:[%s12013_s5 + $0x590] sm:$0xff] }
 0x356   :  { %5588 = vmatmul.mubr.msk.f32.vlgmr.msra.gmra.mxu1 %vm2003_vm0, %v10418_v40  ;;  %3287 = vmatprep.subr.mxu0 %v2796_v39  ;;  %v2736_v39 = vld [vmem:[%s12013_s5 + $0x2c0] sm:$0xff] }
 0x357   :  { %3323 = vmatpush1.msra.mxu1 %v2885_v43  ;;  %3288 = vmatpush2.msra.mxu0 %v2795_v27  ;;  %v2825_v43 = vld [vmem:[%s12013_s5 + $0x588] sm:$0xff]  ;;  %v2735_v27 = vld [vmem:[%s12013_s5 + $0x2b8] sm:$0xff] }
 0x358   :  { %3324 = vmatprep.subr.mxu1 %v2881_v33  ;;  %3386 = vmatprep.mubr.f32.mxu1 %v10301_v41  ;;  %v2821_v33 = vld [vmem:[%s12013_s5 + $0x568] sm:$0xff] }
 0x359   :  { %3289 = vmatprep.subr.mxu0 %v2791_v45  ;;  %3325 = vmatpush1.msra.mxu1 %v2880_v30  ;;  %v2731_v45 = vld [vmem:[%s12013_s5 + $0x298] sm:$0xff]  ;;  %v2820_v30 = vld [vmem:[%s12013_s5 + $0x560] sm:$0xff] }
 0x35a   :  { %3290 = vmatpush2.msra.mxu0 %v2790_v47  ;;  %3326 = vmatprep.subr.mxu1 %v2876_v48  ;;  %v2730_v47 = vld [vmem:[%s12013_s5 + $0x290] sm:$0xff]  ;;  %v2816_v48 = vld [vmem:[%s12013_s5 + $0x540] sm:$0xff] }
 0x35b   :  { %3291 = vmatprep.subr.mxu0 %v2786_v20  ;;  %3327 = vmatpush1.msra.mxu1 %v2875_v22  ;;  %v2815_v20 = vld [vmem:[%s12013_s5 + $0x538] sm:$0xff]  ;;  %v3006_v22 = vld [vmem:[%s12013_s5 + $0xb30] sm:$0xff] }
 0x35c   :  { %3292 = vmatpush2.msra.mxu0 %v2785_v28  ;;  %3328 = vmatprep.subr.mxu1 %v2871_v49  ;;  %v2811_v28 = vld [vmem:[%s12013_s5 + $0x518] sm:$0xff]  ;;  %v3005_v49 = vld [vmem:[%s12013_s5 + $0xb28] sm:$0xff] }
 0x35d   :  { %3293 = vmatprep.subr.mxu0 %v2781_v50  ;;  %3329 = vmatpush1.msra.mxu1 %v2870_v24  ;;  %v2810_v50 = vld [vmem:[%s12013_s5 + $0x510] sm:$0xff]  ;;  %v3001_v24 = vld [vmem:[%s12013_s5 + $0xb08] sm:$0xff] }
 0x35e   :  { %3294 = vmatpush2.msra.mxu0 %v2780_v51  ;;  %3330 = vmatprep.subr.mxu1 %v2866_v14  ;;  %v2966_v51 = vld [vmem:[%s12013_s5 + $0x9f0] sm:$0xff]  ;;  %v3000_v14 = vld [vmem:[%s12013_s5 + $0xb00] sm:$0xff] }
 0x35f   :  { %3295 = vmatprep.subr.mxu0 %v2776_v52  ;;  %3331 = vmatpush1.msra.mxu1 %v2865_v53  ;;  %v2965_v52 = vld [vmem:[%s12013_s5 + $0x9e8] sm:$0xff]  ;;  %v2996_v53 = vld [vmem:[%s12013_s5 + $0xae0] sm:$0xff] }
 0x360   :  { %3296 = vmatpush2.msra.mxu0 %v2775_v44  ;;  %3332 = vmatprep.subr.mxu1 %v2861_v55  ;;  %v2961_v44 = vld [vmem:[%s12013_s5 + $0x9c8] sm:$0xff]  ;;  %v2995_v55 = vld [vmem:[%s12013_s5 + $0xad8] sm:$0xff] }
 0x361   :  { %3297 = vmatprep.subr.mxu0 %v2771_v57  ;;  %3333 = vmatpush1.msra.mxu1 %v2860_v36  ;;  %v2960_v57 = vld [vmem:[%s12013_s5 + $0x9c0] sm:$0xff]  ;;  %v2991_v36 = vld [vmem:[%s12013_s5 + $0xab8] sm:$0xff] }
 0x362   :  { %3298 = vmatpush2.msra.mxu0 %v2770_v58  ;;  %3334 = vmatprep.subr.mxu1 %v2856_v59  ;;  %v2956_v58 = vld [vmem:[%s12013_s5 + $0x9a0] sm:$0xff]  ;;  %v2990_v59 = vld [vmem:[%s12013_s5 + $0xab0] sm:$0xff] }
 0x363   :  { %3299 = vmatprep.subr.mxu0 %v2766_v60  ;;  %3335 = vmatpush1.msra.mxu1 %v2855_v61  ;;  %v2955_v60 = vld [vmem:[%s12013_s5 + $0x998] sm:$0xff]  ;;  %v2986_v61 = vld [vmem:[%s12013_s5 + $0xa90] sm:$0xff] }
 0x364   :  { %3300 = vmatpush2.msra.mxu0 %v2765_v1  ;;  %3336 = vmatprep.subr.mxu1 %v2851_v2  ;;  %v2951_v1 = vld [vmem:[%s12013_s5 + $0x978] sm:$0xff]  ;;  %v2985_v2 = vld [vmem:[%s12013_s5 + $0xa88] sm:$0xff] }
 0x365   :  { %3301 = vmatprep.subr.mxu0 %v2761_v4  ;;  %3337 = vmatpush1.msra.mxu1 %v2850_v7  ;;  %v2950_v4 = vld [vmem:[%s12013_s5 + $0x970] sm:$0xff]  ;;  %v2981_v7 = vld [vmem:[%s12013_s5 + $0xa68] sm:$0xff] }
 0x366   :  { %3302 = vmatpush2.msra.mxu0 %v2760_v9  ;;  %3338 = vmatprep.subr.mxu1 %v2846_v10  ;;  %v2946_v9 = vld [vmem:[%s12013_s5 + $0x950] sm:$0xff]  ;;  %v2980_v10 = vld [vmem:[%s12013_s5 + $0xa60] sm:$0xff] }
 0x367   :  { %3303 = vmatprep.subr.mxu0 %v2756_v11  ;;  %3339 = vmatpush1.msra.mxu1 %v2845_v12  ;;  %v2945_v11 = vld [vmem:[%s12013_s5 + $0x948] sm:$0xff]  ;;  %v2976_v12 = vld [vmem:[%s12013_s5 + $0xa40] sm:$0xff] }
 0x368   :  { %3304 = vmatpush2.msra.mxu0 %v2755_v13  ;;  %3340 = vmatprep.subr.mxu1 %v2841_v15  ;;  %v2941_v13 = vld [vmem:[%s12013_s5 + $0x928] sm:$0xff]  ;;  %v2975_v15 = vld [vmem:[%s12013_s5 + $0xa38] sm:$0xff] }
 0x369   :  { %3305 = vmatprep.subr.mxu0 %v2751_v56  ;;  %3341 = vmatpush1.msra.mxu1 %v2840_v46  ;;  %v2940_v56 = vld [vmem:[%s12013_s5 + $0x920] sm:$0xff]  ;;  %v2971_v46 = vld [vmem:[%s12013_s5 + $0xa18] sm:$0xff] }
 0x36a   :  { %3306 = vmatpush2.msra.mxu0 %v2750_v16  ;;  %3342 = vmatprep.subr.mxu1 %v2836_v17  ;;  %v2936_v16 = vld [vmem:[%s12013_s5 + $0x900] sm:$0xff]  ;;  %v2970_v17 = vld [vmem:[%s12013_s5 + $0xa10] sm:$0xff] }
 0x36b   :  { %3307 = vmatprep.subr.mxu0 %v2746_v19  ;;  %3343 = vmatpush1.msra.mxu1 %v2835_v26  ;;  %v2935_v19 = vld [vmem:[%s12013_s5 + $0x8f8] sm:$0xff] }
 0x36c   :  { %3308 = vmatpush2.msra.mxu0 %v2745_v32  ;;  %3344 = vmatprep.subr.mxu1 %v2831_v34  ;;  %v2967_v26 = vld [vmem:[%s12013_s5 + $0x9f8] sm:$0xff] }
 0x36d   :  { %3309 = vmatprep.subr.mxu0 %v2741_v35  ;;  %3345 = vmatpush1.msra.mxu1 %v2830_v37  ;;  %v2931_v32 = vld [vmem:[%s12013_s5 + $0x8d8] sm:$0xff]  ;;  %v2930_v35 = vld [vmem:[%s12013_s5 + $0x8d0] sm:$0xff] }
 0x36e   :  { %3310 = vmatpush2.msra.mxu0 %v2740_v25  ;;  %3346 = vmatprep.subr.mxu1 %v2826_v38  ;;  %v2887_v34 = vld [vmem:[%s12013_s5 + $0x778] sm:$0xff]  ;;  %v2962_v37 = vld [vmem:[%s12013_s5 + $0x9d0] sm:$0xff] }
 0x36f   :  { %3311 = vmatprep.subr.mxu0 %v2736_v39  ;;  %3347 = vmatpush1.msra.mxu1 %v2825_v43  ;;  %v2926_v25 = vld [vmem:[%s12013_s5 + $0x8b0] sm:$0xff]  ;;  %v2925_v39 = vld [vmem:[%s12013_s5 + $0x8a8] sm:$0xff] }
 0x370   :  { %3312 = vmatpush2.msra.mxu0 %v2735_v27  ;;  %3348 = vmatprep.subr.mxu1 %v2821_v33  ;;  %v2882_v38 = vld [vmem:[%s12013_s5 + $0x750] sm:$0xff]  ;;  %v2957_v43 = vld [vmem:[%s12013_s5 + $0x9a8] sm:$0xff] }
 0x371   :  { %3313 = vmatprep.subr.mxu0 %v2731_v45  ;;  %3349 = vmatpush1.msra.mxu1 %v2820_v30  ;;  %v2921_v27 = vld [vmem:[%s12013_s5 + $0x888] sm:$0xff]  ;;  %v2952_v45 = vld [vmem:[%s12013_s5 + $0x980] sm:$0xff] }
 0x372   :  { %3314 = vmatpush2.msra.mxu0 %v2730_v47  ;;  %3350 = vmatprep.subr.mxu1 %v2816_v48  ;;  %v2877_v33 = vld [vmem:[%s12013_s5 + $0x728] sm:$0xff]  ;;  %v2916_v30 = vld [vmem:[%s12013_s5 + $0x860] sm:$0xff]  ;;  %v2915_v48 = vld [vmem:[%s12013_s5 + $0x858] sm:$0xff] }
 0x373   :  { %3316 = vmatmul.mubr.f32.vlgmr.msra.gmra.mxu0 %v10244_v63  ;;  %3351 = vmatpush1.msra.mxu1 %v2815_v20  ;;  %v2872_v47 = vld [vmem:[%s12013_s5 + $0x700] sm:$0xff]  ;;  %v2947_v20 = vld [vmem:[%s12013_s5 + $0x958] sm:$0xff] }
 0x374   :  { %3409 = vmatprep.subr.mxu0 %v3006_v22  ;;  %3352 = vmatprep.subr.mxu1 %v2811_v28  ;;  %v2911_v22 = vld [vmem:[%s12013_s5 + $0x838] sm:$0xff] }
 0x375   :  { %3410 = vmatpush1.msra.mxu0 %v3005_v49  ;;  %3353 = vmatpush1.msra.mxu1 %v2810_v50  ;;  %v2867_v28 = vld [vmem:[%s12013_s5 + $0x6d8] sm:$0xff]  ;;  %v2910_v49 = vld [vmem:[%s12013_s5 + $0x830] sm:$0xff] }
 0x376   :  { %3411 = vmatprep.subr.mxu0 %v3001_v24  ;;  %3354 = vmatprep.subr.mxu1 %v2966_v51  ;;  %v2942_v50 = vld [vmem:[%s12013_s5 + $0x930] sm:$0xff] }
 0x377   :  { %3412 = vmatpush1.msra.mxu0 %v3000_v14  ;;  %3355 = vmatpush2.msra.mxu1 %v2965_v52  ;;  %v2906_v24 = vld [vmem:[%s12013_s5 + $0x810] sm:$0xff]  ;;  %v2905_v14 = vld [vmem:[%s12013_s5 + $0x808] sm:$0xff] }
 0x378   :  { %3413 = vmatprep.subr.mxu0 %v2996_v53  ;;  %3356 = vmatprep.subr.mxu1 %v2961_v44  ;;  %v2862_v51 = vld [vmem:[%s12013_s5 + $0x6b0] sm:$0xff]  ;;  %v2937_v52 = vld [vmem:[%s12013_s5 + $0x908] sm:$0xff] }
 0x379   :  { %3414 = vmatpush1.msra.mxu0 %v2995_v55  ;;  %3357 = vmatpush2.msra.mxu1 %v2960_v57  ;;  %v2901_v53 = vld [vmem:[%s12013_s5 + $0x7e8] sm:$0xff]  ;;  %v2900_v55 = vld [vmem:[%s12013_s5 + $0x7e0] sm:$0xff] }
 0x37a   :  { %3415 = vmatprep.subr.mxu0 %v2991_v36  ;;  %3358 = vmatprep.subr.mxu1 %v2956_v58  ;;  %v2857_v44 = vld [vmem:[%s12013_s5 + $0x688] sm:$0xff]  ;;  %v2932_v57 = vld [vmem:[%s12013_s5 + $0x8e0] sm:$0xff] }
 0x37b   :  { %3416 = vmatpush1.msra.mxu0 %v2990_v59  ;;  %3359 = vmatpush2.msra.mxu1 %v2955_v60  ;;  %v2896_v36 = vld [vmem:[%s12013_s5 + $0x7c0] sm:$0xff]  ;;  %v2895_v59 = vld [vmem:[%s12013_s5 + $0x7b8] sm:$0xff] }
 0x37c   :  { %3417 = vmatprep.subr.mxu0 %v2986_v61  ;;  %3360 = vmatprep.subr.mxu1 %v2951_v1  ;;  %v2852_v58 = vld [vmem:[%s12013_s5 + $0x660] sm:$0xff]  ;;  %v2927_v60 = vld [vmem:[%s12013_s5 + $0x8b8] sm:$0xff] }
 0x37d   :  { %3418 = vmatpush1.msra.mxu0 %v2985_v2  ;;  %3361 = vmatpush2.msra.mxu1 %v2950_v4  ;;  %v2891_v61 = vld [vmem:[%s12013_s5 + $0x798] sm:$0xff]  ;;  %v2890_v2 = vld [vmem:[%s12013_s5 + $0x790] sm:$0xff] }
 0x37e   :  { %3419 = vmatprep.subr.mxu0 %v2981_v7  ;;  %3362 = vmatprep.subr.mxu1 %v2946_v9  ;;  %v2847_v1 = vld [vmem:[%s12013_s5 + $0x638] sm:$0xff]  ;;  %v2922_v4 = vld [vmem:[%s12013_s5 + $0x890] sm:$0xff] }
 0x37f   :  { %3420 = vmatpush1.msra.mxu0 %v2980_v10  ;;  %3363 = vmatpush2.msra.mxu1 %v2945_v11  ;;  %v2807_v7 = vld [vmem:[%s12013_s5 + $0x4f8] sm:$0xff]  ;;  %v2842_v9 = vld [vmem:[%s12013_s5 + $0x610] sm:$0xff]  ;;  %v2917_v11 = vld [vmem:[%s12013_s5 + $0x868] sm:$0xff] }
 0x380   :  { %3421 = vmatprep.subr.mxu0 %v2976_v12  ;;  %3364 = vmatprep.subr.mxu1 %v2941_v13  ;;  %v2727_v10 = vld [vmem:[%s12013_s5 + $0x278] sm:$0xff]  ;;  %v2802_v12 = vld [vmem:[%s12013_s5 + $0x4d0] sm:$0xff]  ;;  %v2837_v13 = vld [vmem:[%s12013_s5 + $0x5e8] sm:$0xff] }
 0x381   :  { %3422 = vmatpush1.msra.mxu0 %v2975_v15  ;;  %3365 = vmatpush2.msra.mxu1 %v2940_v56  ;;  %v2722_v15 = vld [vmem:[%s12013_s5 + $0x250] sm:$0xff]  ;;  %v2912_v56 = vld [vmem:[%s12013_s5 + $0x840] sm:$0xff] }
 0x382   :  { %3423 = vmatprep.subr.mxu0 %v2971_v46  ;;  %3366 = vmatprep.subr.mxu1 %v2936_v16  ;;  %v2797_v46 = vld [vmem:[%s12013_s5 + $0x4a8] sm:$0xff]  ;;  %v2832_v16 = vld [vmem:[%s12013_s5 + $0x5c0] sm:$0xff] }
 0x383   :  { %3424 = vmatpush1.msra.mxu0 %v2970_v17  ;;  %3457 = vmatprep.mubr.f32.mxu0 %v6620_v5  ;;  %v2717_v17 = vld [vmem:[%s12013_s5 + $0x228] sm:$0xff] }
 0x384   :  { %3367 = vmatpush2.msra.mxu1 %v2935_v19  ;;  %5589 = vmatmul.mubr.msk.f32.vlgmr.msra.gmra.mxu0 %vm2003_vm0, %v10418_v40  ;;  %v2907_v19 = vld [vmem:[%s12013_s5 + $0x818] sm:$0xff] }
 0x385   :  { %6072 = vmatprep.subr.mxu0 %v2967_v26  ;;  %3368 = vmatprep.subr.mxu1 %v2931_v32  ;;  %v2827_v26 = vld [vmem:[%s12013_s5 + $0x598] sm:$0xff]  ;;  %v2712_v32 = vld [vmem:[%s12013_s5 + $0x200] sm:$0xff] }
 0x386   :  { %6073 = vmatpush3.msra.mxu0 %v2887_v34  ;;  %3598 = vmatprep.mubr.f32.mxu0 %v10301_v41  ;;  %v2920_v41 = vld [vmem:[%s12013_s5 + $0x880] sm:$0xff]  ;;  %v2902_v34 = vld [vmem:[%s12013_s5 + $0x7f0] sm:$0xff] }
 0x387   :  { %3369 = vmatpush2.msra.mxu1 %v2930_v35  ;;  %6074 = vmatprep.subr.mxu0 %v2962_v37  ;;  %v2787_v35 = vld [vmem:[%s12013_s5 + $0x458] sm:$0xff]  ;;  %v2822_v37 = vld [vmem:[%s12013_s5 + $0x570] sm:$0xff] }
 0x388   :  { %3370 = vmatprep.subr.mxu1 %v2926_v25  ;;  %6075 = vmatpush3.msra.mxu0 %v2882_v38  ;;  %v2707_v25 = vld [vmem:[%s12013_s5 + $0x1d8] sm:$0xff]  ;;  %v2897_v38 = vld [vmem:[%s12013_s5 + $0x7c8] sm:$0xff] }
 0x389   :  { %3371 = vmatpush2.msra.mxu1 %v2925_v39  ;;  %6076 = vmatprep.subr.mxu0 %v2957_v43  ;;  %v2782_v39 = vld [vmem:[%s12013_s5 + $0x430] sm:$0xff]  ;;  %v2817_v43 = vld [vmem:[%s12013_s5 + $0x548] sm:$0xff] }
 0x38a   :  { %3372 = vmatprep.subr.mxu1 %v2921_v27  ;;  %6077 = vmatpush3.msra.mxu0 %v2877_v33  ;;  %v2702_v27 = vld [vmem:[%s12013_s5 + $0x1b0] sm:$0xff]  ;;  %v2892_v33 = vld [vmem:[%s12013_s5 + $0x7a0] sm:$0xff] }
 0x38b   :  { %3373 = vmatpush2.msra.mxu1 %v2920_v41  ;;  %6078 = vmatprep.subr.mxu0 %v2952_v45  ;;  %v2777_v41 = vld [vmem:[%s12013_s5 + $0x408] sm:$0xff]  ;;  %v2812_v45 = vld [vmem:[%s12013_s5 + $0x520] sm:$0xff] }
 0x38c   :  { %3374 = vmatprep.subr.mxu1 %v2916_v30  ;;  %6079 = vmatpush3.msra.mxu0 %v2872_v47  ;;  %v2697_v30 = vld [vmem:[%s12013_s5 + $0x188] sm:$0xff]  ;;  %v2772_v47 = vld [vmem:[%s12013_s5 + $0x3e0] sm:$0xff] }
 0x38d   :  { %3375 = vmatpush2.msra.mxu1 %v2915_v48  ;;  %6080 = vmatprep.subr.mxu0 %v2947_v20  ;;  %v3715_v48 = vld [vmem:[%s12015_s7 + $0xf8] sm:$0xff]  ;;  %v2692_v20 = vld [vmem:[%s12013_s5 + $0x160] sm:$0xff] }
 0x38e   :  { %3376 = vmatprep.subr.mxu1 %v2911_v22  ;;  %6081 = vmatpush3.msra.mxu0 %v2867_v28  ;;  %v3699_v22 = vld [vmem:[%s12015_s7 + $0x78] sm:$0xff] }
 0x38f   :  { %3377 = vmatpush2.msra.mxu1 %v2910_v49  ;;  %6082 = vmatprep.subr.mxu0 %v2942_v50  ;;  %v2767_v28 = vld [vmem:[%s12013_s5 + $0x3b8] sm:$0xff]  ;;  %v3714_v49 = vld [vmem:[%s12015_s7 + $0xf0] sm:$0xff] }
 0x390   :  { %3378 = vmatprep.subr.mxu1 %v2906_v24  ;;  %6083 = vmatpush3.msra.mxu0 %v2862_v51  ;;  %v2687_v50 = vld [vmem:[%s12013_s5 + $0x138] sm:$0xff]  ;;  %v3698_v24 = vld [vmem:[%s12015_s7 + $0x70] sm:$0xff]  ;;  %v3713_v51 = vld [vmem:[%s12015_s7 + $0xe8] sm:$0xff] }
 0x391   :  { %3379 = vmatpush2.msra.mxu1 %v2905_v14  ;;  %6084 = vmatprep.subr.mxu0 %v2937_v52  ;;  %v2682_v14 = vld [vmem:[%s12013_s5 + $0x110] sm:$0xff]  ;;  %v3697_v52 = vld [vmem:[%s12015_s7 + $0x68] sm:$0xff] }
 0x392   :  { %3380 = vmatprep.subr.mxu1 %v2901_v53  ;;  %6085 = vmatpush3.msra.mxu0 %v2857_v44  ;;  %v2757_v53 = vld [vmem:[%s12013_s5 + $0x368] sm:$0xff]  ;;  %v3712_v44 = vld [vmem:[%s12015_s7 + $0xe0] sm:$0xff] }
 0x393   :  { %3381 = vmatpush2.msra.mxu1 %v2900_v55  ;;  %6086 = vmatprep.subr.mxu0 %v2932_v57  ;;  %v2677_v55 = vld [vmem:[%s12013_s5 + $0xe8] sm:$0xff]  ;;  %v3696_v57 = vld [vmem:[%s12015_s7 + $0x60] sm:$0xff] }
 0x394   :  { %3382 = vmatprep.subr.mxu1 %v2896_v36  ;;  %6087 = vmatpush3.msra.mxu0 %v2852_v58  ;;  %v2752_v36 = vld [vmem:[%s12013_s5 + $0x340] sm:$0xff]  ;;  %v3711_v58 = vld [vmem:[%s12015_s7 + $0xd8] sm:$0xff] }
 0x395   :  { %3383 = vmatpush2.msra.mxu1 %v2895_v59  ;;  %6088 = vmatprep.subr.mxu0 %v2927_v60  ;;  %v2672_v59 = vld [vmem:[%s12013_s5 + $0xc0] sm:$0xff]  ;;  %v3695_v60 = vld [vmem:[%s12015_s7 + $0x58] sm:$0xff] }
 0x396   :  { %3384 = vmatprep.subr.mxu1 %v2891_v61  ;;  %6089 = vmatpush3.msra.mxu0 %v2847_v1  ;;  %v2747_v61 = vld [vmem:[%s12013_s5 + $0x318] sm:$0xff]  ;;  %v3710_v1 = vld [vmem:[%s12015_s7 + $0xd0] sm:$0xff] }
 0x397   :  { %3385 = vmatpush2.msra.mxu1 %v2890_v2  ;;  %6090 = vmatprep.subr.mxu0 %v2922_v4  ;;  %v2667_v2 = vld [vmem:[%s12013_s5 + $0x98] sm:$0xff]  ;;  %v3694_v4 = vld [vmem:[%s12015_s7 + $0x50] sm:$0xff] }
 0x398   :  { %3387 = vmatmul.mubr.f32.vlgmr.msra.gmra.mxu1 %v10303_v42  ;;  %6037 = vmatprep.subr.mxu1 %v2807_v7  ;;  %v2742_v7 = vld [vmem:[%s12013_s5 + $0x2f0] sm:$0xff] }
 0x399   :  { %6091 = vmatpush3.msra.mxu0 %v2842_v9  ;;  %6038 = vmatpush3.msra.mxu1 %v2727_v10  ;;  %v3709_v9 = vld [vmem:[%s12015_s7 + $0xc8] sm:$0xff]  ;;  %v2662_v10 = vld [vmem:[%s12013_s5 + $0x70] sm:$0xff] }
 0x39a   :  { %3528 = vmatprep.mubr.f32.mxu1 %v10242_v54  ;;  %6092 = vmatprep.subr.mxu0 %v2917_v11  ;;  %v2792_v54 = vld [vmem:[%s12013_s5 + $0x480] sm:$0xff]  ;;  %v3693_v11 = vld [vmem:[%s12015_s7 + $0x48] sm:$0xff] }
 0x39b   :  { %6039 = vmatprep.subr.mxu1 %v2802_v12  ;;  %6093 = vmatpush3.msra.mxu0 %v2837_v13  ;;  %v2737_v12 = vld [vmem:[%s12013_s5 + $0x2c8] sm:$0xff]  ;;  %v3708_v13 = vld [vmem:[%s12015_s7 + $0xc0] sm:$0xff] }
 0x39c   :  { %6040 = vmatpush3.msra.mxu1 %v2722_v15  ;;  %6094 = vmatprep.subr.mxu0 %v2912_v56  ;;  %v2657_v15 = vld [vmem:[%s12013_s5 + $0x48] sm:$0xff]  ;;  %v3692_v56 = vld [vmem:[%s12015_s7 + $0x40] sm:$0xff] }
 0x39d   :  { %6041 = vmatprep.subr.mxu1 %v2797_v46  ;;  %6095 = vmatpush3.msra.mxu0 %v2832_v16  ;;  %v2732_v46 = vld [vmem:[%s12013_s5 + $0x2a0] sm:$0xff]  ;;  %v3707_v16 = vld [vmem:[%s12015_s7 + $0xb8] sm:$0xff] }
 0x39e   :  { %6042 = vmatpush3.msra.mxu1 %v2717_v17  ;;  %6096 = vmatprep.subr.mxu0 %v2907_v19  ;;  %v2652_v17 = vld [vmem:[%s12013_s5 + $0x20] sm:$0xff]  ;;  %v3691_v19 = vld [vmem:[%s12015_s7 + $0x38] sm:$0xff] }
 0x39f   :  { %6043 = vmatprep.subr.mxu1 %v2792_v54  ;;  %6097 = vmatpush3.msra.mxu0 %v2827_v26  ;;  %v3007_v54 = vld [vmem:[%s12013_s5 + $0xb38] sm:$0xff]  ;;  %v3706_v26 = vld [vmem:[%s12015_s7 + $0xb0] sm:$0xff] }
 0x3a0   :  { %6044 = vmatpush3.msra.mxu1 %v2712_v32  ;;  %6098 = vmatprep.subr.mxu0 %v2902_v34  ;;  %v3002_v32 = vld [vmem:[%s12013_s5 + $0xb10] sm:$0xff] }
 0x3a1   :  { %6045 = vmatprep.subr.mxu1 %v2787_v35  ;;  %6099 = vmatpush3.msra.mxu0 %v2822_v37  ;;  %v3690_v34 = vld [vmem:[%s12015_s7 + $0x30] sm:$0xff]  ;;  %v3705_v35 = vld [vmem:[%s12015_s7 + $0xa8] sm:$0xff] }
 0x3a2   :  { %6046 = vmatpush3.msra.mxu1 %v2707_v25  ;;  %6100 = vmatprep.subr.mxu0 %v2897_v38  ;;  %v3689_v37 = vld [vmem:[%s12015_s7 + $0x28] sm:$0xff]  ;;  %v3704_v25 = vld [vmem:[%s12015_s7 + $0xa0] sm:$0xff] }
 0x3a3   :  { %6047 = vmatprep.subr.mxu1 %v2782_v39  ;;  %6101 = vmatpush3.msra.mxu0 %v2817_v43  ;;  %v2992_v38 = vld [vmem:[%s12013_s5 + $0xac0] sm:$0xff]  ;;  %v3703_v43 = vld [vmem:[%s12015_s7 + $0x98] sm:$0xff] }
 0x3a4   :  { %6048 = vmatpush3.msra.mxu1 %v2702_v27  ;;  %6102 = vmatprep.subr.mxu0 %v2892_v33  ;;  %v3688_v39 = vld [vmem:[%s12015_s7 + $0x20] sm:$0xff]  ;;  %v2987_v27 = vld [vmem:[%s12013_s5 + $0xa98] sm:$0xff] }
 0x3a5   :  { %6049 = vmatprep.subr.mxu1 %v2777_v41  ;;  %6103 = vmatpush3.msra.mxu0 %v2812_v45  ;;  %v3687_v33 = vld [vmem:[%s12015_s7 + $0x18] sm:$0xff]  ;;  %v3702_v41 = vld [vmem:[%s12015_s7 + $0x90] sm:$0xff] }
 0x3a6   :  { %6050 = vmatpush3.msra.mxu1 %v2697_v30  ;;  %3599 = vmatmul.mubr.f32.vlgmr.msra.gmra.mxu0 %v10303_v42  ;;  %v2762_v42 = vld [vmem:[%s12013_s5 + $0x390] sm:$0xff] }
 0x3a7   :  { %6051 = vmatprep.subr.mxu1 %v2772_v47  ;;  %6116 = vmatprep.subr.mxu0 %v3715_v48  ;;  %v2982_v45 = vld [vmem:[%s12013_s5 + $0xa70] sm:$0xff]  ;;  %v3701_v47 = vld [vmem:[%s12015_s7 + $0x88] sm:$0xff] }
 0x3a8   :  { %6052 = vmatpush3.msra.mxu1 %v2692_v20  ;;  %6117 = vmatpush3.msra.mxu0 %v3699_v22  ;;  %v3686_v30 = vld [vmem:[%s12015_s7 + $0x10] sm:$0xff]  ;;  %v2977_v48 = vld [vmem:[%s12013_s5 + $0xa48] sm:$0xff]  ;;  %v3700_v22 = vld [vmem:[%s12015_s7 + $0x80] sm:$0xff] }
 0x3a9   :  { %6053 = vmatprep.subr.mxu1 %v2767_v28  ;;  %6118 = vmatprep.subr.mxu0 %v3714_v49  ;;  %v3685_v20 = vld [vmem:[%s12015_s7 + $0x8] sm:$0xff]  ;;  %v2972_v28 = vld [vmem:[%s12013_s5 + $0xa20] sm:$0xff] }
 0x3aa   :  { %6054 = vmatpush3.msra.mxu1 %v2687_v50  ;;  %6119 = vmatpush3.msra.mxu0 %v3698_v24  ;;  %v3684_v49 = vld [vmem:[%s12015_s7] sm:$0xff]  ;;  %v3747_v50 = vld [vmem:[%s12015_s7 + $0x1f8] sm:$0xff] }
 0x3ab   :  { %6055 = vmatprep.subr.mxu1 %v2762_v42  ;;  %6120 = vmatprep.subr.mxu0 %v3713_v51  ;;  %v3731_v24 = vld [vmem:[%s12015_s7 + $0x178] sm:$0xff]  ;;  %v3746_v42 = vld [vmem:[%s12015_s7 + $0x1f0] sm:$0xff] }
 0x3ac   :  { %6056 = vmatpush3.msra.mxu1 %v2682_v14  ;;  %6121 = vmatpush3.msra.mxu0 %v3697_v52  ;;  %v3730_v51 = vld [vmem:[%s12015_s7 + $0x170] sm:$0xff]  ;;  %v3745_v14 = vld [vmem:[%s12015_s7 + $0x1e8] sm:$0xff] }
 0x3ad   :  { %6057 = vmatprep.subr.mxu1 %v2757_v53  ;;  %6122 = vmatprep.subr.mxu0 %v3712_v44  ;;  %v3729_v52 = vld [vmem:[%s12015_s7 + $0x168] sm:$0xff]  ;;  %v3728_v53 = vld [vmem:[%s12015_s7 + $0x160] sm:$0xff]  ;;  %v3743_v44 = vld [vmem:[%s12015_s7 + $0x1d8] sm:$0xff] }
 0x3ae   :  { %6058 = vmatpush3.msra.mxu1 %v2677_v55  ;;  %6123 = vmatpush3.msra.mxu0 %v3696_v57  ;;  %v3727_v55 = vld [vmem:[%s12015_s7 + $0x158] sm:$0xff]  ;;  %v3742_v57 = vld [vmem:[%s12015_s7 + $0x1d0] sm:$0xff] }
 0x3af   :  { %6059 = vmatprep.subr.mxu1 %v2752_v36  ;;  %6124 = vmatprep.subr.mxu0 %v3711_v58  ;;  %v3726_v36 = vld [vmem:[%s12015_s7 + $0x150] sm:$0xff]  ;;  %v3741_v58 = vld [vmem:[%s12015_s7 + $0x1c8] sm:$0xff] }
 0x3b0   :  { %6060 = vmatpush3.msra.mxu1 %v2672_v59  ;;  %6125 = vmatpush3.msra.mxu0 %v3695_v60  ;;  %v3725_v59 = vld [vmem:[%s12015_s7 + $0x148] sm:$0xff]  ;;  %v3740_v60 = vld [vmem:[%s12015_s7 + $0x1c0] sm:$0xff] }
 0x3b1   :  { %6061 = vmatprep.subr.mxu1 %v2747_v61  ;;  %6126 = vmatprep.subr.mxu0 %v3710_v1  ;;  %v3724_v61 = vld [vmem:[%s12015_s7 + $0x140] sm:$0xff]  ;;  %v3739_v1 = vld [vmem:[%s12015_s7 + $0x1b8] sm:$0xff] }
 0x3b2   :  { %6062 = vmatpush3.msra.mxu1 %v2667_v2  ;;  %6127 = vmatpush3.msra.mxu0 %v3694_v4  ;;  %v3723_v2 = vld [vmem:[%s12015_s7 + $0x138] sm:$0xff]  ;;  %v3738_v4 = vld [vmem:[%s12015_s7 + $0x1b0] sm:$0xff] }
 0x3b3   :  { %6063 = vmatprep.subr.mxu1 %v2742_v7  ;;  %6128 = vmatprep.subr.mxu0 %v3709_v9  ;;  %v3722_v7 = vld [vmem:[%s12015_s7 + $0x130] sm:$0xff]  ;;  %v3737_v9 = vld [vmem:[%s12015_s7 + $0x1a8] sm:$0xff] }
 0x3b4   :  { %6064 = vmatpush3.msra.mxu1 %v2662_v10  ;;  %6129 = vmatpush3.msra.mxu0 %v3693_v11  ;;  %v3721_v10 = vld [vmem:[%s12015_s7 + $0x128] sm:$0xff]  ;;  %v3736_v11 = vld [vmem:[%s12015_s7 + $0x1a0] sm:$0xff] }
 0x3b5   :  { %6065 = vmatprep.subr.mxu1 %v2737_v12  ;;  %6130 = vmatprep.subr.mxu0 %v3708_v13  ;;  %v3720_v12 = vld [vmem:[%s12015_s7 + $0x120] sm:$0xff]  ;;  %v3735_v13 = vld [vmem:[%s12015_s7 + $0x198] sm:$0xff] }
 0x3b6   :  { %6066 = vmatpush3.msra.mxu1 %v2657_v15  ;;  %6131 = vmatpush3.msra.mxu0 %v3692_v56  ;;  %v3719_v15 = vld [vmem:[%s12015_s7 + $0x118] sm:$0xff]  ;;  %v3734_v56 = vld [vmem:[%s12015_s7 + $0x190] sm:$0xff] }
 0x3b7   :  { %6067 = vmatprep.subr.mxu1 %v2732_v46  ;;  %6132 = vmatprep.subr.mxu0 %v3707_v16  ;;  %v3718_v46 = vld [vmem:[%s12015_s7 + $0x110] sm:$0xff]  ;;  %v3733_v16 = vld [vmem:[%s12015_s7 + $0x188] sm:$0xff] }
 0x3b8   :  { %6068 = vmatpush3.msra.mxu1 %v2652_v17  ;;  %6133 = vmatpush3.msra.mxu0 %v3691_v19  ;;  %v3717_v17 = vld [vmem:[%s12015_s7 + $0x108] sm:$0xff]  ;;  %v3732_v19 = vld [vmem:[%s12015_s7 + $0x180] sm:$0xff] }
 0x3b9   :  { %3529 = vmatmul.mubr.f32.vlgmr.msra.gmra.mxu1 %v10244_v63  ;;  %6466 = vmatprep.subr.mxu1 %v6620_v5  ;;  %v2997_v63 = vld [vmem:[%s12013_s5 + $0xae8] sm:$0xff] }
 0x3ba   :  { %6467 = vmatpush3.msra.mxu1 %v3007_v54  ;;  %6482 = vmatprep.mubr.msk.f32.mxu1 %vm6621_vm1, %v6620_v5  ;;  %v3716_v54 = vld [vmem:[%s12015_s7 + $0x100] sm:$0xff] }
 0x3bb   :  { %6468 = vmatprep.subr.mxu1 %v6620_v5  ;;  %6134 = vmatprep.subr.mxu0 %v3706_v26  ;;  %v5624_v26 = vld [vmem:[%s12015_s7 + $0x338] sm:$0xff] }
 0x3bc   :  { %6469 = vmatpush3.msra.mxu1 %v3002_v32  ;;  %6135 = vmatpush3.msra.mxu0 %v3690_v34  ;;  %v11177_v32 = vld [vmem:[%s12014_s6] sm:$0x1f]  ;;  %v3104_v34 = vpop.f32.mrf.mxu1 }
 0x3bd   :  { %6470 = vmatprep.subr.mxu1 %v6620_v5  ;;  %6136 = vmatprep.subr.mxu0 %v3705_v35  ;;  %v3013_v35 = vrot.slane %v11177_v32, %v9076_v31 }
 0x3be   :  { %6471 = vmatpush3.msra.mxu1 %v2997_v63  ;;  %6137 = vmatpush3.msra.mxu0 %v3689_v37  ;;  %v3017_v37 = vrot.slane %v11177_v32, %v9068_v29  ;;  %v3755_v29 = vld [vmem:[%s12015_s7 + $0x238] sm:$0xff] }
 0x3bf   :  { %6472 = vmatprep.subr.mxu1 %v6620_v5  ;;  %6138 = vmatprep.subr.mxu0 %v3704_v25  ;;  %v3106_v25 = vpop.f32.mrf.mxu1 }
 0x3c0   :  { %6473 = vmatpush3.msra.mxu1 %v2992_v38  ;;  %6139 = vmatpush3.msra.mxu0 %v3688_v39  ;;  %v3105_v38 = vadd.f32 %v3104_v34, %v3013_v35  ;;  %v5616_v34 = vld [vmem:[%s12015_s7 + $0x2f8] sm:$0xff] }
 0x3c1   :  { %6474 = vmatprep.subr.mxu1 %v6620_v5  ;;  %6140 = vmatprep.subr.mxu0 %v3703_v43  ;;  %v3107_v43 = vadd.f32 %v3106_v25, %v3017_v37  ;;  %v5600_v35 = vld [vmem:[%s12015_s7 + $0x278] sm:$0xff]  ;;  %v5599_v37 = vld [vmem:[%s12015_s7 + $0x270] sm:$0xff]  ;;  %v5614_v25 = vld [vmem:[%s12015_s7 + $0x2e8] sm:$0xff] }
 0x3c2   :  { %6475 = vmatpush3.msra.mxu1 %v2987_v27  ;;  %6141 = vmatpush3.msra.mxu0 %v3687_v33 }
 0x3c3   :  { %6476 = vmatprep.subr.mxu1 %v6620_v5  ;;  %6142 = vmatprep.subr.mxu0 %v3702_v41 }
 0x3c4   :  { %6477 = vmatpush3.msra.mxu1 %v2982_v45  ;;  %6143 = vmatpush3.msra.mxu0 %v3686_v30 }
 0x3c5   :  { %6478 = vmatprep.subr.mxu1 %v6620_v5  ;;  %6144 = vmatprep.subr.mxu0 %v3701_v47 }
 0x3c6   :  { %6479 = vmatpush3.msra.mxu1 %v2977_v48  ;;  %6145 = vmatpush3.msra.mxu0 %v3685_v20 }
 0x3c7   :  { %6480 = vmatprep.subr.mxu1 %v6620_v5  ;;  %6146 = vmatprep.subr.mxu0 %v3700_v22 }
 0x3c8   :  { %6481 = vmatpush3.msra.mxu1 %v2972_v28  ;;  %6147 = vmatpush3.msra.mxu0 %v3684_v49  ;;  %v3754_v28 = vld [vmem:[%s12015_s7 + $0x230] sm:$0xff]  ;;  %v3751_v49 = vld [vmem:[%s12015_s7 + $0x218] sm:$0xff] }
 0x3c9   :  { %6483 = vmatmul.mubr.msk.f32.vlgmr.msra.gmra.mxu1 %vm2003_vm0, %v10418_v40  ;;  %6151 = vmatprep.subr.mxu1 %v3747_v50  ;;  %v3744_v40 = vld [vmem:[%s12015_s7 + $0x1e0] sm:$0xff]  ;;  %v3750_v50 = vld [vmem:[%s12015_s7 + $0x210] sm:$0xff] }
 0x3ca   :  { %6152 = vmatpush3.msra.mxu1 %v3731_v24  ;;  %6485 = vmatprep.subr.mxu0 %v6620_v5  ;;  %v3749_v24 = vld [vmem:[%s12015_s7 + $0x208] sm:$0xff] }
 0x3cb   :  { %6153 = vmatprep.subr.mxu1 %v3746_v42  ;;  %v3748_v42 = vld [vmem:[%s12015_s7 + $0x200] sm:$0xff] }
 0x3cc   :  { %6154 = vmatpush3.msra.mxu1 %v3730_v51  ;;  %v5656_v51 = vld [vmem:[%s12015_s7 + $0x438] sm:$0xff] }
 0x3cd   :  { %6155 = vmatprep.subr.mxu1 %v3745_v14 }
 0x3ce   :  { %6156 = vmatpush3.msra.mxu1 %v3729_v52  ;;  %v3021_v52 = vrot.slane %v11177_v32, %v9147_v21 }
 0x3cf   :  { %6157 = vmatprep.subr.mxu1 %v3744_v40  ;;  %v3025_v40 = vrot.slane %v11177_v32, %v9141_v18  ;;  %v5608_v18 = vld [vmem:[%s12015_s7 + $0x2b8] sm:$0xff] }
 0x3d0   :  { %6158 = vmatpush3.msra.mxu1 %v3728_v53 }
 0x3d1   :  { %6159 = vmatprep.subr.mxu1 %v3743_v44 }
 0x3d2   :  { %6160 = vmatpush3.msra.mxu1 %v3727_v55 }
 0x3d3   :  { %6161 = vmatprep.subr.mxu1 %v3742_v57 }
 0x3d4   :  { %6162 = vmatpush3.msra.mxu1 %v3726_v36 }
 0x3d5   :  { %6163 = vmatprep.subr.mxu1 %v3741_v58 }
 0x3d6   :  { %6164 = vmatpush3.msra.mxu1 %v3725_v59 }
 0x3d7   :  { %6165 = vmatprep.subr.mxu1 %v3740_v60 }
 0x3d8   :  { %6166 = vmatpush3.msra.mxu1 %v3724_v61 }
 0x3d9   :  { %6167 = vmatprep.subr.mxu1 %v3739_v1 }
 0x3da   :  { %6168 = vmatpush3.msra.mxu1 %v3723_v2 }
 0x3db   :  { %6169 = vmatprep.subr.mxu1 %v3738_v4 }
 0x3dc   :  { %6170 = vmatpush3.msra.mxu1 %v3722_v7 }
 0x3dd   :  { %6171 = vmatprep.subr.mxu1 %v3737_v9 }
 0x3de   :  { %6172 = vmatpush3.msra.mxu1 %v3721_v10  ;;  %v5623_v10 = vld [vmem:[%s12015_s7 + $0x330] sm:$0xff] }
 0x3df   :  { %6173 = vmatprep.subr.mxu1 %v3736_v11  ;;  %v5606_v11 = vld [vmem:[%s12015_s7 + $0x2a8] sm:$0xff] }
 0x3e0   :  { %6174 = vmatpush3.msra.mxu1 %v3720_v12  ;;  %v5621_v12 = vld [vmem:[%s12015_s7 + $0x320] sm:$0xff] }
 0x3e1   :  { %6175 = vmatprep.subr.mxu1 %v3735_v13  ;;  %v5605_v13 = vld [vmem:[%s12015_s7 + $0x2a0] sm:$0xff] }
 0x3e2   :  { %6176 = vmatpush3.msra.mxu1 %v3719_v15  ;;  %v5620_v15 = vld [vmem:[%s12015_s7 + $0x318] sm:$0xff] }
 0x3e3   :  { %6177 = vmatprep.subr.mxu1 %v3734_v56  ;;  %v5604_v56 = vld [vmem:[%s12015_s7 + $0x298] sm:$0xff] }
 0x3e4   :  { %6178 = vmatpush3.msra.mxu1 %v3718_v46  ;;  %v5619_v46 = vld [vmem:[%s12015_s7 + $0x310] sm:$0xff] }
 0x3e5   :  { %6179 = vmatprep.subr.mxu1 %v3733_v16  ;;  %v5603_v16 = vld [vmem:[%s12015_s7 + $0x290] sm:$0xff] }
 0x3e6   :  { %6180 = vmatpush3.msra.mxu1 %v3717_v17  ;;  %v5618_v17 = vld [vmem:[%s12015_s7 + $0x308] sm:$0xff] }
 0x3e7   :  { %6181 = vmatprep.subr.mxu1 %v3732_v19  ;;  %v5602_v19 = vld [vmem:[%s12015_s7 + $0x288] sm:$0xff] }
 0x3e8   :  { %6182 = vmatpush3.msra.mxu1 %v3716_v54  ;;  %v5617_v54 = vld [vmem:[%s12015_s7 + $0x300] sm:$0xff] }
 0x3e9   :  { %6195 = vmatprep.subr.mxu1 %v5624_v26  ;;  %v5601_v26 = vld [vmem:[%s12015_s7 + $0x280] sm:$0xff] }
 0x3f2   :  { %v3175_v63 = vpop.f32.mrf.mxu0 }
 0x3f3   :  { %v3176_v27 = vadd.f32 %v3175_v63, %v3105_v38  ;;  %v5615_v63 = vld [vmem:[%s12015_s7 + $0x2f0] sm:$0xff]  ;;  %v5598_v38 = vld [vmem:[%s12015_s7 + $0x268] sm:$0xff] }
 0x3f4   :  { %v3177_v39 = vpop.f32.mrf.mxu0 }
 0x3f5   :  { %v3178_v41 = vadd.f32 %v3177_v39, %v3107_v43  ;;  %v5613_v39 = vld [vmem:[%s12015_s7 + $0x2e0] sm:$0xff] }
 0x3f6   :  { %v5597_v43 = vld [vmem:[%s12015_s7 + $0x260] sm:$0xff] }
 0x416   :  { %v3246_v33 = vpop.f32.mrf.mxu1 }
 0x417   :  { %v3247_v45 = vadd.f32 %v3246_v33, %v3176_v27  ;;  %v5612_v33 = vld [vmem:[%s12015_s7 + $0x2d8] sm:$0xff] }
 0x418   :  { %v3248_v30 = vpop.f32.mrf.mxu1 }
 0x419   :  { %v3249_v47 = vadd.f32 %v3248_v30, %v3178_v41  ;;  %v3674_v48 = vadd.f32 %v3247_v45, %v9090_v0  ;;  %v3752_v0 = vld [vmem:[%s12015_s7 + $0x220] sm:$0xff]  ;;  %v5596_v41 = vld [vmem:[%s12015_s7 + $0x258] sm:$0xff]  ;;  %v5611_v45 = vld [vmem:[%s12015_s7 + $0x2d0] sm:$0xff] }
 0x41a   :  { %v5595_v30 = vld [vmem:[%s12015_s7 + $0x250] sm:$0xff] }
 0x41b   :  { %v3675_v20 = vadd.f32 %v3249_v47, %v9088_v62  ;;  %v11187_v31 = vmax.f32 %v3674_v48, 0.0  ;;  %v3753_v62 = vld [vmem:[%s12015_s7 + $0x228] sm:$0xff] }
 0x41c   :  { %v5610_v48 = vld [vmem:[%s12015_s7 + $0x2c8] sm:$0xff] }
 0x41d   :  { %v11185_v22 = vmax.f32 %v3675_v20, 0.0  ;;  %v5594_v20 = vld [vmem:[%s12015_s7 + $0x248] sm:$0xff] }
 0x41f   :  { %3830 = vmatprep.mubr.f32.mxu0 %v11185_v22 }
 0x420   :  { %3831 = vmatmul.mubr.f32.vlgmr.msra.gmra.mxu0 %v11187_v31 }
 0x421   :  { %6486 = vmatpush3.msra.mxu0 %v3755_v29  ;;  %6501 = vmatprep.mubr.msk.f32.mxu0 %vm6621_vm1, %v6620_v5 }
 0x422   :  { %6487 = vmatprep.subr.mxu0 %v6620_v5 }
 0x423   :  { %6488 = vmatpush3.msra.mxu0 %v3754_v28  ;;  %v5609_v28 = vld [vmem:[%s12015_s7 + $0x2c0] sm:$0xff] }
 0x424   :  { %6489 = vmatprep.subr.mxu0 %v6620_v5 }
 0x425   :  { %6490 = vmatpush3.msra.mxu0 %v3753_v62  ;;  %v3029_v62 = vrot.slane %v11177_v32, %v9150_v23  ;;  %v5663_v23 = vld [vmem:[%s12015_s7 + $0x470] sm:$0xff] }
 0x426   :  { %6491 = vmatprep.subr.mxu0 %v6620_v5 }
 0x427   :  { %6492 = vmatpush3.msra.mxu0 %v3752_v0 }
 0x428   :  { %6493 = vmatprep.subr.mxu0 %v6620_v5 }
 0x429   :  { %6494 = vmatpush3.msra.mxu0 %v3751_v49  ;;  %v5593_v49 = vld [vmem:[%s12015_s7 + $0x240] sm:$0xff] }
 0x42a   :  { %6495 = vmatprep.subr.mxu0 %v6620_v5 }
 0x42b   :  { %6496 = vmatpush3.msra.mxu0 %v3750_v50  ;;  %v5664_v50 = vld [vmem:[%s12015_s7 + $0x478] sm:$0xff] }
 0x42c   :  { %6497 = vmatprep.subr.mxu0 %v6620_v5 }
 0x42d   :  { %6498 = vmatpush3.msra.mxu0 %v3749_v24 }
 0x42e   :  { %6499 = vmatprep.subr.mxu0 %v6620_v5 }
 0x42f   :  { %6500 = vmatpush3.msra.mxu0 %v3748_v42 }
 0x430   :  { %6230 = vmatprep.subr.mxu0 %v5656_v51  ;;  %v5662_v51 = vld [vmem:[%s12015_s7 + $0x468] sm:$0xff] }
 0x433   :  { %v3317_v14 = vpop.f32.mrf.mxu0 }
 0x434   :  { %v3318_v44 = vadd.f32 %v3317_v14, %v3021_v52  ;;  %v5661_v52 = vld [vmem:[%s12015_s7 + $0x460] sm:$0xff] }
 0x435   :  { %v3319_v53 = vpop.f32.mrf.mxu0 }
 0x436   :  { %v3320_v36 = vadd.f32 %v3319_v53, %v3025_v40 }
 0x444   :  { %v3459_v55 = vpop.f32.mrf.mxu0 }
 0x446   :  { %v3461_v1 = vpop.f32.mrf.mxu0 }
 0x458   :  { %v3388_v57 = vpop.f32.mrf.mxu1 }
 0x459   :  { %v3389_v58 = vadd.f32 %v3388_v57, %v3318_v44  ;;  %v5660_v44 = vld [vmem:[%s12015_s7 + $0x458] sm:$0xff] }
 0x45a   :  { %v3390_v59 = vpop.f32.mrf.mxu1 }
 0x45b   :  { %v3460_v60 = vadd.f32 %v3459_v55, %v3389_v58  ;;  %v3391_v61 = vadd.f32 %v3390_v59, %v3320_v36  ;;  %v5659_v36 = vld [vmem:[%s12015_s7 + $0x450] sm:$0xff]  ;;  %v5640_v59 = vld [vmem:[%s12015_s7 + $0x3b8] sm:$0xff] }
 0x45d   :  { %v3462_v2 = vadd.f32 %v3461_v1, %v3391_v61  ;;  %v3676_v4 = vadd.f32 %v3460_v60, %v9170_v6  ;;  %v5622_v6 = vld [vmem:[%s12015_s7 + $0x328] sm:$0xff]  ;;  %v5639_v61 = vld [vmem:[%s12015_s7 + $0x3b0] sm:$0xff] }
 0x45e   :  { %v5658_v60 = vld [vmem:[%s12015_s7 + $0x448] sm:$0xff] }
 0x45f   :  { %v3677_v7 = vadd.f32 %v3462_v2, %v9168_v3  ;;  %v11235_v21 = vmax.f32 %v3676_v4, 0.0  ;;  %v5607_v3 = vld [vmem:[%s12015_s7 + $0x2b0] sm:$0xff]  ;;  %v5654_v1 = vld [vmem:[%s12015_s7 + $0x428] sm:$0xff]  ;;  %v5657_v2 = vld [vmem:[%s12015_s7 + $0x440] sm:$0xff] }
 0x460   :  { %v5638_v4 = vld [vmem:[%s12015_s7 + $0x3a8] sm:$0xff] }
 0x461   :  { %v11233_v9 = vmax.f32 %v3677_v7, 0.0  ;;  %v5729_v7 = vld [vmem:[%s12015_s7 + $0x678] sm:$0xff] }
 0x463   :  { %3900 = vmatprep.mubr.f32.mxu1 %v11233_v9 }
 0x464   :  { %3901 = vmatmul.mubr.f32.vlgmr.msra.gmra.mxu1 %v11235_v21 }
 0x465   :  { %6196 = vmatpush3.msra.mxu1 %v5608_v18  ;;  %4114 = vmatprep.mubr.f32.mxu1 %v11185_v22  ;;  %v5653_v18 = vld [vmem:[%s12015_s7 + $0x420] sm:$0xff] }
 0x466   :  { %6197 = vmatprep.subr.mxu1 %v5623_v10  ;;  %v6104_v29 = vpop.f32.mrf.mxu0  ;;  %v5713_v10 = vld [vmem:[%s12015_s7 + $0x5f8] sm:$0xff] }
 0x467   :  { %6198 = vmatpush3.msra.mxu1 %v5607_v3  ;;  %v5637_v3 = vld [vmem:[%s12015_s7 + $0x3a0] sm:$0xff] }
 0x468   :  { %6199 = vmatprep.subr.mxu1 %v5622_v6  ;;  %v6105_v24 = vpop.f32.mrf.mxu0  ;;  %v5728_v6 = vld [vmem:[%s12015_s7 + $0x670] sm:$0xff] }
 0x469   :  { %6200 = vmatpush3.msra.mxu1 %v5606_v11  ;;  %v6106_v32 = vadd.f32 %v6105_v24, %v6104_v29  ;;  %v5652_v11 = vld [vmem:[%s12015_s7 + $0x418] sm:$0xff]  ;;  %v5704_v24 = vld [vmem:[%s12015_s7 + $0x5b0] sm:$0xff] }
 0x46a   :  { %6201 = vmatprep.subr.mxu1 %v5621_v12  ;;  %v5712_v12 = vld [vmem:[%s12015_s7 + $0x5f0] sm:$0xff]  ;;  %v5721_v29 = vld [vmem:[%s12015_s7 + $0x638] sm:$0xff] }
 0x46b   :  { %6202 = vmatpush3.msra.mxu1 %v5605_v13  ;;  %v5636_v13 = vld [vmem:[%s12015_s7 + $0x398] sm:$0xff] }
 0x46c   :  { %6203 = vmatprep.subr.mxu1 %v5620_v15  ;;  %v5727_v15 = vld [vmem:[%s12015_s7 + $0x668] sm:$0xff] }
 0x46d   :  { %6204 = vmatpush3.msra.mxu1 %v5604_v56  ;;  %v5651_v56 = vld [vmem:[%s12015_s7 + $0x410] sm:$0xff] }
 0x46e   :  { %6205 = vmatprep.subr.mxu1 %v5619_v46  ;;  %v5711_v46 = vld [vmem:[%s12015_s7 + $0x5e8] sm:$0xff] }
 0x46f   :  { %6206 = vmatpush3.msra.mxu1 %v5603_v16  ;;  %v5635_v16 = vld [vmem:[%s12015_s7 + $0x390] sm:$0xff] }
 0x470   :  { %6207 = vmatprep.subr.mxu1 %v5618_v17  ;;  %v5726_v17 = vld [vmem:[%s12015_s7 + $0x660] sm:$0xff] }
 0x471   :  { %6208 = vmatpush3.msra.mxu1 %v5602_v19  ;;  %v5650_v19 = vld [vmem:[%s12015_s7 + $0x408] sm:$0xff] }
 0x472   :  { %6209 = vmatprep.subr.mxu1 %v5617_v54  ;;  %v5710_v54 = vld [vmem:[%s12015_s7 + $0x5e0] sm:$0xff] }
 0x473   :  { %6210 = vmatpush3.msra.mxu1 %v5601_v26  ;;  %v5634_v26 = vld [vmem:[%s12015_s7 + $0x388] sm:$0xff] }
 0x474   :  { %6211 = vmatprep.subr.mxu1 %v5616_v34  ;;  %v5725_v34 = vld [vmem:[%s12015_s7 + $0x658] sm:$0xff] }
 0x475   :  { %6212 = vmatpush3.msra.mxu1 %v5600_v35  ;;  %v5649_v35 = vld [vmem:[%s12015_s7 + $0x400] sm:$0xff] }
 0x476   :  { %6213 = vmatprep.subr.mxu1 %v5615_v63  ;;  %v5709_v63 = vld [vmem:[%s12015_s7 + $0x5d8] sm:$0xff] }
 0x477   :  { %6214 = vmatpush3.msra.mxu1 %v5599_v37  ;;  %v5633_v37 = vld [vmem:[%s12015_s7 + $0x380] sm:$0xff] }
 0x478   :  { %6215 = vmatprep.subr.mxu1 %v5614_v25  ;;  %v5724_v25 = vld [vmem:[%s12015_s7 + $0x650] sm:$0xff] }
 0x479   :  { %v6069_v27 = vpop.f32.mrf.mxu1  ;;  %6216 = vmatpush3.msra.mxu1 %v5598_v38  ;;  %v5648_v38 = vld [vmem:[%s12015_s7 + $0x3f8] sm:$0xff] }
 0x47a   :  { %6217 = vmatprep.subr.mxu1 %v5613_v39  ;;  %v5708_v39 = vld [vmem:[%s12015_s7 + $0x5d0] sm:$0xff] }
 0x47b   :  { %6218 = vmatpush3.msra.mxu1 %v5597_v43  ;;  %v6070_v47 = vpop.f32.mrf.mxu1  ;;  %v5632_v43 = vld [vmem:[%s12015_s7 + $0x378] sm:$0xff] }
 0x47c   :  { %6219 = vmatprep.subr.mxu1 %v5612_v33  ;;  %v6071_v0 = vadd.f32 %v6070_v47, %v6069_v27  ;;  %v5723_v27 = vld [vmem:[%s12015_s7 + $0x648] sm:$0xff]  ;;  %v5647_v33 = vld [vmem:[%s12015_s7 + $0x3f0] sm:$0xff] }
 0x47d   :  { %6220 = vmatpush3.msra.mxu1 %v5596_v41  ;;  %v5707_v41 = vld [vmem:[%s12015_s7 + $0x5c8] sm:$0xff] }
 0x47e   :  { %6221 = vmatprep.subr.mxu1 %v5611_v45  ;;  %v3531_v42 = vadd.f32 %v6071_v0, %v3029_v62  ;;  %v5631_v45 = vld [vmem:[%s12015_s7 + $0x370] sm:$0xff]  ;;  %v5646_v47 = vld [vmem:[%s12015_s7 + $0x3e8] sm:$0xff]  ;;  %v5705_v62 = vld [vmem:[%s12015_s7 + $0x5b8] sm:$0xff] }
 0x47f   :  { %6222 = vmatpush3.msra.mxu1 %v5595_v30  ;;  %v5722_v30 = vld [vmem:[%s12015_s7 + $0x640] sm:$0xff] }
 0x480   :  { %6223 = vmatprep.subr.mxu1 %v5610_v48  ;;  %v3601_v14 = vadd.f32 %v6106_v32, %v3531_v42  ;;  %v5706_v48 = vld [vmem:[%s12015_s7 + $0x5c0] sm:$0xff]  ;;  %v5628_v42 = vld [vmem:[%s12015_s7 + $0x358] sm:$0xff]  ;;  %v5643_v32 = vld [vmem:[%s12015_s7 + $0x3d0] sm:$0xff] }
 0x481   :  { %6224 = vmatpush3.msra.mxu1 %v5594_v20  ;;  %v5630_v20 = vld [vmem:[%s12015_s7 + $0x368] sm:$0xff]  ;;  %v5629_v0 = vld [vmem:[%s12015_s7 + $0x360] sm:$0xff] }
 0x482   :  { %6225 = vmatprep.subr.mxu1 %v5609_v28  ;;  %v5645_v28 = vld [vmem:[%s12015_s7 + $0x3e0] sm:$0xff] }
 0x483   :  { %6226 = vmatpush3.msra.mxu1 %v5593_v49  ;;  %v5720_v49 = vld [vmem:[%s12015_s7 + $0x630] sm:$0xff] }
 0x484   :  { %4115 = vmatmul.mubr.f32.vlgmr.msra.gmra.mxu1 %v11187_v31  ;;  %6504 = vmatprep.subr.mxu1 %v6620_v5 }
 0x485   :  { %6505 = vmatpush3.msra.mxu1 %v5664_v50  ;;  %6520 = vmatprep.mubr.msk.f32.mxu1 %vm6621_vm1, %v6620_v5  ;;  %v5644_v50 = vld [vmem:[%s12015_s7 + $0x3d8] sm:$0xff] }
 0x486   :  { %6506 = vmatprep.subr.mxu1 %v6620_v5 }
 0x487   :  { %6507 = vmatpush3.msra.mxu1 %v5663_v23  ;;  %v5719_v23 = vld [vmem:[%s12015_s7 + $0x628] sm:$0xff] }
 0x488   :  { %6508 = vmatprep.subr.mxu1 %v6620_v5 }
 0x489   :  { %v3670_v40 = vpop.f32.mrf.mxu1  ;;  %6509 = vmatpush3.msra.mxu1 %v5662_v51  ;;  %v5703_v51 = vld [vmem:[%s12015_s7 + $0x5a8] sm:$0xff] }
 0x48a   :  { %v3671_v53 = vadd.f32 %v3670_v40, %v3601_v14  ;;  %6510 = vmatprep.subr.mxu1 %v6620_v5  ;;  %v5627_v14 = vld [vmem:[%s12015_s7 + $0x350] sm:$0xff]  ;;  %v5642_v40 = vld [vmem:[%s12015_s7 + $0x3c8] sm:$0xff] }
 0x48b   :  { %v6484_v55 = vpop.f32.mrf.mxu1  ;;  %6511 = vmatpush3.msra.mxu1 %v5661_v52  ;;  %v5718_v52 = vld [vmem:[%s12015_s7 + $0x620] sm:$0xff] }
 0x48c   :  { %v3678_v57 = vadd.f32 %v3671_v53, %v9175_v8  ;;  %6512 = vmatprep.subr.mxu1 %v6620_v5  ;;  %v5655_v8 = vld [vmem:[%s12015_s7 + $0x430] sm:$0xff]  ;;  %v5702_v53 = vld [vmem:[%s12015_s7 + $0x5a0] sm:$0xff]  ;;  %v5717_v55 = vld [vmem:[%s12015_s7 + $0x618] sm:$0xff] }
 0x48d   :  { %6513 = vmatpush3.msra.mxu1 %v5660_v44  ;;  %v5626_v44 = vld [vmem:[%s12015_s7 + $0x348] sm:$0xff] }
 0x48e   :  { %v11362_v58 = vmax.f32 %v3678_v57, 0.0  ;;  %6514 = vmatprep.subr.mxu1 %v6620_v5  ;;  %v5641_v57 = vld [vmem:[%s12015_s7 + $0x3c0] sm:$0xff] }
 0x48f   :  { %6515 = vmatpush3.msra.mxu1 %v5659_v36  ;;  %v5701_v36 = vld [vmem:[%s12015_s7 + $0x598] sm:$0xff] }
 0x490   :  { %6502 = vmatmul.mubr.msk.f32.vlgmr.msra.gmra.mxu0 %vm2003_vm0, %v11362_v58  ;;  %6516 = vmatprep.subr.mxu1 %v6620_v5 }
 0x491   :  { %6231 = vmatpush3.msra.mxu0 %v5640_v59  ;;  %4184 = vmatprep.mubr.f32.mxu0 %v11233_v9  ;;  %v5625_v59 = vld [vmem:[%s12015_s7 + $0x340] sm:$0xff] }
 0x492   :  { %6232 = vmatprep.subr.mxu0 %v5655_v8  ;;  %6517 = vmatpush3.msra.mxu1 %v5658_v60  ;;  %v5716_v8 = vld [vmem:[%s12015_s7 + $0x610] sm:$0xff]  ;;  %v5697_v60 = vld [vmem:[%s12015_s7 + $0x578] sm:$0xff] }
 0x493   :  { %6233 = vmatpush3.msra.mxu0 %v5639_v61  ;;  %6518 = vmatprep.subr.mxu1 %v6620_v5  ;;  %v5700_v61 = vld [vmem:[%s12015_s7 + $0x590] sm:$0xff] }
 0x494   :  { %6234 = vmatprep.subr.mxu0 %v5654_v1  ;;  %6519 = vmatpush3.msra.mxu1 %v5657_v2  ;;  %v5681_v1 = vld [vmem:[%s12015_s7 + $0x4f8] sm:$0xff]  ;;  %v5715_v2 = vld [vmem:[%s12015_s7 + $0x608] sm:$0xff] }
 0x495   :  { %6235 = vmatpush3.msra.mxu0 %v5638_v4  ;;  %6521 = vmatmul.mubr.msk.f32.vlgmr.msra.gmra.mxu1 %vm2003_vm0, %v11362_v58  ;;  %v5696_v4 = vld [vmem:[%s12015_s7 + $0x570] sm:$0xff] }
 0x496   :  { %6309 = vmatprep.subr.mxu1 %v5729_v7  ;;  %6236 = vmatprep.subr.mxu0 %v5653_v18  ;;  %v5699_v7 = vld [vmem:[%s12015_s7 + $0x588] sm:$0xff]  ;;  %v5680_v18 = vld [vmem:[%s12015_s7 + $0x4f0] sm:$0xff] }
 0x497   :  { %6310 = vmatpush3.msra.mxu1 %v5713_v10  ;;  %4469 = vmatprep.mubr.f32.mxu1 %v11233_v9  ;;  %v5714_v10 = vld [vmem:[%s12015_s7 + $0x600] sm:$0xff] }
 0x498   :  { %6237 = vmatpush3.msra.mxu0 %v5637_v3  ;;  %6311 = vmatprep.subr.mxu1 %v5728_v6  ;;  %v5695_v3 = vld [vmem:[%s12015_s7 + $0x568] sm:$0xff]  ;;  %v5698_v6 = vld [vmem:[%s12015_s7 + $0x580] sm:$0xff] }
 0x499   :  { %6238 = vmatprep.subr.mxu0 %v5652_v11  ;;  %6312 = vmatpush3.msra.mxu1 %v5712_v12  ;;  %v5679_v11 = vld [vmem:[%s12015_s7 + $0x4e8] sm:$0xff]  ;;  %v5770_v12 = vld [vmem:[%s12015_s7 + $0x7b8] sm:$0xff] }
 0x49a   :  { %6239 = vmatpush3.msra.mxu0 %v5636_v13  ;;  %6313 = vmatprep.subr.mxu1 %v5727_v15  ;;  %v5694_v13 = vld [vmem:[%s12015_s7 + $0x560] sm:$0xff]  ;;  %v5754_v15 = vld [vmem:[%s12015_s7 + $0x738] sm:$0xff] }
 0x49b   :  { %6240 = vmatprep.subr.mxu0 %v5651_v56  ;;  %6314 = vmatpush3.msra.mxu1 %v5711_v46  ;;  %v5678_v56 = vld [vmem:[%s12015_s7 + $0x4e0] sm:$0xff]  ;;  %v5769_v46 = vld [vmem:[%s12015_s7 + $0x7b0] sm:$0xff] }
 0x49c   :  { %6241 = vmatpush3.msra.mxu0 %v5635_v16  ;;  %6315 = vmatprep.subr.mxu1 %v5726_v17  ;;  %v5693_v16 = vld [vmem:[%s12015_s7 + $0x558] sm:$0xff]  ;;  %v5753_v17 = vld [vmem:[%s12015_s7 + $0x730] sm:$0xff] }
 0x49d   :  { %6242 = vmatprep.subr.mxu0 %v5650_v19  ;;  %6316 = vmatpush3.msra.mxu1 %v5710_v54  ;;  %v5677_v19 = vld [vmem:[%s12015_s7 + $0x4d8] sm:$0xff]  ;;  %v5768_v54 = vld [vmem:[%s12015_s7 + $0x7a8] sm:$0xff] }
 0x49e   :  { %6243 = vmatpush3.msra.mxu0 %v5634_v26  ;;  %6317 = vmatprep.subr.mxu1 %v5725_v34  ;;  %v5692_v26 = vld [vmem:[%s12015_s7 + $0x550] sm:$0xff]  ;;  %v5752_v34 = vld [vmem:[%s12015_s7 + $0x728] sm:$0xff] }
 0x49f   :  { %6244 = vmatprep.subr.mxu0 %v5649_v35  ;;  %6318 = vmatpush3.msra.mxu1 %v5709_v63  ;;  %v5767_v35 = vld [vmem:[%s12015_s7 + $0x7a0] sm:$0xff]  ;;  %v5691_v63 = vld [vmem:[%s12015_s7 + $0x548] sm:$0xff] }
 0x4a0   :  { %6245 = vmatpush3.msra.mxu0 %v5633_v37  ;;  %6319 = vmatprep.subr.mxu1 %v5724_v25  ;;  %v5751_v37 = vld [vmem:[%s12015_s7 + $0x720] sm:$0xff]  ;;  %v5675_v25 = vld [vmem:[%s12015_s7 + $0x4c8] sm:$0xff] }
 0x4a1   :  { %6246 = vmatprep.subr.mxu0 %v5648_v38  ;;  %6320 = vmatpush3.msra.mxu1 %v5708_v39  ;;  %v5766_v38 = vld [vmem:[%s12015_s7 + $0x798] sm:$0xff]  ;;  %v5690_v39 = vld [vmem:[%s12015_s7 + $0x540] sm:$0xff] }
 0x4a2   :  { %6247 = vmatpush3.msra.mxu0 %v5632_v43  ;;  %6321 = vmatprep.subr.mxu1 %v5723_v27  ;;  %v5750_v43 = vld [vmem:[%s12015_s7 + $0x718] sm:$0xff]  ;;  %v5674_v27 = vld [vmem:[%s12015_s7 + $0x4c0] sm:$0xff] }
 0x4a3   :  { %6248 = vmatprep.subr.mxu0 %v5647_v33  ;;  %6322 = vmatpush3.msra.mxu1 %v5707_v41  ;;  %v5765_v33 = vld [vmem:[%s12015_s7 + $0x790] sm:$0xff]  ;;  %v5689_v41 = vld [vmem:[%s12015_s7 + $0x538] sm:$0xff] }
 0x4a4   :  { %6249 = vmatpush3.msra.mxu0 %v5631_v45  ;;  %6323 = vmatprep.subr.mxu1 %v5722_v30  ;;  %v5749_v45 = vld [vmem:[%s12015_s7 + $0x710] sm:$0xff]  ;;  %v5673_v30 = vld [vmem:[%s12015_s7 + $0x4b8] sm:$0xff] }
 0x4a5   :  { %6250 = vmatprep.subr.mxu0 %v5646_v47  ;;  %6324 = vmatpush3.msra.mxu1 %v5706_v48  ;;  %v5764_v47 = vld [vmem:[%s12015_s7 + $0x788] sm:$0xff]  ;;  %v5688_v48 = vld [vmem:[%s12015_s7 + $0x530] sm:$0xff] }
 0x4a6   :  { %6251 = vmatpush3.msra.mxu0 %v5630_v20  ;;  %6325 = vmatprep.subr.mxu1 %v5721_v29  ;;  %v5748_v20 = vld [vmem:[%s12015_s7 + $0x708] sm:$0xff]  ;;  %v5672_v29 = vld [vmem:[%s12015_s7 + $0x4b0] sm:$0xff] }
 0x4a7   :  { %6252 = vmatprep.subr.mxu0 %v5645_v28  ;;  %6326 = vmatpush3.msra.mxu1 %v5705_v62  ;;  %v5763_v28 = vld [vmem:[%s12015_s7 + $0x780] sm:$0xff]  ;;  %v5687_v62 = vld [vmem:[%s12015_s7 + $0x528] sm:$0xff] }
 0x4a8   :  { %6253 = vmatpush3.msra.mxu0 %v5629_v0  ;;  %6327 = vmatprep.subr.mxu1 %v5720_v49  ;;  %v5747_v0 = vld [vmem:[%s12015_s7 + $0x700] sm:$0xff]  ;;  %v5671_v49 = vld [vmem:[%s12015_s7 + $0x4a8] sm:$0xff] }
 0x4a9   :  { %6254 = vmatprep.subr.mxu0 %v5644_v50  ;;  %6328 = vmatpush3.msra.mxu1 %v5704_v24  ;;  %v5762_v50 = vld [vmem:[%s12015_s7 + $0x778] sm:$0xff]  ;;  %v5686_v24 = vld [vmem:[%s12015_s7 + $0x520] sm:$0xff] }
 0x4aa   :  { %6255 = vmatpush3.msra.mxu0 %v5628_v42  ;;  %6329 = vmatprep.subr.mxu1 %v5719_v23  ;;  %v5746_v42 = vld [vmem:[%s12015_s7 + $0x6f8] sm:$0xff]  ;;  %v5670_v23 = vld [vmem:[%s12015_s7 + $0x4a0] sm:$0xff] }
 0x4ab   :  { %6256 = vmatprep.subr.mxu0 %v5643_v32  ;;  %6330 = vmatpush3.msra.mxu1 %v5703_v51  ;;  %v5761_v32 = vld [vmem:[%s12015_s7 + $0x770] sm:$0xff]  ;;  %v5685_v51 = vld [vmem:[%s12015_s7 + $0x518] sm:$0xff] }
 0x4ac   :  { %6257 = vmatpush3.msra.mxu0 %v5627_v14  ;;  %6331 = vmatprep.subr.mxu1 %v5718_v52  ;;  %v5745_v14 = vld [vmem:[%s12015_s7 + $0x6f0] sm:$0xff]  ;;  %v5669_v52 = vld [vmem:[%s12015_s7 + $0x498] sm:$0xff] }
 0x4ad   :  { %6258 = vmatprep.subr.mxu0 %v5642_v40  ;;  %6332 = vmatpush3.msra.mxu1 %v5702_v53  ;;  %v5760_v40 = vld [vmem:[%s12015_s7 + $0x768] sm:$0xff]  ;;  %v5684_v53 = vld [vmem:[%s12015_s7 + $0x510] sm:$0xff] }
 0x4ae   :  { %6259 = vmatpush3.msra.mxu0 %v5626_v44  ;;  %6333 = vmatprep.subr.mxu1 %v5717_v55  ;;  %v5744_v44 = vld [vmem:[%s12015_s7 + $0x6e8] sm:$0xff]  ;;  %v5668_v55 = vld [vmem:[%s12015_s7 + $0x490] sm:$0xff] }
 0x4af   :  { %6260 = vmatprep.subr.mxu0 %v5641_v57  ;;  %6334 = vmatpush3.msra.mxu1 %v5701_v36  ;;  %v5759_v57 = vld [vmem:[%s12015_s7 + $0x760] sm:$0xff]  ;;  %v5683_v36 = vld [vmem:[%s12015_s7 + $0x508] sm:$0xff] }
 0x4b0   :  { %6261 = vmatpush3.msra.mxu0 %v5625_v59  ;;  %6335 = vmatprep.subr.mxu1 %v5716_v8  ;;  %v5743_v59 = vld [vmem:[%s12015_s7 + $0x6e0] sm:$0xff]  ;;  %v5667_v8 = vld [vmem:[%s12015_s7 + $0x488] sm:$0xff] }
 0x4b1   :  { %4185 = vmatmul.mubr.f32.vlgmr.msra.gmra.mxu0 %v11235_v21  ;;  %6274 = vmatprep.subr.mxu0 %v5697_v60  ;;  %v5758_v60 = vld [vmem:[%s12015_s7 + $0x758] sm:$0xff] }
 0x4b2   :  { %6336 = vmatpush3.msra.mxu1 %v5700_v61  ;;  %6275 = vmatpush3.msra.mxu0 %v5681_v1  ;;  %v5682_v61 = vld [vmem:[%s12015_s7 + $0x500] sm:$0xff]  ;;  %v5742_v1 = vld [vmem:[%s12015_s7 + $0x6d8] sm:$0xff] }
 0x4b3   :  { %4399 = vmatprep.mubr.f32.mxu0 %v11185_v22  ;;  %6337 = vmatprep.subr.mxu1 %v5715_v2  ;;  %v5666_v2 = vld [vmem:[%s12015_s7 + $0x480] sm:$0xff] }
 0x4b4   :  { %6276 = vmatprep.subr.mxu0 %v5696_v4  ;;  %6338 = vmatpush3.msra.mxu1 %v5699_v7  ;;  %v5757_v4 = vld [vmem:[%s12015_s7 + $0x750] sm:$0xff] }
 0x4b5   :  { %6277 = vmatpush3.msra.mxu0 %v5680_v18  ;;  %6339 = vmatprep.subr.mxu1 %v5714_v10  ;;  %v5741_v7 = vld [vmem:[%s12015_s7 + $0x6d0] sm:$0xff]  ;;  %v5737_v18 = vld [vmem:[%s12015_s7 + $0x6b8] sm:$0xff]  ;;  %v5756_v10 = vld [vmem:[%s12015_s7 + $0x748] sm:$0xff] }
 0x4b6   :  { %6278 = vmatprep.subr.mxu0 %v5695_v3  ;;  %6340 = vmatpush3.msra.mxu1 %v5698_v6  ;;  %v5740_v3 = vld [vmem:[%s12015_s7 + $0x6c8] sm:$0xff]  ;;  %v5736_v6 = vld [vmem:[%s12015_s7 + $0x6b0] sm:$0xff] }
 0x4b7   :  { %6279 = vmatpush3.msra.mxu0 %v5679_v11  ;;  %4470 = vmatmul.mubr.f32.vlgmr.msra.gmra.mxu1 %v11235_v21  ;;  %v5755_v11 = vld [vmem:[%s12015_s7 + $0x740] sm:$0xff] }
 0x4b8   :  { %6353 = vmatprep.subr.mxu1 %v5770_v12  ;;  %6280 = vmatprep.subr.mxu0 %v5694_v13  ;;  %v5739_v12 = vld [vmem:[%s12015_s7 + $0x6c0] sm:$0xff]  ;;  %v5735_v13 = vld [vmem:[%s12015_s7 + $0x6a8] sm:$0xff] }
 0x4b9   :  { %6354 = vmatpush3.msra.mxu1 %v5754_v15  ;;  %4684 = vmatprep.mubr.f32.mxu1 %v11185_v22  ;;  %v5676_v22 = vld [vmem:[%s12015_s7 + $0x4d0] sm:$0xff]  ;;  %v5810_v15 = vld [vmem:[%s12015_s7 + $0x8f8] sm:$0xff] }
 0x4ba   :  { %6281 = vmatpush3.msra.mxu0 %v5678_v56  ;;  %6355 = vmatprep.subr.mxu1 %v5769_v46  ;;  %v5734_v56 = vld [vmem:[%s12015_s7 + $0x6a0] sm:$0xff]  ;;  %v5809_v46 = vld [vmem:[%s12015_s7 + $0x8f0] sm:$0xff] }
 0x4bb   :  { %6282 = vmatprep.subr.mxu0 %v5693_v16  ;;  %6356 = vmatpush3.msra.mxu1 %v5753_v17  ;;  %v5733_v16 = vld [vmem:[%s12015_s7 + $0x698] sm:$0xff]  ;;  %v5732_v17 = vld [vmem:[%s12015_s7 + $0x690] sm:$0xff] }
 0x4bc   :  { %6283 = vmatpush3.msra.mxu0 %v5677_v19  ;;  %6357 = vmatprep.subr.mxu1 %v5768_v54  ;;  %v5807_v19 = vld [vmem:[%s12015_s7 + $0x8e0] sm:$0xff]  ;;  %v5731_v54 = vld [vmem:[%s12015_s7 + $0x688] sm:$0xff] }
 0x4bd   :  { %6284 = vmatprep.subr.mxu0 %v5692_v26  ;;  %6358 = vmatpush3.msra.mxu1 %v5752_v34  ;;  %v5806_v26 = vld [vmem:[%s12015_s7 + $0x8d8] sm:$0xff]  ;;  %v5730_v34 = vld [vmem:[%s12015_s7 + $0x680] sm:$0xff] }
 0x4be   :  { %6285 = vmatpush3.msra.mxu0 %v5676_v22  ;;  %6359 = vmatprep.subr.mxu1 %v5767_v35  ;;  %v5802_v22 = vld [vmem:[%s12015_s7 + $0x8b8] sm:$0xff]  ;;  %v5805_v35 = vld [vmem:[%s12015_s7 + $0x8d0] sm:$0xff] }
 0x4bf   :  { %6286 = vmatprep.subr.mxu0 %v5691_v63  ;;  %6360 = vmatpush3.msra.mxu1 %v5751_v37  ;;  %v5786_v63 = vld [vmem:[%s12015_s7 + $0x838] sm:$0xff]  ;;  %v5801_v37 = vld [vmem:[%s12015_s7 + $0x8b0] sm:$0xff] }
 0x4c0   :  { %6287 = vmatpush3.msra.mxu0 %v5675_v25  ;;  %6361 = vmatprep.subr.mxu1 %v5766_v38  ;;  %v5804_v25 = vld [vmem:[%s12015_s7 + $0x8c8] sm:$0xff]  ;;  %v5785_v38 = vld [vmem:[%s12015_s7 + $0x830] sm:$0xff] }
 0x4c1   :  { %6288 = vmatprep.subr.mxu0 %v5690_v39  ;;  %6362 = vmatpush3.msra.mxu1 %v5750_v43  ;;  %v5800_v39 = vld [vmem:[%s12015_s7 + $0x8a8] sm:$0xff]  ;;  %v5803_v43 = vld [vmem:[%s12015_s7 + $0x8c0] sm:$0xff] }
 0x4c2   :  { %6289 = vmatpush3.msra.mxu0 %v5674_v27  ;;  %6363 = vmatprep.subr.mxu1 %v5765_v33  ;;  %v5784_v27 = vld [vmem:[%s12015_s7 + $0x828] sm:$0xff]  ;;  %v5783_v33 = vld [vmem:[%s12015_s7 + $0x820] sm:$0xff] }
 0x4c3   :  { %6290 = vmatprep.subr.mxu0 %v5689_v41  ;;  %6364 = vmatpush3.msra.mxu1 %v5749_v45  ;;  %v5798_v41 = vld [vmem:[%s12015_s7 + $0x898] sm:$0xff] }
 0x4c4   :  { %6291 = vmatpush3.msra.mxu0 %v5673_v30  ;;  %6365 = vmatprep.subr.mxu1 %v5764_v47  ;;  %v5782_v45 = vld [vmem:[%s12015_s7 + $0x818] sm:$0xff]  ;;  %v5797_v30 = vld [vmem:[%s12015_s7 + $0x890] sm:$0xff]  ;;  %v5796_v47 = vld [vmem:[%s12015_s7 + $0x888] sm:$0xff] }
 0x4c5   :  { %6292 = vmatprep.subr.mxu0 %v5688_v48  ;;  %6366 = vmatpush3.msra.mxu1 %v5748_v20  ;;  %v5780_v48 = vld [vmem:[%s12015_s7 + $0x808] sm:$0xff]  ;;  %v5795_v20 = vld [vmem:[%s12015_s7 + $0x880] sm:$0xff] }
 0x4c6   :  { %6293 = vmatpush3.msra.mxu0 %v5672_v29  ;;  %6367 = vmatprep.subr.mxu1 %v5763_v28  ;;  %v5779_v29 = vld [vmem:[%s12015_s7 + $0x800] sm:$0xff]  ;;  %v5794_v28 = vld [vmem:[%s12015_s7 + $0x878] sm:$0xff] }
 0x4c7   :  { %6294 = vmatprep.subr.mxu0 %v5687_v62  ;;  %6368 = vmatpush3.msra.mxu1 %v5747_v0  ;;  %v5778_v62 = vld [vmem:[%s12015_s7 + $0x7f8] sm:$0xff]  ;;  %v5793_v0 = vld [vmem:[%s12015_s7 + $0x870] sm:$0xff] }
 0x4c8   :  { %6295 = vmatpush3.msra.mxu0 %v5671_v49  ;;  %6369 = vmatprep.subr.mxu1 %v5762_v50  ;;  %v5777_v49 = vld [vmem:[%s12015_s7 + $0x7f0] sm:$0xff]  ;;  %v5792_v50 = vld [vmem:[%s12015_s7 + $0x868] sm:$0xff] }
 0x4c9   :  { %6296 = vmatprep.subr.mxu0 %v5686_v24  ;;  %6370 = vmatpush3.msra.mxu1 %v5746_v42  ;;  %v5776_v24 = vld [vmem:[%s12015_s7 + $0x7e8] sm:$0xff]  ;;  %v5791_v42 = vld [vmem:[%s12015_s7 + $0x860] sm:$0xff] }
 0x4ca   :  { %6297 = vmatpush3.msra.mxu0 %v5670_v23  ;;  %6371 = vmatprep.subr.mxu1 %v5761_v32  ;;  %v5775_v23 = vld [vmem:[%s12015_s7 + $0x7e0] sm:$0xff]  ;;  %v5790_v32 = vld [vmem:[%s12015_s7 + $0x858] sm:$0xff] }
 0x4cb   :  { %6298 = vmatprep.subr.mxu0 %v5685_v51  ;;  %6372 = vmatpush3.msra.mxu1 %v5745_v14  ;;  %v5774_v51 = vld [vmem:[%s12015_s7 + $0x7d8] sm:$0xff]  ;;  %v5789_v14 = vld [vmem:[%s12015_s7 + $0x850] sm:$0xff] }
 0x4cc   :  { %6299 = vmatpush3.msra.mxu0 %v5669_v52  ;;  %6373 = vmatprep.subr.mxu1 %v5760_v40  ;;  %v5773_v52 = vld [vmem:[%s12015_s7 + $0x7d0] sm:$0xff]  ;;  %v5788_v40 = vld [vmem:[%s12015_s7 + $0x848] sm:$0xff] }
 0x4cd   :  { %6300 = vmatprep.subr.mxu0 %v5684_v53  ;;  %6374 = vmatpush3.msra.mxu1 %v5744_v44  ;;  %v5772_v53 = vld [vmem:[%s12015_s7 + $0x7c8] sm:$0xff]  ;;  %v5787_v44 = vld [vmem:[%s12015_s7 + $0x840] sm:$0xff] }
 0x4ce   :  { %6301 = vmatpush3.msra.mxu0 %v5668_v55  ;;  %6375 = vmatprep.subr.mxu1 %v5759_v57  ;;  %v5771_v55 = vld [vmem:[%s12015_s7 + $0x7c0] sm:$0xff] }
 0x4cf   :  { %6302 = vmatprep.subr.mxu0 %v5683_v36  ;;  %6376 = vmatpush3.msra.mxu1 %v5743_v59 }
 0x4d0   :  { %6303 = vmatpush3.msra.mxu0 %v5667_v8  ;;  %6377 = vmatprep.subr.mxu1 %v5758_v60  ;;  %v5591_v8 = vld [vmem:[%s12016_s8] ss:$0 sm:$0xff]  ;;  %s5096_s8 = sshll.u32 %s6622_s26, 4  ;;  %s5097_s8 = int_to_ptr.vmem [resolvable:$true] %s5096_s8 }
 0x4d1   :  { %6304 = vmatprep.subr.mxu0 %v5682_v61  ;;  %6378 = vmatpush3.msra.mxu1 %v5742_v1  ;;  %p6603_p1 = scmp.lt.s32.totalorder %s5097_s8, %s5097_s8 }
 0x4d2   :  { %6305 = vmatpush3.msra.mxu0 %v5666_v2  ;;  %6379 = vmatprep.subr.mxu1 %v5757_v4 }
 0x4d3   :  { %4400 = vmatmul.mubr.f32.vlgmr.msra.gmra.mxu0 %v11187_v31  ;;  %6523 = vmatprep.subr.mxu0 %v6620_v5 }
 0x4d4   :  { %6380 = vmatpush3.msra.mxu1 %v5741_v7  ;;  %6524 = vmatpush3.msra.mxu0 %v5737_v18 }
 0x4d5   :  { %6381 = vmatprep.subr.mxu1 %v5756_v10  ;;  %6525 = vmatprep.subr.mxu0 %v6620_v5  ;;  %v4835_v10 = vld [vmem:[%s12017_s9 + $0x18] sm:$0xff] }
 0x4d6   :  { %6382 = vmatpush3.msra.mxu1 %v5740_v3  ;;  %6526 = vmatpush3.msra.mxu0 %v5736_v6  ;;  %v4834_v3 = vld [vmem:[%s12017_s9 + $0x10] sm:$0xff]  ;;  %v4833_v6 = vld [vmem:[%s12017_s9 + $0x8] sm:$0xff] }
 0x4d7   :  { %6383 = vmatprep.subr.mxu1 %v5755_v11  ;;  %6527 = vmatprep.subr.mxu0 %v6620_v5 }
 0x4d8   :  { %6384 = vmatpush3.msra.mxu1 %v5739_v12  ;;  %6528 = vmatpush3.msra.mxu0 %v5735_v13  ;;  %v4832_v13 = vld [vmem:[%s12017_s9] sm:$0xff] }
 0x4d9   :  { %4685 = vmatmul.mubr.f32.vlgmr.msra.gmra.mxu1 %v11187_v31  ;;  %6542 = vmatprep.subr.mxu1 %v6620_v5  ;;  %v5808_v31 = vld [vmem:[%s12015_s7 + $0x8e8] sm:$0xff] }
 0x4da   :  { %6529 = vmatprep.subr.mxu0 %v6620_v5  ;;  %6543 = vmatpush3.msra.mxu1 %v5810_v15 }
 0x4db   :  { %6530 = vmatpush3.msra.mxu0 %v5734_v56  ;;  %6544 = vmatprep.subr.mxu1 %v6620_v5  ;;  %v4921_v56 = vld [vmem:[%s12019_s11 + $0x18] sm:$0xff] }
 0x4dc   :  { %6531 = vmatprep.subr.mxu0 %v6620_v5  ;;  %6545 = vmatpush3.msra.mxu1 %v5809_v46 }
 0x4dd   :  { %6532 = vmatpush3.msra.mxu0 %v5733_v16  ;;  %6546 = vmatprep.subr.mxu1 %v6620_v5 }
 0x4de   :  { %6533 = vmatprep.subr.mxu0 %v6620_v5  ;;  %6547 = vmatpush3.msra.mxu1 %v5808_v31 }
 0x4df   :  { %6534 = vmatpush3.msra.mxu0 %v5732_v17  ;;  %6548 = vmatprep.subr.mxu1 %v6620_v5 }
 0x4e0   :  { %6535 = vmatprep.subr.mxu0 %v6620_v5  ;;  %6549 = vmatpush3.msra.mxu1 %v5807_v19  ;;  %v6148_v57 = vpop.f32.mrf.mxu0 }
 0x4e1   :  { %6536 = vmatpush3.msra.mxu0 %v5731_v54  ;;  %6550 = vmatprep.subr.mxu1 %v6620_v5 }
 0x4e2   :  { %6537 = vmatprep.subr.mxu0 %v6620_v5  ;;  %6551 = vmatpush3.msra.mxu1 %v5806_v26  ;;  %v6149_v36 = vpop.f32.mrf.mxu0 }
 0x4e3   :  { %6538 = vmatpush3.msra.mxu0 %v5730_v34  ;;  %6539 = vmatprep.mubr.msk.f32.mxu0 %vm6621_vm1, %v6620_v5  ;;  %v6150_v59 = vadd.f32 %v6149_v36, %v6148_v57 }
 0x4e4   :  { %6552 = vmatprep.subr.mxu1 %v6620_v5  ;;  %6540 = vmatmul.mubr.msk.f32.vlgmr.msra.gmra.mxu0 %vm2003_vm0, %v11362_v58 }
 0x4e5   :  { %6388 = vmatprep.subr.mxu0 %v5802_v22  ;;  %6553 = vmatpush3.msra.mxu1 %v5805_v35  ;;  %v3833_v1 = vadd.f32 %v6150_v59, %v5591_v8  ;;  %v5007_v59 = vld [vmem:[%s12021_s13 + $0x18] sm:$0xff] }
 0x4e6   :  { %6389 = vmatpush3.msra.mxu0 %v5786_v63  ;;  %4754 = vmatprep.mubr.f32.mxu0 %v11233_v9  ;;  %v5799_v9 = vld [vmem:[%s12015_s7 + $0x8a0] sm:$0xff] }
 0x4e7   :  { %6554 = vmatprep.subr.mxu1 %v6620_v5  ;;  %6390 = vmatprep.subr.mxu0 %v5801_v37 }
 0x4e8   :  { %6555 = vmatpush3.msra.mxu1 %v5804_v25  ;;  %6391 = vmatpush3.msra.mxu0 %v5785_v38 }
 0x4e9   :  { %6556 = vmatprep.subr.mxu1 %v6620_v5  ;;  %6392 = vmatprep.subr.mxu0 %v5800_v39 }
 0x4ea   :  { %6557 = vmatpush3.msra.mxu1 %v5803_v43  ;;  %6558 = vmatprep.mubr.msk.f32.mxu1 %vm6621_vm1, %v6620_v5 }
 0x4eb   :  { %6393 = vmatpush3.msra.mxu0 %v5784_v27  ;;  %6559 = vmatmul.mubr.msk.f32.vlgmr.msra.gmra.mxu1 %vm2003_vm0, %v11362_v58  ;;  %v5781_v58 = vld [vmem:[%s12015_s7 + $0x810] sm:$0xff] }
 0x4ec   :  { %6394 = vmatprep.subr.mxu0 %v5799_v9  ;;  %6572 = vmatprep.subr.mxu1 %v6620_v5 }
 0x4ed   :  { %6395 = vmatpush3.msra.mxu0 %v5783_v33  ;;  %6580 = vmatprep.mubr.msk.f32.mxu1 %vm6621_vm1, %v6620_v5 }
 0x4ee   :  { %6396 = vmatprep.subr.mxu0 %v5798_v41  ;;  %6573 = vmatpush3.msra.mxu1 %v4921_v56 }
 0x4ef   :  { %6397 = vmatpush3.msra.mxu0 %v5782_v45  ;;  %6574 = vmatprep.subr.mxu1 %v6620_v5 }
 0x4f0   :  { %6398 = vmatprep.subr.mxu0 %v5797_v30 }
 0x4f1   :  { %6399 = vmatpush3.msra.mxu0 %v5781_v58 }
 0x4f2   :  { %6400 = vmatprep.subr.mxu0 %v5796_v47 }
 0x4f3   :  { %6401 = vmatpush3.msra.mxu0 %v5780_v48 }
 0x4f4   :  { %6402 = vmatprep.subr.mxu0 %v5795_v20 }
 0x4f5   :  { %6403 = vmatpush3.msra.mxu0 %v5779_v29 }
 0x4f6   :  { %6404 = vmatprep.subr.mxu0 %v5794_v28 }
 0x4f7   :  { %6405 = vmatpush3.msra.mxu0 %v5778_v62 }
 0x4f8   :  { %6406 = vmatprep.subr.mxu0 %v5793_v0 }
 0x4f9   :  { %6407 = vmatpush3.msra.mxu0 %v5777_v49 }
 0x4fa   :  { %6408 = vmatprep.subr.mxu0 %v5792_v50 }
 0x4fb   :  { %6409 = vmatpush3.msra.mxu0 %v5776_v24 }
 0x4fc   :  { %6410 = vmatprep.subr.mxu0 %v5791_v42 }
 0x4fd   :  { %6411 = vmatpush3.msra.mxu0 %v5775_v23 }
 0x4fe   :  { %6412 = vmatprep.subr.mxu0 %v5790_v32 }
 0x4ff   :  { %6413 = vmatpush3.msra.mxu0 %v5774_v51 }
 0x500   :  { %6414 = vmatprep.subr.mxu0 %v5789_v14  ;;  %v4920_v14 = vld [vmem:[%s12019_s11 + $0x10] sm:$0xff] }
 0x501   :  { %6415 = vmatpush3.msra.mxu0 %v5773_v52  ;;  %6575 = vmatpush3.msra.mxu1 %v4920_v14  ;;  %v4919_v52 = vld [vmem:[%s12019_s11 + $0x8] sm:$0xff] }
 0x502   :  { %6416 = vmatprep.subr.mxu0 %v5788_v40  ;;  %6576 = vmatprep.subr.mxu1 %v6620_v5  ;;  %v4918_v40 = vld [vmem:[%s12019_s11] sm:$0xff] }
 0x503   :  { %6417 = vmatpush3.msra.mxu0 %v5772_v53  ;;  %6577 = vmatpush3.msra.mxu1 %v4919_v52  ;;  %v5812_v53 = vld [vmem:[%s12018_s10] ss:$0 sm:$0xff] }
 0x504   :  { %6418 = vmatprep.subr.mxu0 %v5787_v44  ;;  %6578 = vmatprep.subr.mxu1 %v6620_v5 }
 0x505   :  { %6419 = vmatpush3.msra.mxu0 %v5771_v55  ;;  %6579 = vmatpush3.msra.mxu1 %v4918_v40 }
 0x506   :  { %4755 = vmatmul.mubr.f32.vlgmr.msra.gmra.mxu0 %v11235_v21  ;;  %6561 = vmatprep.subr.mxu0 %v6620_v5 }
 0x507   :  { %6569 = vmatprep.mubr.msk.f32.mxu0 %vm6621_vm1, %v6620_v5  ;;  %6562 = vmatpush3.msra.mxu0 %v4835_v10 }
 0x508   :  { %6563 = vmatprep.subr.mxu0 %v6620_v5 }
 0x509   :  { %6564 = vmatpush3.msra.mxu0 %v4834_v3 }
 0x50a   :  { %6565 = vmatprep.subr.mxu0 %v6620_v5 }
 0x50b   :  { %6566 = vmatpush3.msra.mxu0 %v4833_v6 }
 0x50c   :  { %6567 = vmatprep.subr.mxu0 %v6620_v5 }
 0x50d   :  { %6568 = vmatpush3.msra.mxu0 %v4832_v13 }
 0x50e   :  { %6583 = vmatprep.subr.mxu0 %v6620_v5 }
 0x524   :  { %v6183_v60 = vpop.f32.mrf.mxu1 }
 0x526   :  { %v6184_v61 = vpop.f32.mrf.mxu1 }
 0x527   :  { %v6185_v2 = vadd.f32 %v6184_v61, %v6183_v60  ;;  %v5005_v60 = vld [vmem:[%s12021_s13 + $0x8] sm:$0xff]  ;;  %v5004_v61 = vld [vmem:[%s12021_s13] sm:$0xff] }
 0x529   :  { %v3903_v4 = vadd.f32 %v6185_v2, %v3833_v1  ;;  %v5814_v1 = vld [vmem:[%s12020_s12] ss:$0 sm:$0xff]  ;;  %s6598_s12 = scalar_lea.vmem %s5097_s8, 32 }
 0x52a   :  { %p6599_p0 = scmp.ne.s32.totalorder %s5097_s8, %s6598_s12  ;;  %p6604_p2 = scmp.lt.s32.totalorder %s6598_s12, %s6598_s12 }
 0x52c   :  { %p6605_p3 = por %p6604_p2, %p6603_p1 }
 0x52e   :  { %p6606_p4 = pnand %p6605_p3, %p6599_p0 }
 0x544   :  { %v6227_v7 = vpop.f32.mrf.mxu1 }
 0x546   :  { %v6228_v18 = vpop.f32.mrf.mxu1 }
 0x547   :  { %v6229_v21 = vadd.f32 %v6228_v18, %v6227_v7 }
 0x549   :  { %v4117_v19 = vadd.f32 %v6229_v21, %v5591_v8 }
 0x550   :  { %v3972_v11 = vpop.f32.mrf.mxu0 }
 0x551   :  { %v3973_v12 = vadd.f32 %v3972_v11, %v3903_v4 }
 0x552   :  { %v6503_v15 = vpop.f32.mrf.mxu0 }
 0x553   :  { %v3976_v22 = vmax.f32 %v3973_v12, 0.0 }
 0x555   :  { %v4256_v46 = vpop.f32.mrf.mxu1 }
 0x557   :  { %v6522_v16 = vpop.f32.mrf.mxu1 }
 0x571   :  { %v6262_v31 = vpop.f32.mrf.mxu0 }
 0x573   :  { %v6263_v17 = vpop.f32.mrf.mxu0 }
 0x574   :  { %v6264_v54 = vadd.f32 %v6263_v17, %v6262_v31 }
 0x576   :  { %v4187_v26 = vadd.f32 %v6264_v54, %v4117_v19 }
 0x577   :  { %v6341_v25 = vpop.f32.mrf.mxu1 }
 0x578   :  { %v4257_v34 = vadd.f32 %v4256_v46, %v4187_v26 }
 0x579   :  { %v6342_v39 = vpop.f32.mrf.mxu1 }
 0x57a   :  { %v4260_v35 = vmax.f32 %v4257_v34, 0.0  ;;  %v6343_v47 = vadd.f32 %v6342_v39, %v6341_v25 }
 0x57c   :  { %v4261_v63 = vmax.f32 %v3976_v22, %v4260_v35 }
 0x593   :  { %v6306_v37 = vpop.f32.mrf.mxu0 }
 0x595   :  { %v6307_v38 = vpop.f32.mrf.mxu0 }
 0x596   :  { %v6308_v30 = vadd.f32 %v6307_v38, %v6306_v37 }
 0x598   :  { %v4402_v58 = vadd.f32 %v6308_v30, %v5591_v8 }
 0x599   :  { %v6385_v27 = vpop.f32.mrf.mxu1 }
 0x59a   :  { %v4472_v20 = vadd.f32 %v6343_v47, %v4402_v58 }
 0x59b   :  { %v6386_v33 = vpop.f32.mrf.mxu1 }
 0x59c   :  { %v6387_v48 = vadd.f32 %v6386_v33, %v6385_v27 }
 0x59e   :  { %v4687_v0 = vadd.f32 %v6387_v48, %v5591_v8  ;;  %v5006_v8 = vld [vmem:[%s12021_s13 + $0x10] sm:$0xff] }
 0x5a4   :  { %v4541_v43 = vpop.f32.mrf.mxu0 }
 0x5a5   :  { %v4542_v28 = vadd.f32 %v4541_v43, %v4472_v20 }
 0x5a6   :  { %v6541_v9 = vpop.f32.mrf.mxu0 }
 0x5a7   :  { %v4545_v50 = vmax.f32 %v4542_v28, 0.0 }
 0x5a9   :  { %v4546_v23 = vmax.f32 %v4261_v63, %v4545_v50 }
 0x5ab   :  { %v4826_v41 = vpop.f32.mrf.mxu1 }
 0x5ad   :  { %v6560_v45 = vpop.f32.mrf.mxu1 }
 0x5c6   :  { %v6420_v29 = vpop.f32.mrf.mxu0 }
 0x5c8   :  { %v6421_v62 = vpop.f32.mrf.mxu0 }
 0x5c9   :  { %v6422_v49 = vadd.f32 %v6421_v62, %v6420_v29 }
 0x5cb   :  { %v4757_v24 = vadd.f32 %v6422_v49, %v4687_v0 }
 0x5cd   :  { %v4827_v42 = vadd.f32 %v4826_v41, %v4757_v24 }
 0x5cf   :  { %v4830_v32 = vmax.f32 %v4827_v42, 0.0 }
 0x5d1   :  { %v4831_v51 = vmax.f32 %v4546_v23, %v4830_v32 }
 0x5d3   :  { %6570 = vmatmul.mubr.msk.f32.vlgmr.msra.gmra.mxu0 %vm4843_vm2, %v4831_v51 }
 0x5d4   :  { %6591 = vmatprep.mubr.msk.f32.mxu0 %vm6621_vm1, %v6620_v5  ;;  %6584 = vmatpush3.msra.mxu0 %v5007_v59 }
 0x5d5   :  { %6585 = vmatprep.subr.mxu0 %v6620_v5 }
 0x5d6   :  { %6586 = vmatpush3.msra.mxu0 %v5006_v8 }
 0x5d7   :  { %6587 = vmatprep.subr.mxu0 %v6620_v5 }
 0x5d8   :  { %6588 = vmatpush3.msra.mxu0 %v5005_v60 }
 0x5d9   :  { %6589 = vmatprep.subr.mxu0 %v6620_v5  ;;  %v5816_v5 = vld [vmem:[%s12022_s14] ss:$0 sm:$0xff] }
 0x5da   :  { %6590 = vmatpush3.msra.mxu0 %v5004_v61 }
 0x693   :  { %v4913_v44 = vpop.f32.mrf.mxu0 }
 0x694   :  { %v4914_v55 = vadd.f32 %v5812_v53, %v4913_v44 }
 0x695   :  { %v6571_v57 = vpop.f32.mrf.mxu0 }
 0x696   :  { %v4917_v36 = vmax.f32 %v4914_v55, 0.0 }
 0x698   :  { %6581 = vmatmul.mubr.msk.f32.vlgmr.msra.gmra.mxu1 %vm4843_vm2, %v4917_v36 }
 0x758   :  { %v4998_v2 = vpop.f32.mrf.mxu1 }
 0x759   :  { %v4999_v4 = vadd.f32 %v5814_v1, %v4998_v2 }
 0x75a   :  { %v6582_v7 = vpop.f32.mrf.mxu1 }
 0x75b   :  { %v5002_v18 = vadd.f32 %v4999_v4, %v4831_v51 }
 0x75d   :  { %v5003_v21 = vmax.f32 %v5002_v18, 0.0 }
 0x75f   :  { %6592 = vmatmul.mubr.msk.f32.vlgmr.msra.gmra.mxu0 %vm4843_vm2, %v5003_v21 }
 0x81f   :  { %v5084_v10 = vpop.f32.mrf.mxu0 }
 0x820   :  { %v5085_v3 = vadd.f32 %v5816_v5, %v5084_v10 }
 0x821   :  { %v6593_v6 = vpop.f32.mrf.mxu0 }
 0x822   :  { %5089 = vst.msk [vmem:[#allocation2] sm:$0x3] %vm5088_vm3, %v5085_v3 }
 0x823   :  { %6609 = shalt.err (!%p6606_p4)
}
 0x824   :  { %5099 = dma.vmem_to_hbm [thread:$0]  %s5097_s8, 32, %s12023_s15, [#allocation3]  }
 0x825   :  { %6618 = dma.done.wait [#allocation3], 32  }
 0x826   :  { %6619 = vsyncadd [#allocation3], 4294967264 }
 0x827   :  { %5103 = vsyncpa [#allocation3], 1 }

</bundles_post_ra>
